<compile_context>
chip_gen: v7x
topology: tpu7x:2x2x1
jax: 0.10.0
libtpu: 0.0.40
codegen_flags: <defaults>
</compile_context>

<pallas_src>
import functools

import jax
import jax.numpy as jnp
import numpy as np
from jax.experimental import pallas as pl
from jax.experimental.pallas import tpu as pltpu


def _round_up(x, m):
    return ((x + m - 1) // m) * m


# ----------------------------------------------------------------------------
# Pallas kernels
# ----------------------------------------------------------------------------
def _matmul_bias_act_kernel(x_ref, w_ref, b_ref, o_ref, *, relu):
    """One (tm, N) output tile: o = act(x @ w + b). bf16 inputs, f32 epilogue."""
    acc = jnp.dot(x_ref[...], w_ref[...], preferred_element_type=jnp.float32)
    acc = acc + b_ref[...]                 # (1, N) f32 bias broadcasts over rows
    if relu:
        acc = jnp.maximum(acc, 0.0)        # f32 epilogue (v5e has no bf16 VPU)
    o_ref[...] = acc.astype(o_ref.dtype)


def _maxpool2x2_kernel(x_ref, o_ref):
    """2x2 / stride-2 maxpool of one image, reading the conv output once.

    Input block is [1, 12, 2, 12, 128]: axis 2 is the h-parity and the last
    (lane) axis packs (w-parity, channel) -> lanes [0:64] = w-even,
    lanes [64:128] = w-odd.  Output block is [1, 12, 12, 64].
    """
    a = x_ref[0, :, 0, :, :]                               # [12, 12, 128] h-even
    b = x_ref[0, :, 1, :, :]                               # [12, 12, 128] h-odd
    m = jnp.maximum(a, b)                                  # pool over h
    o_ref[0] = jnp.maximum(m[:, :, :64], m[:, :, 64:])     # pool over w


def _mlp_head_kernel(x_ref, w3_ref, b3_ref, w4_ref, b4_ref, o_ref, acc_ref):
    """Fused Linear(9216,128)+ReLU -> Linear(128,outdim) -> LogSoftmax.

    Grid = (M tiles, K tiles of fc1). fc1 accumulates into an f32 VMEM scratch;
    bias/ReLU/fc2/log-softmax all run on the last K step (f32 throughout).
    """
    k = pl.program_id(1)

    @pl.when(k == 0)
    def _():
        acc_ref[...] = jnp.zeros_like(acc_ref)

    acc_ref[...] += jnp.dot(x_ref[...], w3_ref[...],
                            preferred_element_type=jnp.float32)

    @pl.when(k == pl.num_programs(1) - 1)
    def _():
        h = jnp.maximum(acc_ref[...] + b3_ref[...], 0.0)          # f32 epilogue
        z = jnp.dot(h.astype(jnp.bfloat16), w4_ref[...],
                    preferred_element_type=jnp.float32) + b4_ref[...]
        m = jnp.max(z, axis=1, keepdims=True)
        lse = jnp.log(jnp.sum(jnp.exp(z - m), axis=1, keepdims=True)) + m
        o_ref[...] = (z - lse).astype(o_ref.dtype)


# ----------------------------------------------------------------------------
# pallas_call wrappers (M-tiled grids, bf16 operands, f32 accumulate)
# ----------------------------------------------------------------------------
def matmul_bias_act(x, w, b, *, relu=True, tm=512, out_dtype=jnp.bfloat16):
    M, K = x.shape
    _, N = w.shape
    tm = min(tm, _round_up(M, 8))
    return pl.pallas_call(
        functools.partial(_matmul_bias_act_kernel, relu=relu),
        out_shape=jax.ShapeDtypeStruct((M, N), out_dtype),
        grid=(pl.cdiv(M, tm),),
        in_specs=[
            pl.BlockSpec((tm, K), lambda i: (i, 0)),
            pl.BlockSpec((K, N), lambda i: (0, 0)),
            pl.BlockSpec((1, N), lambda i: (0, 0)),
        ],
        out_specs=pl.BlockSpec((tm, N), lambda i: (i, 0)),
        compiler_params=pltpu.CompilerParams(dimension_semantics=("parallel",)),
    )(x, w, b)


def maxpool2x2(h):
    """h: [B, 24, 24, 64] -> [B, 12, 12, 64] (MaxPool2d(2))."""
    B = h.shape[0]
    hp = h.reshape(B, 12, 2, 12, 128)     # free row-major (bitcast) reshape
    return pl.pallas_call(
        _maxpool2x2_kernel,
        out_shape=jax.ShapeDtypeStruct((B, 12, 12, 64), h.dtype),
        grid=(B,),
        in_specs=[pl.BlockSpec((1, 12, 2, 12, 128),
                               lambda b: (b, 0, 0, 0, 0))],
        out_specs=pl.BlockSpec((1, 12, 12, 64), lambda b: (b, 0, 0, 0)),
        compiler_params=pltpu.CompilerParams(dimension_semantics=("parallel",)),
    )(hp)


def mlp_head_logsoftmax(x, w3, b3, w4, b4, *, tm=256, tk=1152):
    M, K = x.shape
    H = w3.shape[1]
    N = w4.shape[1]
    assert K % tk == 0
    tm = min(tm, _round_up(M, 8))
    return pl.pallas_call(
        _mlp_head_kernel,
        out_shape=jax.ShapeDtypeStruct((M, N), jnp.float32),
        grid=(pl.cdiv(M, tm), K // tk),
        in_specs=[
            pl.BlockSpec((tm, tk), lambda i, k: (i, k)),
            pl.BlockSpec((tk, H), lambda i, k: (k, 0)),
            pl.BlockSpec((1, H), lambda i, k: (0, 0)),
            pl.BlockSpec((H, N), lambda i, k: (0, 0)),
            pl.BlockSpec((1, N), lambda i, k: (0, 0)),
        ],
        out_specs=pl.BlockSpec((tm, N), lambda i, k: (i, 0)),
        scratch_shapes=[pltpu.VMEM((tm, H), jnp.float32)],
        compiler_params=pltpu.CompilerParams(
            dimension_semantics=("parallel", "arbitrary")),
    )(x, w3, b3, w4, b4)


# ----------------------------------------------------------------------------
# Glue (plain JAX): im2col patch extraction, parameter init
# ----------------------------------------------------------------------------
def im2col(x, k):
    """x: [B, H, W, C] -> [B, H-k+1, W-k+1, k*k*C] (patch order: kh, kw, cin)."""
    B, H, W, C = x.shape
    Ho, Wo = H - k + 1, W - k + 1
    patches = []
    for di in range(k):
        for dj in range(k):
            patches.append(x[:, di:di + Ho, dj:dj + Wo, :])
    return jnp.concatenate(patches, axis=-1)


def init_params(key, outdim=10):
    ks = jax.random.split(key, 8)
    scale = 0.05

    def w(k, shape):  # weights stored as bf16 (native MXU format)
        return (jax.random.normal(k, shape, jnp.float32) * scale).astype(jnp.bfloat16)

    def b(k, shape):  # biases stay f32 (added to the f32 accumulator)
        return jax.random.normal(k, shape, jnp.float32) * scale

    return {
        "w1": w(ks[0], (9, 32)),        # conv1: 3x3x1 -> 32 (kh,kw,cin flatten)
        "b1": b(ks[1], (1, 32)),
        "w2": w(ks[2], (288, 64)),      # conv2: 3x3x32 -> 64
        "b2": b(ks[3], (1, 64)),
        "w3": w(ks[4], (9216, 128)),    # fc1, rows in NHWC-flatten order
        "b3": b(ks[5], (1, 128)),
        "w4": w(ks[6], (128, outdim)),  # fc2
        "b4": b(ks[7], (1, outdim)),
    }


def net_forward(x_nchw, params):
    """x_nchw: [B, 1, 28, 28] float32 -> log-probs [B, outdim] float32."""
    B = x_nchw.shape[0]
    h = jnp.transpose(x_nchw, (0, 2, 3, 1)).astype(jnp.bfloat16)   # NHWC bf16

    # Conv2d(1, 32, 3, 1) + ReLU  (im2col + fused matmul/bias/relu kernel)
    p = im2col(h, 3).reshape(B * 26 * 26, 9)
    h = matmul_bias_act(p, params["w1"], params["b1"], relu=True)
    h = h.reshape(B, 26, 26, 32)

    # Conv2d(32, 64, 3, 1) + ReLU
    p = im2col(h, 3).reshape(B * 24 * 24, 288)
    h = matmul_bias_act(p, params["w2"], params["b2"], relu=True)
    h = h.reshape(B, 24, 24, 64)

    # MaxPool2d(2): single-pass Pallas kernel
    pooled = maxpool2x2(h)                                          # [B,12,12,64]

    # Dropout(0.25): identity in eval mode.
    # Flatten: fc1 weight is stored in NHWC-flatten order -> no transpose pass.
    flat = pooled.reshape(B, 9216)

    # Linear(9216,128)+ReLU  [Dropout(0.5)=id]  Linear(128,outdim)+LogSoftmax
    return mlp_head_logsoftmax(flat, params["w3"], params["b3"],
                               params["w4"], params["b4"])


def net_forward_reference(x_nchw, params):
    """Pure-jnp reference mirroring the kernel math (bf16 ops, f32 accumulate)."""
    f32 = jnp.float32
    B = x_nchw.shape[0]
    h = jnp.transpose(x_nchw, (0, 2, 3, 1)).astype(jnp.bfloat16)
    p = im2col(h, 3).reshape(B * 26 * 26, 9)
    z = jnp.dot(p, params["w1"], preferred_element_type=f32) + params["b1"]
    h = jnp.maximum(z, 0.0).astype(jnp.bfloat16).reshape(B, 26, 26, 32)
    p = im2col(h, 3).reshape(B * 24 * 24, 288)
    z = jnp.dot(p, params["w2"], preferred_element_type=f32) + params["b2"]
    h = jnp.maximum(z, 0.0).astype(jnp.bfloat16).reshape(B, 24, 24, 64)
    h = h.reshape(B, 12, 2, 12, 2, 64).max(axis=(2, 4))
    flat = h.reshape(B, 9216)
    z = jnp.dot(flat, params["w3"], preferred_element_type=f32) + params["b3"]
    hid = jnp.maximum(z, 0.0).astype(jnp.bfloat16)
    z = jnp.dot(hid, params["w4"], preferred_element_type=f32) + params["b4"]
    return jax.nn.log_softmax(z, axis=1)


if __name__ == "__main__":
    key = jax.random.PRNGKey(0)
    k_param, k_x = jax.random.split(key)
    params = init_params(k_param, outdim=10)

    # Input consistent with the module: Linear(9216, ...) implies 28x28, 1 channel.
    x = jax.random.normal(k_x, (2, 1, 28, 28), jnp.float32)

    out = jax.jit(net_forward)(x, params)
    out = jax.block_until_ready(out)

    ref = net_forward_reference(x, params)
    assert out.shape == (2, 10) and out.dtype == jnp.float32
    np.testing.assert_allclose(np.asarray(out), np.asarray(ref), atol=2e-3, rtol=2e-3)
    # log-softmax rows must exp-sum to 1
    np.testing.assert_allclose(np.exp(np.asarray(out)).sum(axis=1), np.ones(2), atol=1e-4)

    print("KERNEL_OK")
</pallas_src>

<mosaic_0001>
module attributes {stable_mosaic.version = 11 : i64} {
  func.func @_matmul_bias_act_kernel(%arg0: i32, %arg1: memref<512x9xbf16, #tpu.memory_space<vmem>>, %arg2: memref<9x32xbf16, #tpu.memory_space<vmem>>, %arg3: memref<1x32xf32, #tpu.memory_space<vmem>>, %arg4: memref<512x32xbf16, #tpu.memory_space<vmem>>) attributes {dimension_semantics = [#tpu.dimension_semantics<parallel>], iteration_bounds = array<i64: 3>, scalar_prefetch = 0 : i64, scratch_operands = 0 : i64, tpu.core_type = #tpu.core_type<tc>, window_params = [{transform_indices = @transform_0, window_bounds = array<i64: 512, 9>}, {pipeline_mode = #tpu.pipeline_mode<synchronous>, transform_indices = @transform_1, window_bounds = array<i64: 9, 32>}, {pipeline_mode = #tpu.pipeline_mode<synchronous>, transform_indices = @transform_2, window_bounds = array<i64: 1, 32>}, {transform_indices = @transform_3, window_bounds = array<i64: 512, 32>}]} {
    %c0 = arith.constant 0 : index
    %c0_0 = arith.constant 0 : index
    %0 = vector.load %arg1[%c0, %c0_0] : memref<512x9xbf16, #tpu.memory_space<vmem>>, vector<512x9xbf16>
    %c0_1 = arith.constant 0 : index
    %c0_2 = arith.constant 0 : index
    %1 = vector.load %arg2[%c0_1, %c0_2] : memref<9x32xbf16, #tpu.memory_space<vmem>>, vector<9x32xbf16>
    %cst = arith.constant dense<0.000000e+00> : vector<512x32xf32>
    %2 = tpu.matmul %0, %1, %cst {dimension_numbers = #tpu.dot_dimension_numbers<[1], [0], [0], [1], [0, 0, 1, 1], [], []>} : vector<512x9xbf16>, vector<9x32xbf16>, vector<512x32xf32> -> vector<512x32xf32>
    %c0_3 = arith.constant 0 : index
    %c0_4 = arith.constant 0 : index
    %3 = vector.load %arg3[%c0_3, %c0_4] : memref<1x32xf32, #tpu.memory_space<vmem>>, vector<1x32xf32>
    %4 = vector.broadcast %3 : vector<1x32xf32> to vector<512x32xf32>
    %5 = arith.addf %2, %4 : vector<512x32xf32>
    %cst_5 = arith.constant 0.000000e+00 : f32
    %6 = vector.broadcast %cst_5 : f32 to vector<512x32xf32>
    %7 = arith.maximumf %5, %6 : vector<512x32xf32>
    %8 = arith.truncf %7 : vector<512x32xf32> to vector<512x32xbf16>
    %c0_6 = arith.constant 0 : index
    %c0_7 = arith.constant 0 : index
    %9 = vector.load %arg4[%c0_6, %c0_7] : memref<512x32xbf16, #tpu.memory_space<vmem>>, vector<512x32xbf16>
    tpu.vector_store %arg4[%c0_6, %c0_7], %8 {strides = array<i32>} : memref<512x32xbf16, #tpu.memory_space<vmem>>, vector<512x32xbf16>,
    return
  }
  func.func @transform_0(%arg0: i32) -> (i32, i32) {
    %c0_i32 = arith.constant 0 : i32
    %c0_i32_0 = arith.constant 0 : i32
    return %arg0, %c0_i32 : i32, i32
  }
  func.func @transform_1(%arg0: i32) -> (i32, i32) {
    %c0_i32 = arith.constant 0 : i32
    %c0_i32_0 = arith.constant 0 : i32
    %c0_i32_1 = arith.constant 0 : i32
    return %c0_i32, %c0_i32_0 : i32, i32
  }
  func.func @transform_2(%arg0: i32) -> (i32, i32) {
    %c0_i32 = arith.constant 0 : i32
    %c0_i32_0 = arith.constant 0 : i32
    %c0_i32_1 = arith.constant 0 : i32
    return %c0_i32, %c0_i32_0 : i32, i32
  }
  func.func @transform_3(%arg0: i32) -> (i32, i32) {
    %c0_i32 = arith.constant 0 : i32
    %c0_i32_0 = arith.constant 0 : i32
    return %arg0, %c0_i32 : i32, i32
  }
}

module attributes {stable_mosaic.version = 11 : i64} {
  func.func @_matmul_bias_act_kernel(%arg0: i32, %arg1: memref<512x288xbf16, #tpu.memory_space<vmem>>, %arg2: memref<288x64xbf16, #tpu.memory_space<vmem>>, %arg3: memref<1x64xf32, #tpu.memory_space<vmem>>, %arg4: memref<512x64xbf16, #tpu.memory_space<vmem>>) attributes {dimension_semantics = [#tpu.dimension_semantics<parallel>], iteration_bounds = array<i64: 3>, scalar_prefetch = 0 : i64, scratch_operands = 0 : i64, tpu.core_type = #tpu.core_type<tc>, window_params = [{transform_indices = @transform_0, window_bounds = array<i64: 512, 288>}, {pipeline_mode = #tpu.pipeline_mode<synchronous>, transform_indices = @transform_1, window_bounds = array<i64: 288, 64>}, {pipeline_mode = #tpu.pipeline_mode<synchronous>, transform_indices = @transform_2, window_bounds = array<i64: 1, 64>}, {transform_indices = @transform_3, window_bounds = array<i64: 512, 64>}]} {
    %c0 = arith.constant 0 : index
    %c0_0 = arith.constant 0 : index
    %0 = vector.load %arg1[%c0, %c0_0] : memref<512x288xbf16, #tpu.memory_space<vmem>>, vector<512x288xbf16>
    %c0_1 = arith.constant 0 : index
    %c0_2 = arith.constant 0 : index
    %1 = vector.load %arg2[%c0_1, %c0_2] : memref<288x64xbf16, #tpu.memory_space<vmem>>, vector<288x64xbf16>
    %cst = arith.constant dense<0.000000e+00> : vector<512x64xf32>
    %2 = tpu.matmul %0, %1, %cst {dimension_numbers = #tpu.dot_dimension_numbers<[1], [0], [0], [1], [0, 0, 1, 1], [], []>} : vector<512x288xbf16>, vector<288x64xbf16>, vector<512x64xf32> -> vector<512x64xf32>
    %c0_3 = arith.constant 0 : index
    %c0_4 = arith.constant 0 : index
    %3 = vector.load %arg3[%c0_3, %c0_4] : memref<1x64xf32, #tpu.memory_space<vmem>>, vector<1x64xf32>
    %4 = vector.broadcast %3 : vector<1x64xf32> to vector<512x64xf32>
    %5 = arith.addf %2, %4 : vector<512x64xf32>
    %cst_5 = arith.constant 0.000000e+00 : f32
    %6 = vector.broadcast %cst_5 : f32 to vector<512x64xf32>
    %7 = arith.maximumf %5, %6 : vector<512x64xf32>
    %8 = arith.truncf %7 : vector<512x64xf32> to vector<512x64xbf16>
    %c0_6 = arith.constant 0 : index
    %c0_7 = arith.constant 0 : index
    %9 = vector.load %arg4[%c0_6, %c0_7] : memref<512x64xbf16, #tpu.memory_space<vmem>>, vector<512x64xbf16>
    tpu.vector_store %arg4[%c0_6, %c0_7], %8 {strides = array<i32>} : memref<512x64xbf16, #tpu.memory_space<vmem>>, vector<512x64xbf16>,
    return
  }
  func.func @transform_0(%arg0: i32) -> (i32, i32) {
    %c0_i32 = arith.constant 0 : i32
    %c0_i32_0 = arith.constant 0 : i32
    return %arg0, %c0_i32 : i32, i32
  }
  func.func @transform_1(%arg0: i32) -> (i32, i32) {
    %c0_i32 = arith.constant 0 : i32
    %c0_i32_0 = arith.constant 0 : i32
    %c0_i32_1 = arith.constant 0 : i32
    return %c0_i32, %c0_i32_0 : i32, i32
  }
  func.func @transform_2(%arg0: i32) -> (i32, i32) {
    %c0_i32 = arith.constant 0 : i32
    %c0_i32_0 = arith.constant 0 : i32
    %c0_i32_1 = arith.constant 0 : i32
    return %c0_i32, %c0_i32_0 : i32, i32
  }
  func.func @transform_3(%arg0: i32) -> (i32, i32) {
    %c0_i32 = arith.constant 0 : i32
    %c0_i32_0 = arith.constant 0 : i32
    return %arg0, %c0_i32 : i32, i32
  }
}

module attributes {stable_mosaic.version = 11 : i64} {
  func.func @_maxpool2x2_kernel(%arg0: i32, %arg1: memref<1x12x2x12x128xbf16, #tpu.memory_space<vmem>>, %arg2: memref<1x12x12x64xbf16, #tpu.memory_space<vmem>>) attributes {dimension_semantics = [#tpu.dimension_semantics<parallel>], iteration_bounds = array<i64: 2>, scalar_prefetch = 0 : i64, scratch_operands = 0 : i64, tpu.core_type = #tpu.core_type<tc>, window_params = [{transform_indices = @transform_0, window_bounds = array<i64: 1, 12, 2, 12, 128>}, {transform_indices = @transform_1, window_bounds = array<i64: 1, 12, 12, 64>}]} {
    %c0 = arith.constant 0 : index
    %c0_0 = arith.constant 0 : index
    %c0_1 = arith.constant 0 : index
    %c0_2 = arith.constant 0 : index
    %c0_3 = arith.constant 0 : index
    %0 = vector.load %arg1[%c0, %c0_0, %c0_1, %c0_2, %c0_3] : memref<1x12x2x12x128xbf16, #tpu.memory_space<vmem>>, vector<1x12x1x12x128xbf16>
    %1 = vector.shape_cast %0 : vector<1x12x1x12x128xbf16> to vector<12x12x128xbf16>
    %c0_4 = arith.constant 0 : index
    %c0_5 = arith.constant 0 : index
    %c1 = arith.constant 1 : index
    %c0_6 = arith.constant 0 : index
    %c0_7 = arith.constant 0 : index
    %2 = vector.load %arg1[%c0_4, %c0_5, %c1, %c0_6, %c0_7] : memref<1x12x2x12x128xbf16, #tpu.memory_space<vmem>>, vector<1x12x1x12x128xbf16>
    %3 = vector.shape_cast %2 : vector<1x12x1x12x128xbf16> to vector<12x12x128xbf16>
    %4 = arith.maximumf %1, %3 : vector<12x12x128xbf16>
    %5 = vector.extract_strided_slice %4 {offsets = [0, 0, 0], sizes = [12, 12, 64], strides = [1, 1, 1]} : vector<12x12x128xbf16> to vector<12x12x64xbf16>
    %6 = vector.extract_strided_slice %4 {offsets = [0, 0, 64], sizes = [12, 12, 64], strides = [1, 1, 1]} : vector<12x12x128xbf16> to vector<12x12x64xbf16>
    %7 = arith.maximumf %5, %6 : vector<12x12x64xbf16>
    %c0_8 = arith.constant 0 : index
    %c0_9 = arith.constant 0 : index
    %c0_10 = arith.constant 0 : index
    %c0_11 = arith.constant 0 : index
    %8 = vector.load %arg2[%c0_8, %c0_9, %c0_10, %c0_11] : memref<1x12x12x64xbf16, #tpu.memory_space<vmem>>, vector<1x12x12x64xbf16>
    %9 = vector.shape_cast %8 : vector<1x12x12x64xbf16> to vector<12x12x64xbf16>
    %10 = vector.shape_cast %7 : vector<12x12x64xbf16> to vector<1x12x12x64xbf16>
    tpu.vector_store %arg2[%c0_8, %c0_9, %c0_10, %c0_11], %10 {strides = array<i32>} : memref<1x12x12x64xbf16, #tpu.memory_space<vmem>>, vector<1x12x12x64xbf16>,
    return
  }
  func.func @transform_0(%arg0: i32) -> (i32, i32, i32, i32, i32) {
    %c0_i32 = arith.constant 0 : i32
    %c0_i32_0 = arith.constant 0 : i32
    %c0_i32_1 = arith.constant 0 : i32
    %c0_i32_2 = arith.constant 0 : i32
    %c0_i32_3 = arith.constant 0 : i32
    return %arg0, %c0_i32, %c0_i32_0, %c0_i32_1, %c0_i32_2 : i32, i32, i32, i32, i32
  }
  func.func @transform_1(%arg0: i32) -> (i32, i32, i32, i32) {
    %c0_i32 = arith.constant 0 : i32
    %c0_i32_0 = arith.constant 0 : i32
    %c0_i32_1 = arith.constant 0 : i32
    %c0_i32_2 = arith.constant 0 : i32
    return %arg0, %c0_i32, %c0_i32_0, %c0_i32_1 : i32, i32, i32, i32
  }
}

module attributes {stable_mosaic.version = 11 : i64} {
  func.func @_mlp_head_kernel(%arg0: i32, %arg1: i32, %arg2: memref<8x1152xbf16, #tpu.memory_space<vmem>>, %arg3: memref<1152x128xbf16, #tpu.memory_space<vmem>>, %arg4: memref<1x128xf32, #tpu.memory_space<vmem>>, %arg5: memref<128x10xbf16, #tpu.memory_space<vmem>>, %arg6: memref<1x10xf32, #tpu.memory_space<vmem>>, %arg7: memref<8x10xf32, #tpu.memory_space<vmem>>, %arg8: memref<8x128xf32, #tpu.memory_space<vmem>>) attributes {dimension_semantics = [#tpu.dimension_semantics<parallel>, #tpu.dimension_semantics<arbitrary>], iteration_bounds = array<i64: 1, 8>, scalar_prefetch = 0 : i64, scratch_operands = 1 : i64, tpu.core_type = #tpu.core_type<tc>, window_params = [{transform_indices = @transform_0, window_bounds = array<i64: 8, 1152>}, {transform_indices = @transform_1, window_bounds = array<i64: 1152, 128>}, {pipeline_mode = #tpu.pipeline_mode<synchronous>, transform_indices = @transform_2, window_bounds = array<i64: 1, 128>}, {pipeline_mode = #tpu.pipeline_mode<synchronous>, transform_indices = @transform_3, window_bounds = array<i64: 128, 10>}, {pipeline_mode = #tpu.pipeline_mode<synchronous>, transform_indices = @transform_4, window_bounds = array<i64: 1, 10>}, {transform_indices = @transform_5, window_bounds = array<i64: 8, 10>}]} {
    %c0_i32 = arith.constant 0 : i32
    %0 = arith.cmpi eq, %arg1, %c0_i32 : i32
    %1 = arith.extui %0 : i1 to i32
    %c0_i32_0 = arith.constant 0 : i32
    %2 = arith.cmpi ne, %1, %c0_i32_0 : i32
    scf.if %2 {
      %cst_9 = arith.constant 0.000000e+00 : f32
      %12 = vector.broadcast %cst_9 : f32 to vector<8x128xf32>
      %c0_10 = arith.constant 0 : index
      %c0_11 = arith.constant 0 : index
      %13 = vector.load %arg8[%c0_10, %c0_11] : memref<8x128xf32, #tpu.memory_space<vmem>>, vector<8x128xf32>
      tpu.vector_store %arg8[%c0_10, %c0_11], %12 {strides = array<i32>} : memref<8x128xf32, #tpu.memory_space<vmem>>, vector<8x128xf32>,
    } else {
    }
    %c0 = arith.constant 0 : index
    %c0_1 = arith.constant 0 : index
    %3 = vector.load %arg8[%c0, %c0_1] : memref<8x128xf32, #tpu.memory_space<vmem>>, vector<8x128xf32>
    %c0_2 = arith.constant 0 : index
    %c0_3 = arith.constant 0 : index
    %4 = vector.load %arg2[%c0_2, %c0_3] : memref<8x1152xbf16, #tpu.memory_space<vmem>>, vector<8x1152xbf16>
    %c0_4 = arith.constant 0 : index
    %c0_5 = arith.constant 0 : index
    %5 = vector.load %arg3[%c0_4, %c0_5] : memref<1152x128xbf16, #tpu.memory_space<vmem>>, vector<1152x128xbf16>
    %cst = arith.constant dense<0.000000e+00> : vector<8x128xf32>
    %6 = tpu.matmul %4, %5, %cst {dimension_numbers = #tpu.dot_dimension_numbers<[1], [0], [0], [1], [0, 0, 1, 1], [], []>} : vector<8x1152xbf16>, vector<1152x128xbf16>, vector<8x128xf32> -> vector<8x128xf32>
    %7 = arith.addf %3, %6 : vector<8x128xf32>
    %c0_6 = arith.constant 0 : index
    %c0_7 = arith.constant 0 : index
    %8 = vector.load %arg8[%c0_6, %c0_7] : memref<8x128xf32, #tpu.memory_space<vmem>>, vector<8x128xf32>
    tpu.vector_store %arg8[%c0_6, %c0_7], %7 {strides = array<i32>} : memref<8x128xf32, #tpu.memory_space<vmem>>, vector<8x128xf32>,
    %c7_i32 = arith.constant 7 : i32
    %9 = arith.cmpi eq, %arg1, %c7_i32 : i32
    %10 = arith.extui %9 : i1 to i32
    %c0_i32_8 = arith.constant 0 : i32
    %11 = arith.cmpi ne, %10, %c0_i32_8 : i32
    scf.if %11 {
      %c0_9 = arith.constant 0 : index
      %c0_10 = arith.constant 0 : index
      %12 = vector.load %arg8[%c0_9, %c0_10] : memref<8x128xf32, #tpu.memory_space<vmem>>, vector<8x128xf32>
      %c0_11 = arith.constant 0 : index
      %c0_12 = arith.constant 0 : index
      %13 = vector.load %arg4[%c0_11, %c0_12] : memref<1x128xf32, #tpu.memory_space<vmem>>, vector<1x128xf32>
      %14 = vector.broadcast %13 : vector<1x128xf32> to vector<8x128xf32>
      %15 = arith.addf %12, %14 : vector<8x128xf32>
      %cst_13 = arith.constant 0.000000e+00 : f32
      %16 = vector.broadcast %cst_13 : f32 to vector<8x128xf32>
      %17 = arith.maximumf %15, %16 : vector<8x128xf32>
      %18 = arith.truncf %17 : vector<8x128xf32> to vector<8x128xbf16>
      %c0_14 = arith.constant 0 : index
      %c0_15 = arith.constant 0 : index
      %19 = vector.load %arg5[%c0_14, %c0_15] : memref<128x10xbf16, #tpu.memory_space<vmem>>, vector<128x10xbf16>
      %cst_16 = arith.constant dense<0.000000e+00> : vector<8x10xf32>
      %20 = tpu.matmul %18, %19, %cst_16 {dimension_numbers = #tpu.dot_dimension_numbers<[1], [0], [0], [1], [0, 0, 1, 1], [], []>} : vector<8x128xbf16>, vector<128x10xbf16>, vector<8x10xf32> -> vector<8x10xf32>
      %c0_17 = arith.constant 0 : index
      %c0_18 = arith.constant 0 : index
      %21 = vector.load %arg6[%c0_17, %c0_18] : memref<1x10xf32, #tpu.memory_space<vmem>>, vector<1x10xf32>
      %22 = vector.broadcast %21 : vector<1x10xf32> to vector<8x10xf32>
      %23 = arith.addf %20, %22 : vector<8x10xf32>
      %cst_19 = arith.constant dense<0xFF800000> : vector<8xf32>
      %24 = vector.multi_reduction <maximumf>, %23, %cst_19 [1] : vector<8x10xf32> to vector<8xf32>
      %25 = vector.shape_cast %24 : vector<8xf32> to vector<8x1xf32>
      %26 = vector.broadcast %25 : vector<8x1xf32> to vector<8x10xf32>
      %27 = arith.subf %23, %26 : vector<8x10xf32>
      %28 = math.exp %27 : vector<8x10xf32>
      %cst_20 = arith.constant dense<0.000000e+00> : vector<8xf32>
      %29 = vector.multi_reduction <add>, %28, %cst_20 [1] : vector<8x10xf32> to vector<8xf32>
      %30 = vector.shape_cast %29 : vector<8xf32> to vector<8x1xf32>
      %31 = math.log %30 : vector<8x1xf32>
      %32 = arith.addf %31, %25 : vector<8x1xf32>
      %33 = vector.broadcast %32 : vector<8x1xf32> to vector<8x10xf32>
      %34 = arith.subf %23, %33 : vector<8x10xf32>
      %c0_21 = arith.constant 0 : index
      %c0_22 = arith.constant 0 : index
      %35 = vector.load %arg7[%c0_21, %c0_22] : memref<8x10xf32, #tpu.memory_space<vmem>>, vector<8x10xf32>
      tpu.vector_store %arg7[%c0_21, %c0_22], %34 {strides = array<i32>} : memref<8x10xf32, #tpu.memory_space<vmem>>, vector<8x10xf32>,
    } else {
    }
    return
  }
  func.func @transform_0(%arg0: i32, %arg1: i32) -> (i32, i32) {
    %c0_i32 = arith.constant 0 : i32
    return %arg0, %arg1 : i32, i32
  }
  func.func @transform_1(%arg0: i32, %arg1: i32) -> (i32, i32) {
    %c0_i32 = arith.constant 0 : i32
    %c0_i32_0 = arith.constant 0 : i32
    return %arg1, %c0_i32 : i32, i32
  }
  func.func @transform_2(%arg0: i32, %arg1: i32) -> (i32, i32) {
    %c0_i32 = arith.constant 0 : i32
    %c0_i32_0 = arith.constant 0 : i32
    %c0_i32_1 = arith.constant 0 : i32
    return %c0_i32, %c0_i32_0 : i32, i32
  }
  func.func @transform_3(%arg0: i32, %arg1: i32) -> (i32, i32) {
    %c0_i32 = arith.constant 0 : i32
    %c0_i32_0 = arith.constant 0 : i32
    %c0_i32_1 = arith.constant 0 : i32
    return %c0_i32, %c0_i32_0 : i32, i32
  }
  func.func @transform_4(%arg0: i32, %arg1: i32) -> (i32, i32) {
    %c0_i32 = arith.constant 0 : i32
    %c0_i32_0 = arith.constant 0 : i32
    %c0_i32_1 = arith.constant 0 : i32
    return %c0_i32, %c0_i32_0 : i32, i32
  }
  func.func @transform_5(%arg0: i32, %arg1: i32) -> (i32, i32) {
    %c0_i32 = arith.constant 0 : i32
    %c0_i32_0 = arith.constant 0 : i32
    return %arg0, %c0_i32 : i32, i32
  }
}

</mosaic_0001>

<bundles_post_ra>
// kernel: net_forward.4
= control target key start
LH: loop header
LB: loop body
LE: loop exit
PB: predicated region body
PF: predicated region fallthrough
CT: control target
= control target key end

     0   :  { %8 = vsyncpa [#allocation3], 0  ;;  %s2945_s0 = inlined_call_operand.vmem [shape: bf16[1352,9], index: 0, kind: input, shape index: {}]   ;;  %s2946_s1 = inlined_call_operand.hbm [shape: bf16[9,32], index: 1, kind: input, shape index: {}]   ;;  %s2947_s2 = inlined_call_operand.hbm [shape: f32[1,32], index: 2, kind: input, shape index: {}]   ;;  %s2948_s3 = inlined_call_operand.vmem [shape: bf16[1352,32], index: 3, kind: output, shape index: {}]  }
   0x1   :  { %9 = vsyncpa [#allocation5], 0  ;;  %s2373_s12 = smov 0   ;;  %s2375_s13 = smov 0  }
   0x2   :  { %s2377_s14 = smov 0  }
   0x3 LB: > { %s2386_s15 = sadd.s32 4294967295, %s2314_s14   ;;  %s2388_s16 = sadd.s32 1, %s2314_s14   ;;  %s2314_s14 = sphi %s2377_s14, %s2965_s14   ;;  %s2310_s13 = sphi %s2375_s13, %s2964_s13   ;;  %s2306_s12 = sphi %s2373_s12, %s2963_s12  }
   0x4   : > { %s87_s17 = ssub.s32 %s2314_s14, %s2388_s16  ;;  %s90_s18 = sadd.s32 1, %s2310_s13 }
   0x5   : > { %p88_p0 = scmp.eq.s32.totalorder %s87_s17, 0  ;;  %p100_p1 = scmp.ne.s32.totalorder %s2310_s13, %s2306_s12 }
   0x6   : > { %p101_p2 = scmp.eq.s32.totalorder %s2386_s15, 2  ;;  %p1726_p3 = scmp.ge.s32.totalorder %s2314_s14, 1 }
   0x7   : > { %s2396_s19 = scalar_select %p88_p0, %s2310_s13, %s90_s18  }
   0x8   : > { %p2398_p4 = por %p101_p2, %p100_p1  ;;  %p114_p5 = scmp.lt.s32.totalorder %s2314_s14, 4 }
   0x9   : > { %p2949_p6 = scmp.eq.s32.totalorder %s2386_s15, 0  ;;  %s2348_s22 = smov [#allocation2]  }
   0xa   : > { %s2951_s20 = scalar_select %p2398_p4, 1, 0 }
   0xb   : > { %p2403_p7 = pnand %p1726_p3, %p114_p5  ;;  %s126_s23 = sshll.u32 %s2348_s22, 4  ;;  %s127_s23 = int_to_ptr.vmem [resolvable:$true] %s126_s23 }
   0xc   : > { %s2349_s25 = smov [#allocation4]   ;;  %s2196_s29 = scalar_lea.hbm %s2946_s1, 128 }
   0xd   : > { %s2952_s21 = scalar_select %p2403_p7, 1, 0 }
   0xe   : > { %p2059_p8 = pneg %p2403_p7  ;;  %s140_s26 = sshll.u32 %s2349_s25, 4  ;;  %s2415_s26 = int_to_ptr.vmem [resolvable:$true] %s140_s26 }
   0xf   : > { %p2197_p10 = scmp.ne.s32.totalorder %s2946_s1, %s2196_s29  ;;  %p2203_p0 = scmp.lt.u32.totalorder %s2196_s29, %s2946_s1 }
  0x10   : > { %p2411_p9 = pnand %p2949_p6, %p2059_p8 }
  0x12   : > { %p2198_p11 = pneg %p2411_p9 }
  0x14   : > { %p2199_p12 = pnand %p2198_p11, %p2197_p10 }
  0x16   : > { %p2200_p13 = pneg %p2199_p12 }
  0x18   : > { %p2205_p1 = pnand %p2203_p0, %p2200_p13 }
  0x1a   : > { %2208 = shalt.err (!%p2205_p1)
}
  0x1b   : > { %s2209_s7 = scalar_lea.vmem %s127_s23, 128  ;;  %p2217_p8 = scmp.lt.s32.totalorder %s127_s23, %s127_s23 }
  0x1c   : > { %p2210_p2 = scmp.ne.s32.totalorder %s127_s23, %s2209_s7  ;;  %p2218_p6 = scmp.lt.s32.totalorder %s2209_s7, %s2209_s7 }
  0x1e   : > { %p2212_p3 = pnand %p2210_p2, %p2198_p11  ;;  %p2219_p4 = por %p2218_p6, %p2217_p8 }
  0x20   : > { %p2213_p5 = pneg %p2212_p3 }
  0x22   : > { %p2220_p7 = pnand %p2219_p4, %p2213_p5 }
  0x24   : > { %2223 = shalt.err (!%p2220_p7)
}
  0x25   : > { %s2350_s8 = smov 64   ;;  %s2351_s9 = smov 4  }
  0x26   : > { %2062 = dma.hbm_to_vmem [thread:$0]  (!%p2411_p9), %s2946_s1, 128, %s127_s23, [#allocation3], %s2350_s8, %s2350_s8, %s2351_s9  }
  0x27   : > { %s2224_s18 = scalar_lea.hbm %s2947_s2, 16 }
  0x28   : > { %p2225_p10 = scmp.ne.s32.totalorder %s2947_s2, %s2224_s18  ;;  %p2231_p7 = scmp.lt.u32.totalorder %s2224_s18, %s2947_s2 }
  0x2a   : > { %p2227_p4 = pnand %p2225_p10, %p2198_p11 }
  0x2c   : > { %p2228_p6 = pneg %p2227_p4 }
  0x2e   : > { %p2233_p12 = pnand %p2231_p7, %p2228_p6 }
  0x30   : > { %2236 = shalt.err (!%p2233_p12)
}
  0x31   : > { %s2237_s23 = scalar_lea.vmem %s2415_s26, 16  ;;  %s2244_s29 = scalar_lea.vmem %s2415_s26, 32 }
  0x32   : > { %p2238_p13 = scmp.ne.s32.totalorder %s2415_s26, %s2237_s23  ;;  %p2245_p2 = scmp.lt.s32.totalorder %s2415_s26, %s2415_s26 }
  0x33   : > { %p2246_p3 = scmp.lt.s32.totalorder %s2244_s29, %s2237_s23 }
  0x34   : > { %p2240_p0 = pnand %p2238_p13, %p2198_p11 }
  0x35   : > { %p2247_p5 = por %p2246_p3, %p2245_p2 }
  0x36   : > { %p2241_p1 = pneg %p2240_p0 }
  0x38   : > { %p2248_p8 = pnand %p2247_p5, %p2241_p1 }
  0x3a   : > { %2251 = shalt.err (!%p2248_p8)
}
  0x3b   : > { %2065 = dma.hbm_to_vmem [thread:$0]  (!%p2411_p9), %s2947_s2, 16, %s2415_s26, [#allocation5]  }
  0x3c   : > { %p2954_p10 = scmp.ne.s32.totalorder %s2952_s21, 0 }
  0x3d   : > { %p2955_p11 = scmp.eq.s32.totalorder (!%p2954_p10), %s2386_s15, 0 }
  0x3e   : > { %170 = sbr.rel (%p2954_p10) target bundleno = 453 (0x1c5), region = 32 }
  0x45   : > { %2297 = dma.done.wait (%p2955_p11), [#allocation3], 128   ;;  %p2956_p4 = pmov %p2955_p11 }
  0x47   : > { %2299 = vsyncadd (%p2956_p4), [#allocation3], 4294967168  ;;  %p2957_p6 = pmov %p2956_p4 }
  0x48   : > { %p2958_p7 = pmov %p2956_p4 }
  0x49   : > { %2301 = dma.done.wait (%p2957_p6), [#allocation5], 16  }
  0x4a   : > { %2303 = vsyncadd (%p2958_p7), [#allocation5], 4294967280  ;;  %vm556_vm0 = vcmask 1043456   ;;  %s2476_s24 = sshll.u32 %s2386_s15, 6  ;;  %vm557_vm1 = vcmask 1044480   ;;  %v2352_v0 = vmov 65535  }
  0x4b   : > { %p206_p9 = scmp.lt.s32.totalorder %s2476_s24, 168  ;;  %v558_v1 = vsel %vm556_vm0, 4294967295, %v2352_v0  ;;  %vm459_vm2 = vcmask 72704   ;;  %v2163_v3 = vld [vmem:[#allocation2] sm:$0x1f]   ;;  %s198_s8 = sand.u32 1, %s2306_s12  }
  0x4c   : > { %v559_v2 = vsel %vm557_vm1, %v558_v1, 0  ;;  %v2550_v37 = vld [vmem:[#allocation4] ss:$0 sm:$0xff]  ;;  %s1733_s9 = sshll.u32 %s198_s8, 8  ;;  %vm1172_vm3 = vcmask 257024   ;;  %p2959_p12 = scmp.ne.s32.totalorder %s2951_s20, 0 }
  0x4d   : > { %s207_s21 = scalar_select %p206_p9, %s2476_s24, 168  ;;  %v561_v5 = vand.u32 %v2163_v3, %v559_v2 }
  0x4e   : > { %s2560_s12 = scalar_lea.vmem [#allocation6], %s1733_s9   ;;  %s1245_s10 = ssub.s32 (%p2959_p12), 169, %s2476_s24 }
  0x4f   : > { %s1735_s26 = sshll.u32 %s207_s21, 2  ;;  %1983 = vmatprep.subr.bf16.mxu0 %v561_v5  ;;  %2049 = vmatprep.subr.bf16.mxu1 %v561_v5  ;;  %s1947_s11 = sshll.u32 (%p2959_p12), %s2386_s15, 8 }
  0x50   : > { %s2483_s7 = scalar_lea.vmem %s2945_s0, %s1735_s26  ;;  %1984 = vmatpush3.bf16.msra.mxu0 %v561_v5  ;;  %2050 = vmatpush3.bf16.msra.mxu1 %v561_v5  ;;  %p1246_p13 = scmp.lt.s32.totalorder (%p2959_p12), %s1245_s10, 64 }
  0x51   : > { %v2164_v4 = vld [vmem:[%s2483_s7] sm:$0xff]   ;;  %v2166_v7 = vld [vmem:[%s2483_s7 + $0x8] sm:$0xff]   ;;  %v2168_v9 = vld [vmem:[%s2483_s7 + $0x10] sm:$0xff]   ;;  %s2753_s18 = scalar_lea.vmem (%p2959_p12), %s2948_s3, %s1947_s11  }
  0x52   : > { %v2165_v6 = vld [vmem:[%s2483_s7 + $0x80] sm:$0xff]   ;;  %1985 = vmatprep.mubr.msk.bf16.mxu0 %vm459_vm2, %v2164_v4  ;;  %v2167_v8 = vld [vmem:[%s2483_s7 + $0x88] sm:$0xff]   ;;  %v2169_v10 = vld [vmem:[%s2483_s7 + $0x90] sm:$0xff]  }
  0x53   : > { %2017 = vmatprep.mubr.msk.bf16.mxu1 %vm459_vm2, %v2165_v6  ;;  %1986 = vmatmul.mubr.msk.bf16.vlgmr.msra.gmra.mrb[0].mxu0 %vm459_vm2, %v2166_v7  ;;  %v2170_v11 = vld [vmem:[%s2483_s7 + $0x18] sm:$0xff]   ;;  %v2172_v13 = vld [vmem:[%s2483_s7 + $0x20] sm:$0xff]   ;;  %v2174_v15 = vld [vmem:[%s2483_s7 + $0x28] sm:$0xff]  }
  0x54   : > { %2018 = vmatmul.mubr.msk.bf16.vlgmr.msra.gmra.mrb[0].mxu1 %vm459_vm2, %v2167_v8  ;;  %1989 = vmatprep.mubr.msk.bf16.mxu0 %vm459_vm2, %v2168_v9  ;;  %v2171_v12 = vld [vmem:[%s2483_s7 + $0x98] sm:$0xff]   ;;  %v2173_v14 = vld [vmem:[%s2483_s7 + $0xa0] sm:$0xff]   ;;  %v2175_v16 = vld [vmem:[%s2483_s7 + $0xa8] sm:$0xff]  }
  0x55   : > { %2021 = vmatprep.mubr.msk.bf16.mxu1 %vm459_vm2, %v2169_v10  ;;  %v2176_v17 = vld [vmem:[%s2483_s7 + $0x30] sm:$0xff]   ;;  %v2178_v19 = vld [vmem:[%s2483_s7 + $0x38] sm:$0xff]   ;;  %v2180_v21 = vld [vmem:[%s2483_s7 + $0x40] sm:$0xff]  }
  0x56   : > { %v2177_v18 = vld [vmem:[%s2483_s7 + $0xb0] sm:$0xff]   ;;  %v2179_v20 = vld [vmem:[%s2483_s7 + $0xb8] sm:$0xff]   ;;  %v2181_v22 = vld [vmem:[%s2483_s7 + $0xc0] sm:$0xff]  }
  0x57   : > { %v2182_v23 = vld [vmem:[%s2483_s7 + $0x48] sm:$0xff]   ;;  %v2184_v25 = vld [vmem:[%s2483_s7 + $0x50] sm:$0xff]   ;;  %v2186_v27 = vld [vmem:[%s2483_s7 + $0x58] sm:$0xff]  }
  0x58   : > { %v2183_v24 = vld [vmem:[%s2483_s7 + $0xc8] sm:$0xff]   ;;  %v2185_v26 = vld [vmem:[%s2483_s7 + $0xd0] sm:$0xff]   ;;  %v2187_v28 = vld [vmem:[%s2483_s7 + $0xd8] sm:$0xff]  }
  0x59   : > { %v2188_v29 = vld [vmem:[%s2483_s7 + $0x60] sm:$0xff]   ;;  %v2190_v31 = vld [vmem:[%s2483_s7 + $0x68] sm:$0xff]   ;;  %v2192_v33 = vld [vmem:[%s2483_s7 + $0x70] sm:$0xff]  }
  0x5a   : > { %v2189_v30 = vld [vmem:[%s2483_s7 + $0xe0] sm:$0xff]   ;;  %v2191_v32 = vld [vmem:[%s2483_s7 + $0xe8] sm:$0xff]   ;;  %v2193_v34 = vld [vmem:[%s2483_s7 + $0xf0] sm:$0xff]  }
  0x5b   : > { %1990 = vmatmul.mubr.msk.bf16.gmra.mrb[4].mxu0 %vm459_vm2, %v2170_v11  ;;  %v2194_v35 = vld [vmem:[%s2483_s7 + $0x78] sm:$0xff]  }
  0x5c   : > { %2022 = vmatmul.mubr.msk.bf16.gmra.mrb[4].mxu1 %vm459_vm2, %v2171_v12  ;;  %1993 = vmatprep.mubr.msk.bf16.mxu0 %vm459_vm2, %v2172_v13  ;;  %v2195_v36 = vld [vmem:[%s2483_s7 + $0xf8] sm:$0xff]  }
  0x5d   : > { %2025 = vmatprep.mubr.msk.bf16.mxu1 %vm459_vm2, %v2173_v14 }
  0x63   : > { %1994 = vmatmul.mubr.msk.bf16.gmra.mrb[8].mxu0 %vm459_vm2, %v2174_v15 }
  0x64   : > { %2026 = vmatmul.mubr.msk.bf16.gmra.mrb[8].mxu1 %vm459_vm2, %v2175_v16  ;;  %1997 = vmatprep.mubr.msk.bf16.mxu0 %vm459_vm2, %v2176_v17 }
  0x65   : > { %2029 = vmatprep.mubr.msk.bf16.mxu1 %vm459_vm2, %v2177_v18 }
  0x6b   : > { %1998 = vmatmul.mubr.msk.bf16.gmra.mrb[12].mxu0 %vm459_vm2, %v2178_v19 }
  0x6c   : > { %2030 = vmatmul.mubr.msk.bf16.gmra.mrb[12].mxu1 %vm459_vm2, %v2179_v20  ;;  %2001 = vmatprep.mubr.msk.bf16.mxu0 %vm459_vm2, %v2180_v21 }
  0x6d   : > { %2033 = vmatprep.mubr.msk.bf16.mxu1 %vm459_vm2, %v2181_v22 }
  0x73   : > { %2002 = vmatmul.mubr.msk.bf16.gmra.mrb[16].mxu0 %vm459_vm2, %v2182_v23 }
  0x74   : > { %2034 = vmatmul.mubr.msk.bf16.gmra.mrb[16].mxu1 %vm459_vm2, %v2183_v24  ;;  %2005 = vmatprep.mubr.msk.bf16.mxu0 %vm459_vm2, %v2184_v25 }
  0x75   : > { %2037 = vmatprep.mubr.msk.bf16.mxu1 %vm459_vm2, %v2185_v26 }
  0x7b   : > { %2006 = vmatmul.mubr.msk.bf16.gmra.mrb[20].mxu0 %vm459_vm2, %v2186_v27 }
  0x7c   : > { %2038 = vmatmul.mubr.msk.bf16.gmra.mrb[20].mxu1 %vm459_vm2, %v2187_v28  ;;  %2009 = vmatprep.mubr.msk.bf16.mxu0 %vm459_vm2, %v2188_v29 }
  0x7d   : > { %2041 = vmatprep.mubr.msk.bf16.mxu1 %vm459_vm2, %v2189_v30 }
  0x83   : > { %2010 = vmatmul.mubr.msk.bf16.gmra.mrb[24].mxu0 %vm459_vm2, %v2190_v31 }
  0x84   : > { %2042 = vmatmul.mubr.msk.bf16.gmra.mrb[24].mxu1 %vm459_vm2, %v2191_v32  ;;  %2013 = vmatprep.mubr.msk.bf16.mxu0 %vm459_vm2, %v2192_v33 }
  0x85   : > { %2045 = vmatprep.mubr.msk.bf16.mxu1 %vm459_vm2, %v2193_v34 }
  0x8b   : > { %2014 = vmatmul.mubr.msk.bf16.gmra.mrb[28].mxu0 %vm459_vm2, %v2194_v35 }
  0x8c   : > { %2046 = vmatmul.mubr.msk.bf16.gmra.mrb[28].mxu1 %vm459_vm2, %v2195_v36 }
 0x126   : > { %v1987_v38 = vpop.f32.mrb[0].mxu0 }
 0x127   : > { %v2019_v39 = vpop.f32.mrb[0].mxu1  ;;  %v606_v40 = vadd.f32 %v1987_v38, %v2550_v37  ;;  %v597_v42 = vpop.f32.mrb[1].mxu0 }
 0x128   : > { %v734_v41 = vadd.f32 %v2019_v39, %v2550_v37  ;;  %v725_v43 = vpop.f32.mrb[1].mxu1  ;;  %v598_v44 = vadd.f32 %v2550_v37, %v597_v42  ;;  %v1988_v46 = vpop.f32.mrb[2].mxu0 }
 0x129   : > { %v726_v45 = vadd.f32 %v2550_v37, %v725_v43  ;;  %v2020_v47 = vpop.f32.mrb[2].mxu1  ;;  %v854_v48 = vmax.f32 %v606_v40, 0.0  ;;  %v609_v50 = vadd.f32 %v1988_v46, %v2550_v37  ;;  %v600_v52 = vpop.f32.mrb[3].mxu0 }
 0x12a   : > { %v886_v49 = vmax.f32 %v734_v41, 0.0  ;;  %v737_v51 = vadd.f32 %v2020_v47, %v2550_v37  ;;  %v728_v53 = vpop.f32.mrb[3].mxu1  ;;  %v852_v54 = vmax.f32 %v598_v44, 0.0  ;;  %v601_v56 = vadd.f32 %v2550_v37, %v600_v52 }
 0x12b   : > { %v884_v55 = vmax.f32 %v726_v45, 0.0  ;;  %v729_v57 = vadd.f32 %v2550_v37, %v728_v53  ;;  %v1885_v58 = vpack.c.bf16 %v854_v48, %v854_v48  ;;  %v855_v60 = vmax.f32 %v609_v50, 0.0 }
 0x12c   : > { %v1917_v59 = vpack.c.bf16 %v886_v49, %v886_v49  ;;  %v887_v61 = vmax.f32 %v737_v51, 0.0  ;;  %v1883_v62 = vpack.c.bf16 %v852_v54, %v852_v54  ;;  %v853_v0 = vmax.f32 %v601_v56, 0.0 }
 0x12d   : > { %v1915_v63 = vpack.c.bf16 %v884_v55, %v884_v55  ;;  %v885_v1 = vmax.f32 %v729_v57, 0.0  ;;  %1175 = vst.msk [vmem:[%s2560_s12 + $0x8] sm:$0xf] %vm1172_vm3, %v1885_v58  ;;  %v1886_v2 = vpack.c.bf16 %v855_v60, %v855_v60 }
 0x12e   : > { %1207 = vst.msk [vmem:[%s2560_s12 + $0x88] sm:$0xf] %vm1172_vm3, %v1917_v59  ;;  %v1918_v3 = vpack.c.bf16 %v887_v61, %v887_v61  ;;  %1173 = vst.msk [vmem:[%s2560_s12] sm:$0xf] %vm1172_vm3, %v1883_v62  ;;  %v1884_v4 = vpack.c.bf16 %v853_v0, %v853_v0  ;;  %v1991_v6 = vpop.f32.mrb[4].mxu0 }
 0x12f   : > { %1205 = vst.msk [vmem:[%s2560_s12 + $0x80] sm:$0xf] %vm1172_vm3, %v1915_v63  ;;  %v1916_v5 = vpack.c.bf16 %v885_v1, %v885_v1  ;;  %v2023_v7 = vpop.f32.mrb[4].mxu1  ;;  %1176 = vst.msk [vmem:[%s2560_s12 + $0xc] sm:$0xf] %vm1172_vm3, %v1886_v2  ;;  %v622_v8 = vadd.f32 %v1991_v6, %v2550_v37  ;;  %v613_v10 = vpop.f32.mrb[5].mxu0 }
 0x130   : > { %1208 = vst.msk [vmem:[%s2560_s12 + $0x8c] sm:$0xf] %vm1172_vm3, %v1918_v3  ;;  %v750_v9 = vadd.f32 %v2023_v7, %v2550_v37  ;;  %v741_v11 = vpop.f32.mrb[5].mxu1  ;;  %1174 = vst.msk [vmem:[%s2560_s12 + $0x4] sm:$0xf] %vm1172_vm3, %v1884_v4  ;;  %v614_v12 = vadd.f32 %v2550_v37, %v613_v10  ;;  %v1992_v14 = vpop.f32.mrb[6].mxu0 }
 0x131   : > { %1206 = vst.msk [vmem:[%s2560_s12 + $0x84] sm:$0xf] %vm1172_vm3, %v1916_v5  ;;  %v742_v13 = vadd.f32 %v2550_v37, %v741_v11  ;;  %v2024_v15 = vpop.f32.mrb[6].mxu1  ;;  %v858_v16 = vmax.f32 %v622_v8, 0.0  ;;  %v625_v18 = vadd.f32 %v1992_v14, %v2550_v37  ;;  %v616_v20 = vpop.f32.mrb[7].mxu0 }
 0x132   : > { %v890_v17 = vmax.f32 %v750_v9, 0.0  ;;  %v753_v19 = vadd.f32 %v2024_v15, %v2550_v37  ;;  %v744_v21 = vpop.f32.mrb[7].mxu1  ;;  %v856_v22 = vmax.f32 %v614_v12, 0.0  ;;  %v617_v24 = vadd.f32 %v2550_v37, %v616_v20 }
 0x133   : > { %v888_v23 = vmax.f32 %v742_v13, 0.0  ;;  %v745_v25 = vadd.f32 %v2550_v37, %v744_v21  ;;  %v1889_v26 = vpack.c.bf16 %v858_v16, %v858_v16  ;;  %v859_v28 = vmax.f32 %v625_v18, 0.0 }
 0x134   : > { %v1921_v27 = vpack.c.bf16 %v890_v17, %v890_v17  ;;  %v891_v29 = vmax.f32 %v753_v19, 0.0  ;;  %v1887_v30 = vpack.c.bf16 %v856_v22, %v856_v22  ;;  %v857_v32 = vmax.f32 %v617_v24, 0.0 }
 0x135   : > { %v1919_v31 = vpack.c.bf16 %v888_v23, %v888_v23  ;;  %v889_v33 = vmax.f32 %v745_v25, 0.0  ;;  %1179 = vst.msk [vmem:[%s2560_s12 + $0x18] sm:$0xf] %vm1172_vm3, %v1889_v26  ;;  %v1890_v34 = vpack.c.bf16 %v859_v28, %v859_v28 }
 0x136   : > { %1211 = vst.msk [vmem:[%s2560_s12 + $0x98] sm:$0xf] %vm1172_vm3, %v1921_v27  ;;  %v1922_v35 = vpack.c.bf16 %v891_v29, %v891_v29  ;;  %1177 = vst.msk [vmem:[%s2560_s12 + $0x10] sm:$0xf] %vm1172_vm3, %v1887_v30  ;;  %v1888_v36 = vpack.c.bf16 %v857_v32, %v857_v32  ;;  %v1995_v39 = vpop.f32.mrb[8].mxu0 }
 0x137   : > { %1209 = vst.msk [vmem:[%s2560_s12 + $0x90] sm:$0xf] %vm1172_vm3, %v1919_v31  ;;  %v1920_v38 = vpack.c.bf16 %v889_v33, %v889_v33  ;;  %v2027_v40 = vpop.f32.mrb[8].mxu1  ;;  %1180 = vst.msk [vmem:[%s2560_s12 + $0x1c] sm:$0xf] %vm1172_vm3, %v1890_v34  ;;  %v638_v41 = vadd.f32 %v1995_v39, %v2550_v37  ;;  %v629_v43 = vpop.f32.mrb[9].mxu0 }
 0x138   : > { %1212 = vst.msk [vmem:[%s2560_s12 + $0x9c] sm:$0xf] %vm1172_vm3, %v1922_v35  ;;  %v766_v42 = vadd.f32 %v2027_v40, %v2550_v37  ;;  %v757_v44 = vpop.f32.mrb[9].mxu1  ;;  %1178 = vst.msk [vmem:[%s2560_s12 + $0x14] sm:$0xf] %vm1172_vm3, %v1888_v36  ;;  %v630_v45 = vadd.f32 %v2550_v37, %v629_v43  ;;  %v1996_v47 = vpop.f32.mrb[10].mxu0 }
 0x139   : > { %1210 = vst.msk [vmem:[%s2560_s12 + $0x94] sm:$0xf] %vm1172_vm3, %v1920_v38  ;;  %v758_v46 = vadd.f32 %v2550_v37, %v757_v44  ;;  %v2028_v48 = vpop.f32.mrb[10].mxu1  ;;  %v862_v49 = vmax.f32 %v638_v41, 0.0  ;;  %v641_v51 = vadd.f32 %v1996_v47, %v2550_v37  ;;  %v632_v53 = vpop.f32.mrb[11].mxu0 }
 0x13a   : > { %v894_v50 = vmax.f32 %v766_v42, 0.0  ;;  %v769_v52 = vadd.f32 %v2028_v48, %v2550_v37  ;;  %v760_v54 = vpop.f32.mrb[11].mxu1  ;;  %v860_v55 = vmax.f32 %v630_v45, 0.0  ;;  %v633_v57 = vadd.f32 %v2550_v37, %v632_v53 }
 0x13b   : > { %v892_v56 = vmax.f32 %v758_v46, 0.0  ;;  %v761_v58 = vadd.f32 %v2550_v37, %v760_v54  ;;  %v1893_v59 = vpack.c.bf16 %v862_v49, %v862_v49  ;;  %v863_v61 = vmax.f32 %v641_v51, 0.0 }
 0x13c   : > { %v1925_v60 = vpack.c.bf16 %v894_v50, %v894_v50  ;;  %v895_v62 = vmax.f32 %v769_v52, 0.0  ;;  %v1891_v63 = vpack.c.bf16 %v860_v55, %v860_v55  ;;  %v861_v1 = vmax.f32 %v633_v57, 0.0 }
 0x13d   : > { %v1923_v0 = vpack.c.bf16 %v892_v56, %v892_v56  ;;  %v893_v2 = vmax.f32 %v761_v58, 0.0  ;;  %1183 = vst.msk [vmem:[%s2560_s12 + $0x28] sm:$0xf] %vm1172_vm3, %v1893_v59  ;;  %v1894_v3 = vpack.c.bf16 %v863_v61, %v863_v61 }
 0x13e   : > { %1215 = vst.msk [vmem:[%s2560_s12 + $0xa8] sm:$0xf] %vm1172_vm3, %v1925_v60  ;;  %v1926_v4 = vpack.c.bf16 %v895_v62, %v895_v62  ;;  %1181 = vst.msk [vmem:[%s2560_s12 + $0x20] sm:$0xf] %vm1172_vm3, %v1891_v63  ;;  %v1892_v5 = vpack.c.bf16 %v861_v1, %v861_v1  ;;  %v1999_v7 = vpop.f32.mrb[12].mxu0 }
 0x13f   : > { %1213 = vst.msk [vmem:[%s2560_s12 + $0xa0] sm:$0xf] %vm1172_vm3, %v1923_v0  ;;  %v1924_v6 = vpack.c.bf16 %v893_v2, %v893_v2  ;;  %v2031_v8 = vpop.f32.mrb[12].mxu1  ;;  %1184 = vst.msk [vmem:[%s2560_s12 + $0x2c] sm:$0xf] %vm1172_vm3, %v1894_v3  ;;  %v654_v9 = vadd.f32 %v1999_v7, %v2550_v37  ;;  %v645_v11 = vpop.f32.mrb[13].mxu0 }
 0x140   : > { %1216 = vst.msk [vmem:[%s2560_s12 + $0xac] sm:$0xf] %vm1172_vm3, %v1926_v4  ;;  %v782_v10 = vadd.f32 %v2031_v8, %v2550_v37  ;;  %v773_v12 = vpop.f32.mrb[13].mxu1  ;;  %1182 = vst.msk [vmem:[%s2560_s12 + $0x24] sm:$0xf] %vm1172_vm3, %v1892_v5  ;;  %v646_v13 = vadd.f32 %v2550_v37, %v645_v11  ;;  %v2000_v15 = vpop.f32.mrb[14].mxu0 }
 0x141   : > { %1214 = vst.msk [vmem:[%s2560_s12 + $0xa4] sm:$0xf] %vm1172_vm3, %v1924_v6  ;;  %v774_v14 = vadd.f32 %v2550_v37, %v773_v12  ;;  %v2032_v16 = vpop.f32.mrb[14].mxu1  ;;  %v866_v17 = vmax.f32 %v654_v9, 0.0  ;;  %v657_v19 = vadd.f32 %v2000_v15, %v2550_v37  ;;  %v648_v21 = vpop.f32.mrb[15].mxu0 }
 0x142   : > { %v898_v18 = vmax.f32 %v782_v10, 0.0  ;;  %v785_v20 = vadd.f32 %v2032_v16, %v2550_v37  ;;  %v776_v22 = vpop.f32.mrb[15].mxu1  ;;  %v864_v23 = vmax.f32 %v646_v13, 0.0  ;;  %v649_v25 = vadd.f32 %v2550_v37, %v648_v21 }
 0x143   : > { %v896_v24 = vmax.f32 %v774_v14, 0.0  ;;  %v777_v26 = vadd.f32 %v2550_v37, %v776_v22  ;;  %v1897_v27 = vpack.c.bf16 %v866_v17, %v866_v17  ;;  %v867_v29 = vmax.f32 %v657_v19, 0.0 }
 0x144   : > { %v1929_v28 = vpack.c.bf16 %v898_v18, %v898_v18  ;;  %v899_v30 = vmax.f32 %v785_v20, 0.0  ;;  %v1895_v31 = vpack.c.bf16 %v864_v23, %v864_v23  ;;  %v865_v33 = vmax.f32 %v649_v25, 0.0 }
 0x145   : > { %v1927_v32 = vpack.c.bf16 %v896_v24, %v896_v24  ;;  %v897_v34 = vmax.f32 %v777_v26, 0.0  ;;  %1187 = vst.msk [vmem:[%s2560_s12 + $0x38] sm:$0xf] %vm1172_vm3, %v1897_v27  ;;  %v1898_v35 = vpack.c.bf16 %v867_v29, %v867_v29 }
 0x146   : > { %1219 = vst.msk [vmem:[%s2560_s12 + $0xb8] sm:$0xf] %vm1172_vm3, %v1929_v28  ;;  %v1930_v36 = vpack.c.bf16 %v899_v30, %v899_v30  ;;  %1185 = vst.msk [vmem:[%s2560_s12 + $0x30] sm:$0xf] %vm1172_vm3, %v1895_v31  ;;  %v1896_v38 = vpack.c.bf16 %v865_v33, %v865_v33  ;;  %v2003_v40 = vpop.f32.mrb[16].mxu0 }
 0x147   : > { %1217 = vst.msk [vmem:[%s2560_s12 + $0xb0] sm:$0xf] %vm1172_vm3, %v1927_v32  ;;  %v1928_v39 = vpack.c.bf16 %v897_v34, %v897_v34  ;;  %v2035_v41 = vpop.f32.mrb[16].mxu1  ;;  %1188 = vst.msk [vmem:[%s2560_s12 + $0x3c] sm:$0xf] %vm1172_vm3, %v1898_v35  ;;  %v670_v42 = vadd.f32 %v2003_v40, %v2550_v37  ;;  %v661_v44 = vpop.f32.mrb[17].mxu0 }
 0x148   : > { %1220 = vst.msk [vmem:[%s2560_s12 + $0xbc] sm:$0xf] %vm1172_vm3, %v1930_v36  ;;  %v798_v43 = vadd.f32 %v2035_v41, %v2550_v37  ;;  %v789_v45 = vpop.f32.mrb[17].mxu1  ;;  %1186 = vst.msk [vmem:[%s2560_s12 + $0x34] sm:$0xf] %vm1172_vm3, %v1896_v38  ;;  %v662_v46 = vadd.f32 %v2550_v37, %v661_v44  ;;  %v2004_v48 = vpop.f32.mrb[18].mxu0 }
 0x149   : > { %1218 = vst.msk [vmem:[%s2560_s12 + $0xb4] sm:$0xf] %vm1172_vm3, %v1928_v39  ;;  %v790_v47 = vadd.f32 %v2550_v37, %v789_v45  ;;  %v2036_v49 = vpop.f32.mrb[18].mxu1  ;;  %v870_v50 = vmax.f32 %v670_v42, 0.0  ;;  %v673_v52 = vadd.f32 %v2004_v48, %v2550_v37  ;;  %v664_v54 = vpop.f32.mrb[19].mxu0 }
 0x14a   : > { %v902_v51 = vmax.f32 %v798_v43, 0.0  ;;  %v801_v53 = vadd.f32 %v2036_v49, %v2550_v37  ;;  %v792_v55 = vpop.f32.mrb[19].mxu1  ;;  %v868_v56 = vmax.f32 %v662_v46, 0.0  ;;  %v665_v58 = vadd.f32 %v2550_v37, %v664_v54 }
 0x14b   : > { %v900_v57 = vmax.f32 %v790_v47, 0.0  ;;  %v793_v59 = vadd.f32 %v2550_v37, %v792_v55  ;;  %v1901_v60 = vpack.c.bf16 %v870_v50, %v870_v50  ;;  %v871_v62 = vmax.f32 %v673_v52, 0.0 }
 0x14c   : > { %v1933_v61 = vpack.c.bf16 %v902_v51, %v902_v51  ;;  %v903_v63 = vmax.f32 %v801_v53, 0.0  ;;  %v1899_v0 = vpack.c.bf16 %v868_v56, %v868_v56  ;;  %v869_v2 = vmax.f32 %v665_v58, 0.0 }
 0x14d   : > { %v1931_v1 = vpack.c.bf16 %v900_v57, %v900_v57  ;;  %v901_v3 = vmax.f32 %v793_v59, 0.0  ;;  %1191 = vst.msk [vmem:[%s2560_s12 + $0x48] sm:$0xf] %vm1172_vm3, %v1901_v60  ;;  %v1902_v4 = vpack.c.bf16 %v871_v62, %v871_v62 }
 0x14e   : > { %1223 = vst.msk [vmem:[%s2560_s12 + $0xc8] sm:$0xf] %vm1172_vm3, %v1933_v61  ;;  %v1934_v5 = vpack.c.bf16 %v903_v63, %v903_v63  ;;  %1189 = vst.msk [vmem:[%s2560_s12 + $0x40] sm:$0xf] %vm1172_vm3, %v1899_v0  ;;  %v1900_v6 = vpack.c.bf16 %v869_v2, %v869_v2  ;;  %v2007_v8 = vpop.f32.mrb[20].mxu0 }
 0x14f   : > { %1221 = vst.msk [vmem:[%s2560_s12 + $0xc0] sm:$0xf] %vm1172_vm3, %v1931_v1  ;;  %v1932_v7 = vpack.c.bf16 %v901_v3, %v901_v3  ;;  %v2039_v9 = vpop.f32.mrb[20].mxu1  ;;  %1192 = vst.msk [vmem:[%s2560_s12 + $0x4c] sm:$0xf] %vm1172_vm3, %v1902_v4  ;;  %v686_v10 = vadd.f32 %v2007_v8, %v2550_v37  ;;  %v677_v12 = vpop.f32.mrb[21].mxu0 }
 0x150   : > { %1224 = vst.msk [vmem:[%s2560_s12 + $0xcc] sm:$0xf] %vm1172_vm3, %v1934_v5  ;;  %v814_v11 = vadd.f32 %v2039_v9, %v2550_v37  ;;  %v805_v13 = vpop.f32.mrb[21].mxu1  ;;  %1190 = vst.msk [vmem:[%s2560_s12 + $0x44] sm:$0xf] %vm1172_vm3, %v1900_v6  ;;  %v678_v14 = vadd.f32 %v2550_v37, %v677_v12  ;;  %v2008_v16 = vpop.f32.mrb[22].mxu0 }
 0x151   : > { %1222 = vst.msk [vmem:[%s2560_s12 + $0xc4] sm:$0xf] %vm1172_vm3, %v1932_v7  ;;  %v806_v15 = vadd.f32 %v2550_v37, %v805_v13  ;;  %v2040_v17 = vpop.f32.mrb[22].mxu1  ;;  %v874_v18 = vmax.f32 %v686_v10, 0.0  ;;  %v689_v20 = vadd.f32 %v2008_v16, %v2550_v37  ;;  %v680_v22 = vpop.f32.mrb[23].mxu0 }
 0x152   : > { %v906_v19 = vmax.f32 %v814_v11, 0.0  ;;  %v817_v21 = vadd.f32 %v2040_v17, %v2550_v37  ;;  %v808_v23 = vpop.f32.mrb[23].mxu1  ;;  %v872_v24 = vmax.f32 %v678_v14, 0.0  ;;  %v681_v26 = vadd.f32 %v2550_v37, %v680_v22 }
 0x153   : > { %v904_v25 = vmax.f32 %v806_v15, 0.0  ;;  %v809_v27 = vadd.f32 %v2550_v37, %v808_v23  ;;  %v1905_v28 = vpack.c.bf16 %v874_v18, %v874_v18  ;;  %v875_v30 = vmax.f32 %v689_v20, 0.0 }
 0x154   : > { %v1937_v29 = vpack.c.bf16 %v906_v19, %v906_v19  ;;  %v907_v31 = vmax.f32 %v817_v21, 0.0  ;;  %v1903_v32 = vpack.c.bf16 %v872_v24, %v872_v24  ;;  %v873_v34 = vmax.f32 %v681_v26, 0.0 }
 0x155   : > { %v1935_v33 = vpack.c.bf16 %v904_v25, %v904_v25  ;;  %v905_v35 = vmax.f32 %v809_v27, 0.0  ;;  %1195 = vst.msk [vmem:[%s2560_s12 + $0x58] sm:$0xf] %vm1172_vm3, %v1905_v28  ;;  %v1906_v36 = vpack.c.bf16 %v875_v30, %v875_v30 }
 0x156   : > { %1227 = vst.msk [vmem:[%s2560_s12 + $0xd8] sm:$0xf] %vm1172_vm3, %v1937_v29  ;;  %v1938_v38 = vpack.c.bf16 %v907_v31, %v907_v31  ;;  %1193 = vst.msk [vmem:[%s2560_s12 + $0x50] sm:$0xf] %vm1172_vm3, %v1903_v32  ;;  %v1904_v39 = vpack.c.bf16 %v873_v34, %v873_v34  ;;  %v2011_v41 = vpop.f32.mrb[24].mxu0 }
 0x157   : > { %1225 = vst.msk [vmem:[%s2560_s12 + $0xd0] sm:$0xf] %vm1172_vm3, %v1935_v33  ;;  %v1936_v40 = vpack.c.bf16 %v905_v35, %v905_v35  ;;  %v2043_v42 = vpop.f32.mrb[24].mxu1  ;;  %1196 = vst.msk [vmem:[%s2560_s12 + $0x5c] sm:$0xf] %vm1172_vm3, %v1906_v36  ;;  %v702_v43 = vadd.f32 %v2011_v41, %v2550_v37  ;;  %v693_v45 = vpop.f32.mrb[25].mxu0 }
 0x158   : > { %1228 = vst.msk [vmem:[%s2560_s12 + $0xdc] sm:$0xf] %vm1172_vm3, %v1938_v38  ;;  %v830_v44 = vadd.f32 %v2043_v42, %v2550_v37  ;;  %v821_v46 = vpop.f32.mrb[25].mxu1  ;;  %1194 = vst.msk [vmem:[%s2560_s12 + $0x54] sm:$0xf] %vm1172_vm3, %v1904_v39  ;;  %v694_v47 = vadd.f32 %v2550_v37, %v693_v45  ;;  %v2012_v49 = vpop.f32.mrb[26].mxu0 }
 0x159   : > { %1226 = vst.msk [vmem:[%s2560_s12 + $0xd4] sm:$0xf] %vm1172_vm3, %v1936_v40  ;;  %v822_v48 = vadd.f32 %v2550_v37, %v821_v46  ;;  %v2044_v50 = vpop.f32.mrb[26].mxu1  ;;  %v878_v51 = vmax.f32 %v702_v43, 0.0  ;;  %v705_v53 = vadd.f32 %v2012_v49, %v2550_v37  ;;  %v696_v55 = vpop.f32.mrb[27].mxu0 }
 0x15a   : > { %v910_v52 = vmax.f32 %v830_v44, 0.0  ;;  %v833_v54 = vadd.f32 %v2044_v50, %v2550_v37  ;;  %v824_v56 = vpop.f32.mrb[27].mxu1  ;;  %v876_v57 = vmax.f32 %v694_v47, 0.0  ;;  %v697_v59 = vadd.f32 %v2550_v37, %v696_v55 }
 0x15b   : > { %v908_v58 = vmax.f32 %v822_v48, 0.0  ;;  %v825_v60 = vadd.f32 %v2550_v37, %v824_v56  ;;  %v1909_v61 = vpack.c.bf16 %v878_v51, %v878_v51  ;;  %v879_v63 = vmax.f32 %v705_v53, 0.0 }
 0x15c   : > { %v1941_v62 = vpack.c.bf16 %v910_v52, %v910_v52  ;;  %v911_v0 = vmax.f32 %v833_v54, 0.0  ;;  %v1907_v1 = vpack.c.bf16 %v876_v57, %v876_v57  ;;  %v877_v3 = vmax.f32 %v697_v59, 0.0 }
 0x15d   : > { %v1939_v2 = vpack.c.bf16 %v908_v58, %v908_v58  ;;  %v909_v4 = vmax.f32 %v825_v60, 0.0  ;;  %1199 = vst.msk [vmem:[%s2560_s12 + $0x68] sm:$0xf] %vm1172_vm3, %v1909_v61  ;;  %v1910_v5 = vpack.c.bf16 %v879_v63, %v879_v63 }
 0x15e   : > { %1231 = vst.msk [vmem:[%s2560_s12 + $0xe8] sm:$0xf] %vm1172_vm3, %v1941_v62  ;;  %v1942_v6 = vpack.c.bf16 %v911_v0, %v911_v0  ;;  %1197 = vst.msk [vmem:[%s2560_s12 + $0x60] sm:$0xf] %vm1172_vm3, %v1907_v1  ;;  %v1908_v7 = vpack.c.bf16 %v877_v3, %v877_v3  ;;  %v2015_v9 = vpop.f32.mrb[28].mxu0 }
 0x15f   : > { %1229 = vst.msk [vmem:[%s2560_s12 + $0xe0] sm:$0xf] %vm1172_vm3, %v1939_v2  ;;  %v1940_v8 = vpack.c.bf16 %v909_v4, %v909_v4  ;;  %v2047_v10 = vpop.f32.mrb[28].mxu1  ;;  %1200 = vst.msk [vmem:[%s2560_s12 + $0x6c] sm:$0xf] %vm1172_vm3, %v1910_v5  ;;  %v718_v11 = vadd.f32 %v2015_v9, %v2550_v37  ;;  %v709_v13 = vpop.f32.mrb[29].mxu0 }
 0x160   : > { %1232 = vst.msk [vmem:[%s2560_s12 + $0xec] sm:$0xf] %vm1172_vm3, %v1942_v6  ;;  %v846_v12 = vadd.f32 %v2047_v10, %v2550_v37  ;;  %v837_v14 = vpop.f32.mrb[29].mxu1  ;;  %1198 = vst.msk [vmem:[%s2560_s12 + $0x64] sm:$0xf] %vm1172_vm3, %v1908_v7  ;;  %v710_v15 = vadd.f32 %v2550_v37, %v709_v13  ;;  %v2016_v17 = vpop.f32.mrb[30].mxu0 }
 0x161   : > { %1230 = vst.msk [vmem:[%s2560_s12 + $0xe4] sm:$0xf] %vm1172_vm3, %v1940_v8  ;;  %v838_v16 = vadd.f32 %v2550_v37, %v837_v14  ;;  %v2048_v18 = vpop.f32.mrb[30].mxu1  ;;  %v882_v19 = vmax.f32 %v718_v11, 0.0  ;;  %v721_v21 = vadd.f32 %v2016_v17, %v2550_v37  ;;  %v712_v23 = vpop.f32.mrb[31].mxu0 }
 0x162   : > { %v914_v20 = vmax.f32 %v846_v12, 0.0  ;;  %v849_v22 = vadd.f32 %v2048_v18, %v2550_v37  ;;  %v840_v24 = vpop.f32.mrb[31].mxu1  ;;  %v880_v25 = vmax.f32 %v710_v15, 0.0  ;;  %v713_v27 = vadd.f32 %v2550_v37, %v712_v23 }
 0x163   : > { %v912_v26 = vmax.f32 %v838_v16, 0.0  ;;  %v841_v28 = vadd.f32 %v2550_v37, %v840_v24  ;;  %v1913_v29 = vpack.c.bf16 %v882_v19, %v882_v19  ;;  %v883_v31 = vmax.f32 %v721_v21, 0.0  ;;  %1243 = sbr.rel (!%p2959_p12) target bundleno = 453 (0x1c5), region = 44 }
 0x164   : > { %v1945_v30 = vpack.c.bf16 %v914_v20, %v914_v20  ;;  %v915_v32 = vmax.f32 %v849_v22, 0.0  ;;  %v1911_v33 = vpack.c.bf16 %v880_v25, %v880_v25  ;;  %v881_v35 = vmax.f32 %v713_v27, 0.0 }
 0x165   : > { %v1943_v34 = vpack.c.bf16 %v912_v26, %v912_v26  ;;  %v913_v36 = vmax.f32 %v841_v28, 0.0  ;;  %1203 = vst.msk [vmem:[%s2560_s12 + $0x78] sm:$0xf] %vm1172_vm3, %v1913_v29  ;;  %v1914_v38 = vpack.c.bf16 %v883_v31, %v883_v31 }
 0x166   : > { %1235 = vst.msk [vmem:[%s2560_s12 + $0xf8] sm:$0xf] %vm1172_vm3, %v1945_v30  ;;  %v1946_v39 = vpack.c.bf16 %v915_v32, %v915_v32  ;;  %1201 = vst.msk [vmem:[%s2560_s12 + $0x70] sm:$0xf] %vm1172_vm3, %v1911_v33  ;;  %v1912_v37 = vpack.c.bf16 %v881_v35, %v881_v35 }
 0x167   : > { %1233 = vst.msk [vmem:[%s2560_s12 + $0xf0] sm:$0xf] %vm1172_vm3, %v1943_v34  ;;  %v1944_v40 = vpack.c.bf16 %v913_v36, %v913_v36  ;;  %1204 = vst.msk [vmem:[%s2560_s12 + $0x7c] sm:$0xf] %vm1172_vm3, %v1914_v38 }
 0x168   : > { %1236 = vst.msk [vmem:[%s2560_s12 + $0xfc] sm:$0xf] %vm1172_vm3, %v1946_v39  ;;  %1202 = vst.msk [vmem:[%s2560_s12 + $0x74] sm:$0xf] %vm1172_vm3, %v1912_v37 }
 0x169   : > { %1234 = vst.msk [vmem:[%s2560_s12 + $0xf4] sm:$0xf] %vm1172_vm3, %v1944_v40 }
 0x16a   : > { %s2967_s10 = smov (!%p1246_p13, %s1245_s10), 64 }
 0x16b   : > { %s1868_s22 = sshll.u32 %s2967_s10, 6 }
 0x16c   : > { %p1871_p0 = scmp.eq.s32.totalorder %s1868_s22, 0 }
 0x16d   : > { %s2759_s25 = sshrl.u32 (!%p1871_p0), %s2967_s10, 6 }
 0x16e   : > { %1254 = sbr.rel (%p1871_p0) target bundleno = 453 (0x1c5), region = 48  ;;  %p1872_p1 = scmp.le.s32.totalorder (!%p1871_p0), %s2759_s25, 0 }
 0x175   : > { %1663 = sbr.rel (%p1872_p1) target bundleno = 432 (0x1b0), region = 121  ;;  %s2960_s15 = smov (!%p1872_p1), %s2753_s18 }
 0x176   : > { %s2961_s20 = smov (!%p1872_p1), %s2560_s12  ;;  %s2768_s27 = smov (!%p1872_p1), 0  }
 0x177   : > { %s2770_s28 = smov (!%p1872_p1), 0  }
 0x17c LB: >> { %v1270_v41 = vld [vmem:[%s2322_s20] sm:$0xf]  ;;  %v1272_v42 = vld [vmem:[%s2322_s20 + $0x4] sm:$0xf]  ;;  %v1274_v43 = vld [vmem:[%s2322_s20 + $0x8] sm:$0xf]  ;;  %s2330_s28 = sphi %s2770_s28, %s1264_s28   ;;  %s2326_s27 = sphi %s2768_s27, %s2962_s27   ;;  %s2322_s20 = sphi %s2961_s20, %s1403_s20   ;;  %s2318_s15 = sphi %s2960_s15, %s1404_s15  }
 0x17d   : >> { %1271 = vst [vmem:[%s2318_s15] sm:$0xf] %v1270_v41  ;;  %1273 = vst [vmem:[%s2318_s15 + $0x4] sm:$0xf] %v1272_v42  ;;  %v1276_v44 = vld [vmem:[%s2322_s20 + $0xc] sm:$0xf]  ;;  %s1398_s23 = sadd.s32 1, %s2326_s27 }
 0x17e   : >> { %1275 = vst [vmem:[%s2318_s15 + $0x8] sm:$0xf] %v1274_v43  ;;  %v1278_v45 = vld [vmem:[%s2322_s20 + $0x10] sm:$0xf]  ;;  %v1280_v46 = vld [vmem:[%s2322_s20 + $0x14] sm:$0xf]  ;;  %p1399_p2 = scmp.ge.s32.totalorder %s1398_s23, %s2759_s25 }
 0x17f   : >> { %1277 = vst [vmem:[%s2318_s15 + $0xc] sm:$0xf] %v1276_v44  ;;  %1279 = vst [vmem:[%s2318_s15 + $0x10] sm:$0xf] %v1278_v45  ;;  %v1282_v47 = vld [vmem:[%s2322_s20 + $0x18] sm:$0xf] }
 0x180   : >> { %1281 = vst [vmem:[%s2318_s15 + $0x14] sm:$0xf] %v1280_v46  ;;  %v1284_v48 = vld [vmem:[%s2322_s20 + $0x1c] sm:$0xf]  ;;  %v1286_v49 = vld [vmem:[%s2322_s20 + $0x20] sm:$0xf] }
 0x181   : >> { %1283 = vst [vmem:[%s2318_s15 + $0x18] sm:$0xf] %v1282_v47  ;;  %1285 = vst [vmem:[%s2318_s15 + $0x1c] sm:$0xf] %v1284_v48  ;;  %v1288_v50 = vld [vmem:[%s2322_s20 + $0x24] sm:$0xf] }
 0x182   : >> { %1287 = vst [vmem:[%s2318_s15 + $0x20] sm:$0xf] %v1286_v49  ;;  %v1290_v51 = vld [vmem:[%s2322_s20 + $0x28] sm:$0xf]  ;;  %v1292_v52 = vld [vmem:[%s2322_s20 + $0x2c] sm:$0xf] }
 0x183   : >> { %1289 = vst [vmem:[%s2318_s15 + $0x24] sm:$0xf] %v1288_v50  ;;  %1291 = vst [vmem:[%s2318_s15 + $0x28] sm:$0xf] %v1290_v51  ;;  %v1294_v53 = vld [vmem:[%s2322_s20 + $0x30] sm:$0xf] }
 0x184   : >> { %1293 = vst [vmem:[%s2318_s15 + $0x2c] sm:$0xf] %v1292_v52  ;;  %v1296_v54 = vld [vmem:[%s2322_s20 + $0x34] sm:$0xf]  ;;  %v1298_v55 = vld [vmem:[%s2322_s20 + $0x38] sm:$0xf] }
 0x185   : >> { %1295 = vst [vmem:[%s2318_s15 + $0x30] sm:$0xf] %v1294_v53  ;;  %1297 = vst [vmem:[%s2318_s15 + $0x34] sm:$0xf] %v1296_v54  ;;  %v1300_v56 = vld [vmem:[%s2322_s20 + $0x3c] sm:$0xf] }
 0x186   : >> { %1299 = vst [vmem:[%s2318_s15 + $0x38] sm:$0xf] %v1298_v55  ;;  %v1302_v57 = vld [vmem:[%s2322_s20 + $0x40] sm:$0xf]  ;;  %v1304_v58 = vld [vmem:[%s2322_s20 + $0x44] sm:$0xf] }
 0x187   : >> { %1301 = vst [vmem:[%s2318_s15 + $0x3c] sm:$0xf] %v1300_v56  ;;  %1303 = vst [vmem:[%s2318_s15 + $0x40] sm:$0xf] %v1302_v57  ;;  %v1306_v59 = vld [vmem:[%s2322_s20 + $0x48] sm:$0xf] }
 0x188   : >> { %1305 = vst [vmem:[%s2318_s15 + $0x44] sm:$0xf] %v1304_v58  ;;  %v1308_v60 = vld [vmem:[%s2322_s20 + $0x4c] sm:$0xf]  ;;  %v1310_v61 = vld [vmem:[%s2322_s20 + $0x50] sm:$0xf] }
 0x189   : >> { %1307 = vst [vmem:[%s2318_s15 + $0x48] sm:$0xf] %v1306_v59  ;;  %1309 = vst [vmem:[%s2318_s15 + $0x4c] sm:$0xf] %v1308_v60  ;;  %v1312_v62 = vld [vmem:[%s2322_s20 + $0x54] sm:$0xf] }
 0x18a   : >> { %1311 = vst [vmem:[%s2318_s15 + $0x50] sm:$0xf] %v1310_v61  ;;  %v1314_v63 = vld [vmem:[%s2322_s20 + $0x58] sm:$0xf]  ;;  %v1316_v0 = vld [vmem:[%s2322_s20 + $0x5c] sm:$0xf] }
 0x18b   : >> { %1313 = vst [vmem:[%s2318_s15 + $0x54] sm:$0xf] %v1312_v62  ;;  %1315 = vst [vmem:[%s2318_s15 + $0x58] sm:$0xf] %v1314_v63  ;;  %v1318_v1 = vld [vmem:[%s2322_s20 + $0x60] sm:$0xf] }
 0x18c   : >> { %1317 = vst [vmem:[%s2318_s15 + $0x5c] sm:$0xf] %v1316_v0  ;;  %v1320_v2 = vld [vmem:[%s2322_s20 + $0x64] sm:$0xf]  ;;  %v1322_v3 = vld [vmem:[%s2322_s20 + $0x68] sm:$0xf] }
 0x18d   : >> { %1319 = vst [vmem:[%s2318_s15 + $0x60] sm:$0xf] %v1318_v1  ;;  %1321 = vst [vmem:[%s2318_s15 + $0x64] sm:$0xf] %v1320_v2  ;;  %v1324_v4 = vld [vmem:[%s2322_s20 + $0x6c] sm:$0xf] }
 0x18e   : >> { %1323 = vst [vmem:[%s2318_s15 + $0x68] sm:$0xf] %v1322_v3  ;;  %v1326_v5 = vld [vmem:[%s2322_s20 + $0x70] sm:$0xf]  ;;  %v1328_v6 = vld [vmem:[%s2322_s20 + $0x74] sm:$0xf] }
 0x18f   : >> { %1325 = vst [vmem:[%s2318_s15 + $0x6c] sm:$0xf] %v1324_v4  ;;  %1327 = vst [vmem:[%s2318_s15 + $0x70] sm:$0xf] %v1326_v5  ;;  %v1330_v7 = vld [vmem:[%s2322_s20 + $0x78] sm:$0xf] }
 0x190   : >> { %1329 = vst [vmem:[%s2318_s15 + $0x74] sm:$0xf] %v1328_v6  ;;  %v1332_v8 = vld [vmem:[%s2322_s20 + $0x7c] sm:$0xf]  ;;  %v1334_v9 = vld [vmem:[%s2322_s20 + $0x80] sm:$0xf] }
 0x191   : >> { %1331 = vst [vmem:[%s2318_s15 + $0x78] sm:$0xf] %v1330_v7  ;;  %1333 = vst [vmem:[%s2318_s15 + $0x7c] sm:$0xf] %v1332_v8  ;;  %v1336_v10 = vld [vmem:[%s2322_s20 + $0x84] sm:$0xf] }
 0x192   : >> { %1335 = vst [vmem:[%s2318_s15 + $0x80] sm:$0xf] %v1334_v9  ;;  %v1338_v11 = vld [vmem:[%s2322_s20 + $0x88] sm:$0xf]  ;;  %v1340_v12 = vld [vmem:[%s2322_s20 + $0x8c] sm:$0xf] }
 0x193   : >> { %1337 = vst [vmem:[%s2318_s15 + $0x84] sm:$0xf] %v1336_v10  ;;  %1339 = vst [vmem:[%s2318_s15 + $0x88] sm:$0xf] %v1338_v11  ;;  %v1342_v13 = vld [vmem:[%s2322_s20 + $0x90] sm:$0xf] }
 0x194   : >> { %1341 = vst [vmem:[%s2318_s15 + $0x8c] sm:$0xf] %v1340_v12  ;;  %v1344_v14 = vld [vmem:[%s2322_s20 + $0x94] sm:$0xf]  ;;  %v1346_v15 = vld [vmem:[%s2322_s20 + $0x98] sm:$0xf] }
 0x195   : >> { %1343 = vst [vmem:[%s2318_s15 + $0x90] sm:$0xf] %v1342_v13  ;;  %1345 = vst [vmem:[%s2318_s15 + $0x94] sm:$0xf] %v1344_v14  ;;  %v1348_v16 = vld [vmem:[%s2322_s20 + $0x9c] sm:$0xf] }
 0x196   : >> { %1347 = vst [vmem:[%s2318_s15 + $0x98] sm:$0xf] %v1346_v15  ;;  %v1350_v17 = vld [vmem:[%s2322_s20 + $0xa0] sm:$0xf]  ;;  %v1352_v18 = vld [vmem:[%s2322_s20 + $0xa4] sm:$0xf] }
 0x197   : >> { %1349 = vst [vmem:[%s2318_s15 + $0x9c] sm:$0xf] %v1348_v16  ;;  %1351 = vst [vmem:[%s2318_s15 + $0xa0] sm:$0xf] %v1350_v17  ;;  %v1354_v19 = vld [vmem:[%s2322_s20 + $0xa8] sm:$0xf] }
 0x198   : >> { %1353 = vst [vmem:[%s2318_s15 + $0xa4] sm:$0xf] %v1352_v18  ;;  %v1356_v20 = vld [vmem:[%s2322_s20 + $0xac] sm:$0xf]  ;;  %v1358_v21 = vld [vmem:[%s2322_s20 + $0xb0] sm:$0xf] }
 0x199   : >> { %1355 = vst [vmem:[%s2318_s15 + $0xa8] sm:$0xf] %v1354_v19  ;;  %1357 = vst [vmem:[%s2318_s15 + $0xac] sm:$0xf] %v1356_v20  ;;  %v1360_v22 = vld [vmem:[%s2322_s20 + $0xb4] sm:$0xf] }
 0x19a   : >> { %1359 = vst [vmem:[%s2318_s15 + $0xb0] sm:$0xf] %v1358_v21  ;;  %v1362_v23 = vld [vmem:[%s2322_s20 + $0xb8] sm:$0xf]  ;;  %v1364_v24 = vld [vmem:[%s2322_s20 + $0xbc] sm:$0xf] }
 0x19b   : >> { %1361 = vst [vmem:[%s2318_s15 + $0xb4] sm:$0xf] %v1360_v22  ;;  %1363 = vst [vmem:[%s2318_s15 + $0xb8] sm:$0xf] %v1362_v23  ;;  %v1366_v25 = vld [vmem:[%s2322_s20 + $0xc0] sm:$0xf] }
 0x19c   : >> { %1365 = vst [vmem:[%s2318_s15 + $0xbc] sm:$0xf] %v1364_v24  ;;  %v1368_v26 = vld [vmem:[%s2322_s20 + $0xc4] sm:$0xf]  ;;  %v1370_v27 = vld [vmem:[%s2322_s20 + $0xc8] sm:$0xf] }
 0x19d   : >> { %1367 = vst [vmem:[%s2318_s15 + $0xc0] sm:$0xf] %v1366_v25  ;;  %1369 = vst [vmem:[%s2318_s15 + $0xc4] sm:$0xf] %v1368_v26  ;;  %v1372_v28 = vld [vmem:[%s2322_s20 + $0xcc] sm:$0xf] }
 0x19e   : >> { %1371 = vst [vmem:[%s2318_s15 + $0xc8] sm:$0xf] %v1370_v27  ;;  %v1374_v29 = vld [vmem:[%s2322_s20 + $0xd0] sm:$0xf]  ;;  %v1376_v30 = vld [vmem:[%s2322_s20 + $0xd4] sm:$0xf] }
 0x19f   : >> { %1373 = vst [vmem:[%s2318_s15 + $0xcc] sm:$0xf] %v1372_v28  ;;  %1375 = vst [vmem:[%s2318_s15 + $0xd0] sm:$0xf] %v1374_v29  ;;  %v1378_v31 = vld [vmem:[%s2322_s20 + $0xd8] sm:$0xf] }
 0x1a0   : >> { %1377 = vst [vmem:[%s2318_s15 + $0xd4] sm:$0xf] %v1376_v30  ;;  %v1380_v32 = vld [vmem:[%s2322_s20 + $0xdc] sm:$0xf]  ;;  %v1382_v33 = vld [vmem:[%s2322_s20 + $0xe0] sm:$0xf] }
 0x1a1   : >> { %1379 = vst [vmem:[%s2318_s15 + $0xd8] sm:$0xf] %v1378_v31  ;;  %1381 = vst [vmem:[%s2318_s15 + $0xdc] sm:$0xf] %v1380_v32  ;;  %v1384_v34 = vld [vmem:[%s2322_s20 + $0xe4] sm:$0xf] }
 0x1a2   : >> { %1383 = vst [vmem:[%s2318_s15 + $0xe0] sm:$0xf] %v1382_v33  ;;  %v1386_v35 = vld [vmem:[%s2322_s20 + $0xe8] sm:$0xf]  ;;  %v1388_v36 = vld [vmem:[%s2322_s20 + $0xec] sm:$0xf] }
 0x1a3   : >> { %1385 = vst [vmem:[%s2318_s15 + $0xe4] sm:$0xf] %v1384_v34  ;;  %1387 = vst [vmem:[%s2318_s15 + $0xe8] sm:$0xf] %v1386_v35  ;;  %v1390_v38 = vld [vmem:[%s2322_s20 + $0xf0] sm:$0xf] }
 0x1a4   : >> { %1389 = vst [vmem:[%s2318_s15 + $0xec] sm:$0xf] %v1388_v36  ;;  %v1392_v39 = vld [vmem:[%s2322_s20 + $0xf4] sm:$0xf]  ;;  %v1394_v37 = vld [vmem:[%s2322_s20 + $0xf8] sm:$0xf] }
 0x1a5   : >> { %1391 = vst [vmem:[%s2318_s15 + $0xf0] sm:$0xf] %v1390_v38  ;;  %1393 = vst [vmem:[%s2318_s15 + $0xf4] sm:$0xf] %v1392_v39  ;;  %v1396_v40 = vld [vmem:[%s2322_s20 + $0xfc] sm:$0xf] }
 0x1a6   : >> { %1395 = vst [vmem:[%s2318_s15 + $0xf8] sm:$0xf] %v1394_v37  ;;  %1397 = vst [vmem:[%s2318_s15 + $0xfc] sm:$0xf] %v1396_v40  ;;  %s2969_s23 = smov (%p1399_p2, %s1398_s23), 0  ;;  %s1264_s28 = sadd.s32 1, %s2330_s28  }
 0x1a7   : >> { %s1873_s29 = sshll.u32 %s2969_s23, 8  ;;  %p1263_p3 = scmp.ge.s32.totalorder %s1264_s28, %s2759_s25 }
 0x1a8   : >> { %s1403_s20 = scalar_lea.vmem %s2560_s12, %s1873_s29 [#allocation6]   ;;  %s1404_s15 = scalar_lea.vmem %s2753_s18, %s1873_s29  }
 0x1a9   : >> { %s2962_s27 = smov %s2969_s23  ;;  %1266 = sbr.rel (!%p1263_p3) target bundleno = 380 (0x17c), region = 127 }
 0x1b0 PF: > { %s2927_s30 = sand.u32 63, %s2967_s10   ;;  %s1948_s4 = sshll.u32 %s2759_s25, 8 }
 0x1b1   : > { %s1409_s24 = scalar_lea.vmem %s2560_s12, %s1948_s4 [#allocation6]   ;;  %s1411_s21 = scalar_lea.vmem %s2753_s18, %s1948_s4  }
 0x1b2   : > { %p1878_p5 = scmp.le.s32.totalorder %s2927_s30, 0 }
 0x1b3   : > { %s2332_s26 = smov (!%p1878_p5), %s1411_s21   ;;  %s2336_s5 = smov (!%p1878_p5), %s1409_s24  }
 0x1b4   : > { %1677 = sbr.rel (%p1878_p5) target bundleno = 453 (0x1c5), region = 132  ;;  %s2340_s6 = smov (!%p1878_p5), 0  }
 0x1b5   : > { %s2344_s7 = smov (!%p1878_p5), 0  }
 0x1bb LB: >> { %v1421_v41 = vld [vmem:[%s2338_s5] sm:$0xf]  ;;  %s1423_s8 = sadd.s32 1, %s2342_s6  ;;  %s1415_s7 = sadd.s32 1, %s2346_s7   ;;  %s2346_s7 = sphi %s2344_s7, %s1415_s7   ;;  %s2342_s6 = sphi %s2340_s6, %s2341_s6   ;;  %s2338_s5 = sphi %s2336_s5, %s1428_s5   ;;  %s2334_s26 = sphi %s2332_s26, %s1429_s26  }
 0x1bc   : >> { %1422 = vst [vmem:[%s2334_s26] sm:$0xf] %v1421_v41  ;;  %p1424_p8 = scmp.ge.s32.totalorder %s1423_s8, %s2927_s30  ;;  %p1414_p10 = scmp.ge.s32.totalorder %s1415_s7, %s2927_s30 }
 0x1be   : >> { %s2971_s8 = smov (%p1424_p8, %s1423_s8), 0  ;;  %1417 = sbr.rel (!%p1414_p10) target bundleno = 443 (0x1bb), region = 138 }
 0x1bf   : >> { %s1879_s9 = sshll.u32 %s2971_s8, 2  ;;  %s2341_s6 = smov %s2971_s8  }
 0x1c0   : >> { %s1428_s5 = scalar_lea.vmem %s1409_s24, %s1879_s9 [#allocation6]   ;;  %s1429_s26 = scalar_lea.vmem %s1411_s21, %s1879_s9  }
 0x1c5 PF: > { %p12_p11 = scmp.ge.s32.totalorder %s2388_s16, 5   ;;  %s2963_s12 = smov %s2310_s13 }
 0x1c6   : > { %s2964_s13 = smov %s2396_s19  ;;  %s2965_s14 = smov %s2388_s16 }
 0x1c7   :  { %14 = sbr.rel (!%p12_p11) target bundleno = 3 (0x3), region = 149 }
 0x1ce   :  { %1616 = vsyncpa [#allocation3], 1 }
 0x1cf   :  { %1618 = vsyncpa [#allocation3 + $0x1], 1 }
 0x1d0   :  { %1619 = vsyncpa [#allocation5], 1 }

// kernel: net_forward.6
= control target key start
LH: loop header
LB: loop body
LE: loop exit
PB: predicated region body
PF: predicated region fallthrough
CT: control target
= control target key end

     0   :  { %s454_s6 = smov 0   ;;  %s695_s0 = inlined_call_operand.vmem [shape: bf16[2,12,2,12,128], index: 0, kind: input, shape index: {}]   ;;  %s696_s1 = inlined_call_operand.vmem [shape: bf16[2,12,12,64], index: 1, kind: output, shape index: {}]  }
   0x1 LB: > { %s391_s7 = sadd.s32 4294967295, %s441_s6   ;;  %p395_p0 = scmp.ge.s32.totalorder %s441_s6, 1  ;;  %s441_s6 = sphi %s454_s6, %s11_s6  }
   0x2   : > { %p87_p1 = scmp.lt.s32.totalorder %s441_s6, 3 }
   0x4   : > { %p88_p2 = pnand %p395_p0, %p87_p1 }
   0x5   : > { %p107_p3 = scmp.lt.s32.totalorder (!%p88_p2), %s391_s7, 1  ;;  %s443_s12 = smov (!%p88_p2), 64   ;;  %vm310_vm0 = vcmask (!%p88_p2), 519168   ;;  %vm312_vm1 = vcmask (!%p88_p2), 517120  }
   0x6   : > { %91 = sbr.rel (%p88_p2) target bundleno = 183 (0xb7), region = 24 }
   0xd   : > { %s698_s7 = smov (!%p107_p3, %s391_s7), 1 }
   0xe   : > { %s424_s8 = smul.u32 192, %s698_s7 }
   0xf   : > { %s425_s13 = smul.u32 96, %s698_s7 }
  0x10   : > { %s468_s11 = scalar_lea.vmem %s695_s0, %s424_s8 }
  0x11   : > { %v119_v0 = vld [vmem:[%s468_s11 + $0x10] sm:$0xf]  ;;  %v400_v1 = vld [vmem:[%s468_s11 + $0x18] sm:$0xf]  ;;  %v117_v2 = vld [vmem:[%s468_s11] sm:$0xf]  ;;  %s618_s16 = scalar_lea.vmem %s696_s1, %s425_s13 }
  0x12   : > { %v473_v3 = vmax.bf16 %v400_v1, %v119_v0  ;;  %v398_v4 = vld [vmem:[%s468_s11 + $0x8] sm:$0xf]  ;;  %v120_v5 = vld [vmem:[%s468_s11 + $0x14] sm:$0x3]  ;;  %v401_v6 = vld [vmem:[%s468_s11 + $0x1c] sm:$0x3] }
  0x13   : > { %v478_v7 = vmax.bf16 %v398_v4, %v117_v2  ;;  %v118_v8 = vld [vmem:[%s468_s11 + $0x4] sm:$0x3]  ;;  %v399_v9 = vld [vmem:[%s468_s11 + $0xc] sm:$0x3]  ;;  %v484_v10 = vmax.bf16 %v401_v6, %v120_v5  ;;  %v121_v14 = vld [vmem:[%s468_s11 + $0x20] sm:$0xf] }
  0x14   : > { %218 = vrot.lane.b32.xlu1 %v473_v3, %s443_s12  ;;  %v488_v11 = vmax.bf16 %v399_v9, %v118_v8  ;;  %v122_v12 = vld [vmem:[%s468_s11 + $0x24] sm:$0x3]  ;;  %v403_v13 = vld [vmem:[%s468_s11 + $0x2c] sm:$0x3]  ;;  %v402_v15 = vld [vmem:[%s468_s11 + $0x28] sm:$0xf] }
  0x15   : > { %214 = vrot.lane.b32.xlu0 %v478_v7, %s443_s12  ;;  %v496_v16 = vmax.bf16 %v403_v13, %v122_v12  ;;  %v500_v17 = vmax.bf16 %v402_v15, %v121_v14  ;;  %v124_v18 = vld [vmem:[%s468_s11 + $0x34] sm:$0x3]  ;;  %v405_v19 = vld [vmem:[%s468_s11 + $0x3c] sm:$0x3]  ;;  %v123_v20 = vld [vmem:[%s468_s11 + $0x30] sm:$0xf] }
  0x16   : > { %v404_v21 = vld [vmem:[%s468_s11 + $0x38] sm:$0xf]  ;;  %v508_v22 = vmax.bf16 %v405_v19, %v124_v18  ;;  %v126_v24 = vld [vmem:[%s468_s11 + $0x44] sm:$0x3]  ;;  %v407_v25 = vld [vmem:[%s468_s11 + $0x4c] sm:$0x3] }
  0x17   : > { %v512_v23 = vmax.bf16 %v404_v21, %v123_v20  ;;  %v125_v26 = vld [vmem:[%s468_s11 + $0x40] sm:$0xf]  ;;  %v406_v27 = vld [vmem:[%s468_s11 + $0x48] sm:$0xf]  ;;  %v520_v28 = vmax.bf16 %v407_v25, %v126_v24  ;;  %v128_v30 = vld [vmem:[%s468_s11 + $0x54] sm:$0x3] }
  0x18   : > { %220 = vrot.lane.b32.xlu1 %v484_v10, %s443_s12  ;;  %v524_v29 = vmax.bf16 %v406_v27, %v125_v26  ;;  %v409_v31 = vld [vmem:[%s468_s11 + $0x5c] sm:$0x3]  ;;  %v127_v32 = vld [vmem:[%s468_s11 + $0x50] sm:$0xf]  ;;  %v408_v33 = vld [vmem:[%s468_s11 + $0x58] sm:$0xf] }
  0x19   : > { %216 = vrot.lane.b32.xlu0 %v488_v11, %s443_s12  ;;  %v532_v34 = vmax.bf16 %v409_v31, %v128_v30  ;;  %v536_v35 = vmax.bf16 %v408_v33, %v127_v32  ;;  %v130_v36 = vld [vmem:[%s468_s11 + $0x64] sm:$0x3]  ;;  %v411_v37 = vld [vmem:[%s468_s11 + $0x6c] sm:$0x3]  ;;  %v129_v38 = vld [vmem:[%s468_s11 + $0x60] sm:$0xf] }
  0x1a   : > { %v410_v39 = vld [vmem:[%s468_s11 + $0x68] sm:$0xf]  ;;  %v544_v40 = vmax.bf16 %v411_v37, %v130_v36  ;;  %v132_v42 = vld [vmem:[%s468_s11 + $0x74] sm:$0x3]  ;;  %v413_v43 = vld [vmem:[%s468_s11 + $0x7c] sm:$0x3] }
  0x1b   : > { %v548_v41 = vmax.bf16 %v410_v39, %v129_v38  ;;  %v131_v44 = vld [vmem:[%s468_s11 + $0x70] sm:$0xf]  ;;  %v412_v45 = vld [vmem:[%s468_s11 + $0x78] sm:$0xf]  ;;  %v556_v46 = vmax.bf16 %v413_v43, %v132_v42  ;;  %v134_v48 = vld [vmem:[%s468_s11 + $0x84] sm:$0x3] }
  0x1c   : > { %224 = vrot.lane.b32.xlu1 %v496_v16, %s443_s12  ;;  %v560_v47 = vmax.bf16 %v412_v45, %v131_v44  ;;  %v415_v49 = vld [vmem:[%s468_s11 + $0x8c] sm:$0x3]  ;;  %v133_v50 = vld [vmem:[%s468_s11 + $0x80] sm:$0xf]  ;;  %v414_v51 = vld [vmem:[%s468_s11 + $0x88] sm:$0xf] }
  0x1d   : > { %222 = vrot.lane.b32.xlu0 %v500_v17, %s443_s12  ;;  %v568_v52 = vmax.bf16 %v415_v49, %v134_v48  ;;  %v572_v53 = vmax.bf16 %v414_v51, %v133_v50  ;;  %v136_v54 = vld [vmem:[%s468_s11 + $0x94] sm:$0x3]  ;;  %v417_v55 = vld [vmem:[%s468_s11 + $0x9c] sm:$0x3]  ;;  %v135_v56 = vld [vmem:[%s468_s11 + $0x90] sm:$0xf] }
  0x1e   : > { %v416_v57 = vld [vmem:[%s468_s11 + $0x98] sm:$0xf]  ;;  %v580_v58 = vmax.bf16 %v417_v55, %v136_v54  ;;  %v138_v60 = vld [vmem:[%s468_s11 + $0xa4] sm:$0x3]  ;;  %v419_v61 = vld [vmem:[%s468_s11 + $0xac] sm:$0x3] }
  0x1f   : > { %v584_v59 = vmax.bf16 %v416_v57, %v135_v56  ;;  %v137_v62 = vld [vmem:[%s468_s11 + $0xa0] sm:$0xf]  ;;  %v418_v63 = vld [vmem:[%s468_s11 + $0xa8] sm:$0xf]  ;;  %v592_v0 = vmax.bf16 %v419_v61, %v138_v60  ;;  %v140_v2 = vld [vmem:[%s468_s11 + $0xb4] sm:$0x3] }
  0x20   : > { %228 = vrot.lane.b32.xlu1 %v508_v22, %s443_s12  ;;  %v596_v1 = vmax.bf16 %v418_v63, %v137_v62  ;;  %v421_v4 = vld [vmem:[%s468_s11 + $0xbc] sm:$0x3]  ;;  %v139_v5 = vld [vmem:[%s468_s11 + $0xb0] sm:$0xf]  ;;  %v420_v6 = vld [vmem:[%s468_s11 + $0xb8] sm:$0xf] }
  0x21   : > { %226 = vrot.lane.b32.xlu0 %v512_v23, %s443_s12  ;;  %v604_v8 = vmax.bf16 %v421_v4, %v140_v2  ;;  %v608_v9 = vmax.bf16 %v420_v6, %v139_v5 }
  0x24   : > { %232 = vrot.lane.b32.xlu1 %v520_v28, %s443_s12 }
  0x25   : > { %230 = vrot.lane.b32.xlu0 %v524_v29, %s443_s12 }
  0x28   : > { %236 = vrot.lane.b32.xlu1 %v532_v34, %s443_s12 }
  0x29   : > { %234 = vrot.lane.b32.xlu0 %v536_v35, %s443_s12 }
  0x2c   : > { %240 = vrot.lane.b32.xlu1 %v544_v40, %s443_s12 }
  0x2d   : > { %238 = vrot.lane.b32.xlu0 %v548_v41, %s443_s12 }
  0x30   : > { %244 = vrot.lane.b32.xlu1 %v556_v46, %s443_s12 }
  0x31   : > { %242 = vrot.lane.b32.xlu0 %v560_v47, %s443_s12 }
  0x34   : > { %248 = vrot.lane.b32.xlu1 %v568_v52, %s443_s12 }
  0x35   : > { %246 = vrot.lane.b32.xlu0 %v572_v53, %s443_s12 }
  0x38   : > { %252 = vrot.lane.b32.xlu1 %v580_v58, %s443_s12 }
  0x39   : > { %250 = vrot.lane.b32.xlu0 %v584_v59, %s443_s12 }
  0x3c   : > { %256 = vrot.lane.b32.xlu1 %v592_v0, %s443_s12 }
  0x3d   : > { %254 = vrot.lane.b32.xlu0 %v596_v1, %s443_s12 }
  0x40   : > { %260 = vrot.lane.b32.xlu1 %v604_v8, %s443_s12 }
  0x41   : > { %258 = vrot.lane.b32.xlu0 %v608_v9, %s443_s12 }
  0x86   : > { %v219_v12 = vpop.permute.xlu1 %218 }
  0x87   : > { %v288_v13 = vmax.bf16 %v219_v12, %v473_v3  ;;  %v215_v14 = vpop.permute.xlu0 %214 }
  0x88   : > { %v286_v15 = vmax.bf16 %v215_v14, %v478_v7 }
  0x89   : > { %314 = vst.msk [vmem:[%s618_s16 + $0x8] sm:$0xf] %vm310_vm0, %v288_v13 }
  0x8a   : > { %311 = vst.msk [vmem:[%s618_s16] sm:$0xf] %vm310_vm0, %v286_v15  ;;  %v221_v18 = vpop.permute.xlu1 %220 }
  0x8b   : > { %v289_v19 = vmax.bf16 %v221_v18, %v484_v10  ;;  %v217_v20 = vpop.permute.xlu0 %216 }
  0x8c   : > { %v287_v21 = vmax.bf16 %v217_v20, %v488_v11 }
  0x8d   : > { %315 = vst.msk [vmem:[%s618_s16 + $0xc] sm:$0x3] %vm312_vm1, %v289_v19 }
  0x8e   : > { %313 = vst.msk [vmem:[%s618_s16 + $0x4] sm:$0x3] %vm312_vm1, %v287_v21  ;;  %v225_v3 = vpop.permute.xlu1 %224 }
  0x8f   : > { %v291_v7 = vmax.bf16 %v225_v3, %v496_v16  ;;  %v223_v24 = vpop.permute.xlu0 %222 }
  0x90   : > { %v290_v25 = vmax.bf16 %v223_v24, %v500_v17 }
  0x91   : > { %317 = vst.msk [vmem:[%s618_s16 + $0x14] sm:$0x3] %vm312_vm1, %v291_v7 }
  0x92   : > { %316 = vst.msk [vmem:[%s618_s16 + $0x10] sm:$0xf] %vm310_vm0, %v290_v25  ;;  %v229_v10 = vpop.permute.xlu1 %228 }
  0x93   : > { %v293_v11 = vmax.bf16 %v229_v10, %v508_v22  ;;  %v227_v26 = vpop.permute.xlu0 %226 }
  0x94   : > { %v292_v27 = vmax.bf16 %v227_v26, %v512_v23 }
  0x95   : > { %319 = vst.msk [vmem:[%s618_s16 + $0x1c] sm:$0x3] %vm312_vm1, %v293_v11 }
  0x96   : > { %318 = vst.msk [vmem:[%s618_s16 + $0x18] sm:$0xf] %vm310_vm0, %v292_v27  ;;  %v233_v16 = vpop.permute.xlu1 %232 }
  0x97   : > { %v295_v17 = vmax.bf16 %v233_v16, %v520_v28  ;;  %v231_v30 = vpop.permute.xlu0 %230 }
  0x98   : > { %v294_v31 = vmax.bf16 %v231_v30, %v524_v29 }
  0x99   : > { %321 = vst.msk [vmem:[%s618_s16 + $0x24] sm:$0x3] %vm312_vm1, %v295_v17 }
  0x9a   : > { %320 = vst.msk [vmem:[%s618_s16 + $0x20] sm:$0xf] %vm310_vm0, %v294_v31  ;;  %v237_v22 = vpop.permute.xlu1 %236 }
  0x9b   : > { %v297_v23 = vmax.bf16 %v237_v22, %v532_v34  ;;  %v235_v32 = vpop.permute.xlu0 %234 }
  0x9c   : > { %v296_v33 = vmax.bf16 %v235_v32, %v536_v35 }
  0x9d   : > { %323 = vst.msk [vmem:[%s618_s16 + $0x2c] sm:$0x3] %vm312_vm1, %v297_v23 }
  0x9e   : > { %322 = vst.msk [vmem:[%s618_s16 + $0x28] sm:$0xf] %vm310_vm0, %v296_v33  ;;  %v241_v28 = vpop.permute.xlu1 %240 }
  0x9f   : > { %v299_v29 = vmax.bf16 %v241_v28, %v544_v40  ;;  %v239_v36 = vpop.permute.xlu0 %238 }
  0xa0   : > { %v298_v37 = vmax.bf16 %v239_v36, %v548_v41 }
  0xa1   : > { %325 = vst.msk [vmem:[%s618_s16 + $0x34] sm:$0x3] %vm312_vm1, %v299_v29 }
  0xa2   : > { %324 = vst.msk [vmem:[%s618_s16 + $0x30] sm:$0xf] %vm310_vm0, %v298_v37  ;;  %v245_v34 = vpop.permute.xlu1 %244 }
  0xa3   : > { %v301_v35 = vmax.bf16 %v245_v34, %v556_v46  ;;  %v243_v38 = vpop.permute.xlu0 %242 }
  0xa4   : > { %v300_v39 = vmax.bf16 %v243_v38, %v560_v47 }
  0xa5   : > { %327 = vst.msk [vmem:[%s618_s16 + $0x3c] sm:$0x3] %vm312_vm1, %v301_v35 }
  0xa6   : > { %326 = vst.msk [vmem:[%s618_s16 + $0x38] sm:$0xf] %vm310_vm0, %v300_v39  ;;  %v249_v40 = vpop.permute.xlu1 %248 }
  0xa7   : > { %v303_v41 = vmax.bf16 %v249_v40, %v568_v52  ;;  %v247_v42 = vpop.permute.xlu0 %246 }
  0xa8   : > { %v302_v43 = vmax.bf16 %v247_v42, %v572_v53 }
  0xa9   : > { %329 = vst.msk [vmem:[%s618_s16 + $0x44] sm:$0x3] %vm312_vm1, %v303_v41 }
  0xaa   : > { %328 = vst.msk [vmem:[%s618_s16 + $0x40] sm:$0xf] %vm310_vm0, %v302_v43  ;;  %v253_v44 = vpop.permute.xlu1 %252 }
  0xab   : > { %v305_v45 = vmax.bf16 %v253_v44, %v580_v58  ;;  %v251_v46 = vpop.permute.xlu0 %250 }
  0xac   : > { %v304_v47 = vmax.bf16 %v251_v46, %v584_v59 }
  0xad   : > { %331 = vst.msk [vmem:[%s618_s16 + $0x4c] sm:$0x3] %vm312_vm1, %v305_v45 }
  0xae   : > { %330 = vst.msk [vmem:[%s618_s16 + $0x48] sm:$0xf] %vm310_vm0, %v304_v47  ;;  %v257_v48 = vpop.permute.xlu1 %256 }
  0xaf   : > { %v307_v49 = vmax.bf16 %v257_v48, %v592_v0  ;;  %v255_v50 = vpop.permute.xlu0 %254 }
  0xb0   : > { %v306_v51 = vmax.bf16 %v255_v50, %v596_v1 }
  0xb1   : > { %333 = vst.msk [vmem:[%s618_s16 + $0x54] sm:$0x3] %vm312_vm1, %v307_v49 }
  0xb2   : > { %332 = vst.msk [vmem:[%s618_s16 + $0x50] sm:$0xf] %vm310_vm0, %v306_v51  ;;  %v261_v52 = vpop.permute.xlu1 %260 }
  0xb3   : > { %v309_v53 = vmax.bf16 %v261_v52, %v604_v8  ;;  %v259_v54 = vpop.permute.xlu0 %258 }
  0xb4   : > { %v308_v55 = vmax.bf16 %v259_v54, %v608_v9 }
  0xb5   : > { %335 = vst.msk [vmem:[%s618_s16 + $0x5c] sm:$0x3] %vm312_vm1, %v309_v53 }
  0xb6   : > { %334 = vst.msk [vmem:[%s618_s16 + $0x58] sm:$0xf] %vm310_vm0, %v308_v55 }
  0xb7 PF: > { %s11_s6 = sadd.s32 1, %s441_s6  }
  0xb8   : > { %p8_p4 = scmp.ge.s32.totalorder %s11_s6, 4  }
  0xba   :  { %10 = sbr.rel (!%p8_p4) target bundleno = 1 (0x1), region = 55 }

// kernel: net_forward.5
= control target key start
LH: loop header
LB: loop body
LE: loop exit
PB: predicated region body
PF: predicated region fallthrough
CT: control target
= control target key end

     0   :  { %s3267_s12 = smov 0   ;;  %s3269_s13 = smov 0   ;;  %s4045_s0 = inlined_call_operand.vmem [shape: bf16[1152,288], index: 0, kind: input, shape index: {}]   ;;  %s4046_s1 = inlined_call_operand.vmem [shape: bf16[288,64], index: 1, kind: input, shape index: {}]   ;;  %s4047_s2 = inlined_call_operand.vmem [shape: f32[1,64], index: 2, kind: input, shape index: {}]   ;;  %s4048_s3 = inlined_call_operand.vmem [shape: bf16[1152,64], index: 3, kind: output, shape index: {}]  }
   0x1   :  { %s3271_s14 = smov 0  }
   0x2 LB: > { %s3280_s15 = sadd.s32 4294967295, %s3212_s14   ;;  %s3282_s16 = sadd.s32 1, %s3212_s14   ;;  %s3212_s14 = sphi %s3271_s14, %s4055_s14   ;;  %s3208_s13 = sphi %s3269_s13, %s4054_s13   ;;  %s3204_s12 = sphi %s3267_s12, %s4053_s12  }
   0x3   : > { %s85_s17 = ssub.s32 %s3212_s14, %s3282_s16  ;;  %s88_s18 = sadd.s32 1, %s3208_s13 }
   0x4   : > { %p86_p0 = scmp.eq.s32.totalorder %s85_s17, 0  ;;  %p98_p1 = scmp.ne.s32.totalorder %s3208_s13, %s3204_s12 }
   0x5   : > { %p99_p2 = scmp.eq.s32.totalorder %s3280_s15, 2  ;;  %p2489_p3 = scmp.ge.s32.totalorder %s3212_s14, 1 }
   0x6   : > { %s3290_s19 = scalar_select %p86_p0, %s3208_s13, %s88_s18  }
   0x7   : > { %p3292_p4 = por %p99_p2, %p98_p1  ;;  %p149_p5 = scmp.lt.s32.totalorder %s3212_s14, 4 }
   0x9   : > { %p150_p6 = pnand %p2489_p3, %p149_p5 }
   0xa   : > { %v3012_v0 = vld [vmem:[%s4046_s1] sm:$0xff] (!%p150_p6)   ;;  %v3246_v1 = vmov (!%p150_p6), 0   ;;  %s3302_s23 = sshll.u32 (!%p150_p6), %s3280_s15, 6  ;;  %v3013_v2 = vld [vmem:[%s4046_s1 + $0x8] sm:$0xff] (!%p150_p6)   ;;  %v3014_v3 = vld [vmem:[%s4046_s1 + $0x10] sm:$0xff] (!%p150_p6)   ;;  %vm960_vm0 = vcmask (!%p150_p6), 261120  }
   0xb   : > { %153 = sbr.rel (%p150_p6) target bundleno = 573 (0x23d), region = 32  ;;  %1057 = vmatprep.subr.bf16.mxu0 (!%p150_p6), %v3246_v1  ;;  %2890 = vmatprep.subr.bf16.mxu1 (!%p150_p6), %v3246_v1  ;;  %p184_p7 = scmp.lt.s32.totalorder (!%p150_p6), %s3302_s23, 143  ;;  %v3015_v4 = vld [vmem:[%s4046_s1 + $0x18] sm:$0xff] (!%p150_p6)   ;;  %v3016_v5 = vld [vmem:[%s4046_s1 + $0x20] sm:$0xff] (!%p150_p6)   ;;  %v3017_v7 = vld [vmem:[%s4046_s1 + $0x28] sm:$0xff] (!%p150_p6)   ;;  %vm1955_vm1 = vcmask (!%p150_p6), 519168  }
   0xc   : > { %1058 = vmatpush1.bf16.msra.mxu0 (!%p150_p6), %v3012_v0  ;;  %2906 = vmatpush1.bf16.msra.mxu1 (!%p150_p6), %v3012_v0  ;;  %v3018_v9 = vld [vmem:[%s4046_s1 + $0x30] sm:$0xff] (!%p150_p6)   ;;  %v3019_v10 = vld [vmem:[%s4046_s1 + $0x38] sm:$0xff] (!%p150_p6)   ;;  %v3020_v11 = vld [vmem:[%s4046_s1 + $0x40] sm:$0xff] (!%p150_p6)   ;;  %s175_s25 = sand.u32 (!%p150_p6), 1, %s3204_s12  }
   0xd   : > { %1059 = vmatprep.subr.bf16.mxu0 (!%p150_p6), %v3246_v1  ;;  %2891 = vmatprep.subr.bf16.mxu1 (!%p150_p6), %v3246_v1  ;;  %v3021_v12 = vld [vmem:[%s4046_s1 + $0x48] sm:$0xff] (!%p150_p6)   ;;  %v3022_v13 = vld [vmem:[%s4046_s1 + $0x50] sm:$0xff] (!%p150_p6)   ;;  %v3023_v14 = vld [vmem:[%s4046_s1 + $0x58] sm:$0xff] (!%p150_p6)   ;;  %s2490_s26 = sshll.u32 (!%p150_p6), %s175_s25, 8 }
   0xe   : > { %v3024_v15 = vld [vmem:[%s4046_s1 + $0x60] sm:$0xff] (!%p150_p6)   ;;  %v3025_v16 = vld [vmem:[%s4046_s1 + $0x68] sm:$0xff] (!%p150_p6)   ;;  %v3026_v17 = vld [vmem:[%s4046_s1 + $0x70] sm:$0xff] (!%p150_p6)   ;;  %s3598_s12 = scalar_lea.vmem (!%p150_p6), [#allocation2], %s2490_s26  }
   0xf   : > { %v3027_v18 = vld [vmem:[%s4046_s1 + $0x78] sm:$0xff] (!%p150_p6)   ;;  %v3034_v19 = vld [vmem:[%s4046_s1 + $0x80] sm:$0xff] (!%p150_p6)   ;;  %v3059_v24 = vld [vmem:[%s4046_s1 + $0x88] sm:$0xff] (!%p150_p6)  }
  0x10   : > { %1060 = vmatpush1.bf16.msra.mxu0 (!%p150_p6), %v3013_v2  ;;  %2907 = vmatpush1.bf16.msra.mxu1 (!%p150_p6), %v3013_v2 }
  0x11   : > { %1061 = vmatprep.subr.bf16.mxu0 (!%p150_p6), %v3246_v1  ;;  %2892 = vmatprep.subr.bf16.mxu1 (!%p150_p6), %v3246_v1 }
  0x12   : > { %s185_s28 = scalar_select %p184_p7, %s3302_s23, 143 }
  0x13   : > { %s2028_s27 = ssub.s32 (%p3292_p4), 144, %s3302_s23 }
  0x14   : > { %1062 = vmatpush1.bf16.msra.mxu0 %v3014_v3  ;;  %2908 = vmatpush1.bf16.msra.mxu1 %v3014_v3  ;;  %s2922_s4 = smul.u32 12, %s185_s28  ;;  %s2785_s28 = sshll.u32 (%p3292_p4), %s3280_s15, 8 }
  0x15   : > { %1063 = vmatprep.subr.bf16.mxu0 %v3246_v1  ;;  %2893 = vmatprep.subr.bf16.mxu1 %v3246_v1  ;;  %p2029_p8 = scmp.lt.s32.totalorder (%p3292_p4), %s2028_s27, 64 }
  0x16   : > { %s3327_s9 = scalar_lea.vmem %s4045_s0, %s2922_s4  ;;  %s3853_s4 = scalar_lea.vmem (%p3292_p4), %s4048_s3, %s2785_s28  }
  0x17   : > { %v3030_v6 = vld [vmem:[%s3327_s9 + $0x4] ss:$12 sps:$4 sm:$0xff]   ;;  %v3028_v20 = vld [vmem:[%s3327_s9] ss:$12 sps:$4 sm:$0xff]   ;;  %v3035_v22 = vld [vmem:[%s3327_s9 + $0x1c] ss:$12 sps:$4 sm:$0xff]  }
  0x18   : > { %1064 = vmatpush1.bf16.msra.mxu0 %v3015_v4  ;;  %2909 = vmatpush1.bf16.msra.mxu1 %v3015_v4  ;;  %v3033_v8 = vld [vmem:[%s3327_s9 + $0x244] ss:$12 sps:$4 sm:$0xff]   ;;  %v3031_v21 = vld [vmem:[%s3327_s9 + $0x240] ss:$12 sps:$4 sm:$0xff]   ;;  %v3037_v23 = vld [vmem:[%s3327_s9 + $0x25c] ss:$12 sps:$4 sm:$0xff]  }
  0x19   : > { %1065 = vmatprep.subr.bf16.mxu0 %v3246_v1  ;;  %2894 = vmatprep.subr.bf16.mxu1 %v3246_v1  ;;  %v3039_v25 = vld [vmem:[%s3327_s9 + $0x18] ss:$12 sps:$4 sm:$0xff]   ;;  %v3041_v27 = vld [vmem:[%s3327_s9 + $0x34] ss:$12 sps:$4 sm:$0xff]   ;;  %v3045_v29 = vld [vmem:[%s3327_s9 + $0x30] ss:$12 sps:$4 sm:$0xff]  }
  0x1a   : > { %1089 = vmatprep.mubr.bf16.mxu0 %v3030_v6  ;;  %1281 = vmatprep.mubr.bf16.mxu1 %v3033_v8  ;;  %v3040_v26 = vld [vmem:[%s3327_s9 + $0x258] ss:$12 sps:$4 sm:$0xff]   ;;  %v3043_v28 = vld [vmem:[%s3327_s9 + $0x274] ss:$12 sps:$4 sm:$0xff]   ;;  %v3046_v30 = vld [vmem:[%s3327_s9 + $0x270] ss:$12 sps:$4 sm:$0xff]  }
  0x1b   : > { %v3047_v31 = vld [vmem:[%s3327_s9 + $0x4c] ss:$12 sps:$4 sm:$0xff]   ;;  %v3051_v33 = vld [vmem:[%s3327_s9 + $0x48] ss:$12 sps:$4 sm:$0xff]   ;;  %v3053_v35 = vld [vmem:[%s3327_s9 + $0x64] ss:$12 sps:$4 sm:$0xff]  }
  0x1c   : > { %1066 = vmatpush1.bf16.msra.mxu0 %v3016_v5  ;;  %2910 = vmatpush1.bf16.msra.mxu1 %v3016_v5  ;;  %v3049_v32 = vld [vmem:[%s3327_s9 + $0x28c] ss:$12 sps:$4 sm:$0xff]   ;;  %v3052_v34 = vld [vmem:[%s3327_s9 + $0x288] ss:$12 sps:$4 sm:$0xff]   ;;  %v3055_v36 = vld [vmem:[%s3327_s9 + $0x2a4] ss:$12 sps:$4 sm:$0xff]  }
  0x1d   : > { %1067 = vmatprep.subr.bf16.mxu0 %v3246_v1  ;;  %2895 = vmatprep.subr.bf16.mxu1 %v3246_v1  ;;  %v3057_v37 = vld [vmem:[%s3327_s9 + $0x60] ss:$12 sps:$4 sm:$0xff]   ;;  %v3060_v39 = vld [vmem:[%s3327_s9 + $0x7c] ss:$12 sps:$4 sm:$0xff]   ;;  %v3064_v41 = vld [vmem:[%s3327_s9 + $0x78] ss:$12 sps:$4 sm:$0xff]  }
  0x1e   : > { %v3058_v38 = vld [vmem:[%s3327_s9 + $0x2a0] ss:$12 sps:$4 sm:$0xff]   ;;  %v3062_v40 = vld [vmem:[%s3327_s9 + $0x2bc] ss:$12 sps:$4 sm:$0xff]   ;;  %v3065_v42 = vld [vmem:[%s3327_s9 + $0x2b8] ss:$12 sps:$4 sm:$0xff]  }
  0x1f   : > { %v3066_v43 = vld [vmem:[%s3327_s9 + $0x94] ss:$12 sps:$4 sm:$0xff]   ;;  %v3070_v45 = vld [vmem:[%s3327_s9 + $0x90] ss:$12 sps:$4 sm:$0xff]   ;;  %v3072_v47 = vld [vmem:[%s3327_s9 + $0xac] ss:$12 sps:$4 sm:$0xff]  }
  0x20   : > { %1068 = vmatpush1.bf16.msra.mxu0 %v3017_v7  ;;  %2911 = vmatpush1.bf16.msra.mxu1 %v3017_v7  ;;  %v3068_v44 = vld [vmem:[%s3327_s9 + $0x2d4] ss:$12 sps:$4 sm:$0xff]   ;;  %v3071_v46 = vld [vmem:[%s3327_s9 + $0x2d0] ss:$12 sps:$4 sm:$0xff]   ;;  %v3074_v48 = vld [vmem:[%s3327_s9 + $0x2ec] ss:$12 sps:$4 sm:$0xff]  }
  0x21   : > { %1069 = vmatprep.subr.bf16.mxu0 %v3246_v1  ;;  %2896 = vmatprep.subr.bf16.mxu1 %v3246_v1  ;;  %v3076_v49 = vld [vmem:[%s3327_s9 + $0xa8] ss:$12 sps:$4 sm:$0xff]   ;;  %v3078_v51 = vld [vmem:[%s3327_s9 + $0xc4] ss:$12 sps:$4 sm:$0xff]   ;;  %v3081_v53 = vld [vmem:[%s3327_s9 + $0xc0] ss:$12 sps:$4 sm:$0xff]  }
  0x22   : > { %v3077_v50 = vld [vmem:[%s3327_s9 + $0x2e8] ss:$12 sps:$4 sm:$0xff]   ;;  %v3082_v54 = vld [vmem:[%s3327_s9 + $0x20] ss:$12 sps:$4 sm:$0xff]   ;;  %v3085_v56 = vld [vmem:[%s3327_s9 + $0x38] ss:$12 sps:$4 sm:$0xff]  }
  0x23   : > { %v3080_v52 = vld [vmem:[%s3327_s9 + $0x8] ss:$12 sps:$4 sm:$0xff]   ;;  %v3086_v57 = vld [vmem:[%s3327_s9 + $0xd8] ss:$12 sps:$4 sm:$0xff]   ;;  %v3087_v58 = vld [vmem:[%s3327_s9 + $0x50] ss:$12 sps:$4 sm:$0xff]  }
  0x24   : > { %1070 = vmatpush1.bf16.msra.mxu0 %v3018_v9  ;;  %2912 = vmatpush1.bf16.msra.mxu1 %v3018_v9  ;;  %v3083_v55 = vld [vmem:[%s3327_s9 + $0xdc] ss:$12 sps:$4 sm:$0xff]   ;;  %v3088_v59 = vld [vmem:[%s3327_s9 + $0xf4] ss:$12 sps:$4 sm:$0xff]   ;;  %v3093_v63 = vld [vmem:[%s3327_s9 + $0x10c] ss:$12 sps:$4 sm:$0xff]  }
  0x25   : > { %1071 = vmatprep.subr.bf16.mxu0 %v3246_v1  ;;  %2897 = vmatprep.subr.bf16.mxu1 %v3246_v1  ;;  %v3090_v60 = vld [vmem:[%s3327_s9 + $0x68] ss:$12 sps:$4 sm:$0xff]   ;;  %v3091_v61 = vld [vmem:[%s3327_s9 + $0xf0] ss:$12 sps:$4 sm:$0xff]   ;;  %v3092_v62 = vld [vmem:[%s3327_s9 + $0x80] ss:$12 sps:$4 sm:$0xff]  }
  0x26   : > { %v3095_v0 = vld [vmem:[%s3327_s9 + $0x98] ss:$12 sps:$4 sm:$0xff]   ;;  %v3097_v2 = vld [vmem:[%s3327_s9 + $0xb0] ss:$12 sps:$4 sm:$0xff]   ;;  %v3100_v4 = vld [vmem:[%s3327_s9 + $0xc8] ss:$12 sps:$4 sm:$0xff]  }
  0x27   : > { %v3098_v3 = vld [vmem:[%s3327_s9 + $0x124] ss:$12 sps:$4 sm:$0xff]   ;;  %v3101_v5 = vld [vmem:[%s3327_s9 + $0x120] ss:$12 sps:$4 sm:$0xff]   ;;  %v3103_v7 = vld [vmem:[%s3327_s9 + $0x13c] ss:$12 sps:$4 sm:$0xff]  }
  0x28   : > { %1072 = vmatpush1.bf16.msra.mxu0 %v3019_v10  ;;  %2913 = vmatpush1.bf16.msra.mxu1 %v3019_v10  ;;  %v3102_v6 = vld [vmem:[%s3327_s9 + $0xe0] ss:$12 sps:$4 sm:$0xff]   ;;  %v3105_v8 = vld [vmem:[%s3327_s9 + $0xf8] ss:$12 sps:$4 sm:$0xff]   ;;  %v3107_v10 = vld [vmem:[%s3327_s9 + $0x110] ss:$12 sps:$4 sm:$0xff]  }
  0x29   : > { %1073 = vmatprep.subr.bf16.mxu0 %v3246_v1  ;;  %2898 = vmatprep.subr.bf16.mxu1 %v3246_v1  ;;  %v3106_v9 = vld [vmem:[%s3327_s9 + $0x138] ss:$12 sps:$4 sm:$0xff]  }
  0x2c   : > { %1074 = vmatpush1.bf16.msra.mxu0 %v3020_v11  ;;  %2914 = vmatpush1.bf16.msra.mxu1 %v3020_v11  ;;  %v3108_v11 = vld [vmem:[%s3327_s9 + $0x154] ss:$12 sps:$4 sm:$0xff]  }
  0x2d   : > { %1075 = vmatprep.subr.bf16.mxu0 %v3246_v1  ;;  %2899 = vmatprep.subr.bf16.mxu1 %v3246_v1 }
  0x30   : > { %1076 = vmatpush1.bf16.msra.mxu0 %v3021_v12  ;;  %2915 = vmatpush1.bf16.msra.mxu1 %v3021_v12  ;;  %v3110_v12 = vld [vmem:[%s3327_s9 + $0x128] ss:$12 sps:$4 sm:$0xff]  }
  0x31   : > { %1077 = vmatprep.subr.bf16.mxu0 %v3246_v1  ;;  %2900 = vmatprep.subr.bf16.mxu1 %v3246_v1 }
  0x34   : > { %1078 = vmatpush1.bf16.msra.mxu0 %v3022_v13  ;;  %2916 = vmatpush1.bf16.msra.mxu1 %v3022_v13  ;;  %v3111_v13 = vld [vmem:[%s3327_s9 + $0x150] ss:$12 sps:$4 sm:$0xff]  }
  0x35   : > { %1079 = vmatprep.subr.bf16.mxu0 %v3246_v1  ;;  %2901 = vmatprep.subr.bf16.mxu1 %v3246_v1 }
  0x38   : > { %1080 = vmatpush1.bf16.msra.mxu0 %v3023_v14  ;;  %2917 = vmatpush1.bf16.msra.mxu1 %v3023_v14  ;;  %v3112_v14 = vld [vmem:[%s3327_s9 + $0x140] ss:$12 sps:$4 sm:$0xff]  }
  0x39   : > { %1081 = vmatprep.subr.bf16.mxu0 %v3246_v1  ;;  %2902 = vmatprep.subr.bf16.mxu1 %v3246_v1 }
  0x3c   : > { %1082 = vmatpush1.bf16.msra.mxu0 %v3024_v15  ;;  %2918 = vmatpush1.bf16.msra.mxu1 %v3024_v15  ;;  %v3113_v15 = vld [vmem:[%s3327_s9 + $0x16c] ss:$12 sps:$4 sm:$0xff]  }
  0x3d   : > { %1083 = vmatprep.subr.bf16.mxu0 %v3246_v1  ;;  %2903 = vmatprep.subr.bf16.mxu1 %v3246_v1 }
  0x40   : > { %1084 = vmatpush1.bf16.msra.mxu0 %v3025_v16  ;;  %2919 = vmatpush1.bf16.msra.mxu1 %v3025_v16  ;;  %v3115_v16 = vld [vmem:[%s3327_s9 + $0x158] ss:$12 sps:$4 sm:$0xff]  }
  0x41   : > { %1085 = vmatprep.subr.bf16.mxu0 %v3246_v1  ;;  %2904 = vmatprep.subr.bf16.mxu1 %v3246_v1 }
  0x44   : > { %1086 = vmatpush1.bf16.msra.mxu0 %v3026_v17  ;;  %2920 = vmatpush1.bf16.msra.mxu1 %v3026_v17  ;;  %v3116_v17 = vld [vmem:[%s3327_s9 + $0x168] ss:$12 sps:$4 sm:$0xff]  }
  0x45   : > { %1087 = vmatprep.subr.bf16.mxu0 %v3246_v1  ;;  %2905 = vmatprep.subr.bf16.mxu1 %v3246_v1  ;;  %v3096_v1 = vld [vmem:[%s3327_s9 + $0x108] ss:$12 sps:$4 sm:$0xff]  }
  0x48   : > { %1088 = vmatpush1.bf16.msra.mxu0 %v3027_v18  ;;  %2921 = vmatpush1.bf16.msra.mxu1 %v3027_v18  ;;  %v3117_v18 = vld [vmem:[%s3327_s9 + $0x170] ss:$12 sps:$4 sm:$0xff]  }
  0x49   : > { %2822 = vmatprep.subr.bf16.mxu1 %v3034_v19 }
  0x4b   : > { %1090 = vmatmul.mubr.bf16.vlgmr.msra.gmra.mrb[0].mxu0 %v3028_v20  ;;  %1282 = vmatmul.mubr.bf16.vlgmr.msra.gmra.mrb[0].mxu1 %v3031_v21  ;;  %v3120_v20 = vld [vmem:[%s3327_s9 + $0x188] ss:$12 sps:$4 sm:$0xff]   ;;  %v3121_v21 = vld [vmem:[%s3327_s9 + $0x180] ss:$12 sps:$4 sm:$0xff]  }
  0x4c   : > { %2823 = vmatpush3.bf16.msra.mxu1 %v3034_v19  ;;  %1097 = vmatprep.mubr.bf16.mxu0 %v3035_v22  ;;  %v3118_v19 = vld [vmem:[%s3327_s9 + $0x184] ss:$12 sps:$4 sm:$0xff]   ;;  %v3122_v22 = vld [vmem:[%s3327_s9 + $0x1a0] ss:$12 sps:$4 sm:$0xff]  }
  0x4d   : > { %1289 = vmatprep.mubr.bf16.mxu1 %v3037_v23  ;;  %2824 = vmatprep.subr.bf16.mxu1 %v3059_v24  ;;  %v3123_v23 = vld [vmem:[%s3327_s9 + $0x19c] ss:$12 sps:$4 sm:$0xff]  }
  0x50   : > { %2825 = vmatpush3.bf16.msra.mxu1 %v3059_v24  ;;  %v3125_v24 = vld [vmem:[%s3327_s9 + $0x1b8] ss:$12 sps:$4 sm:$0xff]  }
  0x53   : > { %1098 = vmatmul.mubr.bf16.gmra.mrb[4].mxu0 %v3039_v25  ;;  %1290 = vmatmul.mubr.bf16.gmra.mrb[4].mxu1 %v3040_v26  ;;  %v3126_v25 = vld [vmem:[%s3327_s9 + $0x198] ss:$12 sps:$4 sm:$0xff]   ;;  %v3127_v26 = vld [vmem:[%s3327_s9 + $0x1d0] ss:$12 sps:$4 sm:$0xff]  }
  0x54   : > { %1105 = vmatprep.mubr.bf16.mxu0 %v3041_v27  ;;  %1297 = vmatprep.mubr.bf16.mxu1 %v3043_v28  ;;  %v3128_v27 = vld [vmem:[%s3327_s9 + $0x1b4] ss:$12 sps:$4 sm:$0xff]  }
  0x55   : > { %v3130_v28 = vld [vmem:[%s3327_s9 + $0x1e8] ss:$12 sps:$4 sm:$0xff]  }
  0x5b   : > { %1106 = vmatmul.mubr.bf16.gmra.mrb[8].mxu0 %v3045_v29  ;;  %1298 = vmatmul.mubr.bf16.gmra.mrb[8].mxu1 %v3046_v30  ;;  %v3131_v29 = vld [vmem:[%s3327_s9 + $0x1b0] ss:$12 sps:$4 sm:$0xff]   ;;  %v3132_v30 = vld [vmem:[%s3327_s9 + $0x200] ss:$12 sps:$4 sm:$0xff]  }
  0x5c   : > { %1113 = vmatprep.mubr.bf16.mxu0 %v3047_v31  ;;  %1305 = vmatprep.mubr.bf16.mxu1 %v3049_v32  ;;  %v3133_v31 = vld [vmem:[%s3327_s9 + $0x1cc] ss:$12 sps:$4 sm:$0xff]  }
  0x5d   : > { %v3135_v32 = vld [vmem:[%s3327_s9 + $0x218] ss:$12 sps:$4 sm:$0xff]  }
  0x63   : > { %1114 = vmatmul.mubr.bf16.gmra.mrb[12].mxu0 %v3051_v33  ;;  %1306 = vmatmul.mubr.bf16.gmra.mrb[12].mxu1 %v3052_v34  ;;  %v3136_v33 = vld [vmem:[%s3327_s9 + $0x1c8] ss:$12 sps:$4 sm:$0xff]   ;;  %v3137_v34 = vld [vmem:[%s3327_s9 + $0x230] ss:$12 sps:$4 sm:$0xff]  }
  0x64   : > { %1121 = vmatprep.mubr.bf16.mxu0 %v3053_v35  ;;  %1313 = vmatprep.mubr.bf16.mxu1 %v3055_v36  ;;  %v3138_v35 = vld [vmem:[%s3327_s9 + $0x1e4] ss:$12 sps:$4 sm:$0xff]   ;;  %v3140_v36 = vld [vmem:[%s3327_s9 + $0x248] ss:$12 sps:$4 sm:$0xff]  }
  0x6b   : > { %1122 = vmatmul.mubr.bf16.gmra.mrb[16].mxu0 %v3057_v37  ;;  %1314 = vmatmul.mubr.bf16.gmra.mrb[16].mxu1 %v3058_v38  ;;  %v3141_v37 = vld [vmem:[%s3327_s9 + $0x1e0] ss:$12 sps:$4 sm:$0xff]  }
  0x6c   : > { %1129 = vmatprep.mubr.bf16.mxu0 %v3060_v39  ;;  %1321 = vmatprep.mubr.bf16.mxu1 %v3062_v40  ;;  %v3142_v38 = vld [vmem:[%s3327_s9 + $0x260] ss:$12 sps:$4 sm:$0xff]   ;;  %v3143_v39 = vld [vmem:[%s3327_s9 + $0x1fc] ss:$12 sps:$4 sm:$0xff]   ;;  %v3145_v40 = vld [vmem:[%s3327_s9 + $0x278] ss:$12 sps:$4 sm:$0xff]  }
  0x73   : > { %1130 = vmatmul.mubr.bf16.gmra.mrb[20].mxu0 %v3064_v41  ;;  %1322 = vmatmul.mubr.bf16.gmra.mrb[20].mxu1 %v3065_v42  ;;  %v3146_v41 = vld [vmem:[%s3327_s9 + $0x1f8] ss:$12 sps:$4 sm:$0xff]   ;;  %v3147_v42 = vld [vmem:[%s3327_s9 + $0x290] ss:$12 sps:$4 sm:$0xff]  }
  0x74   : > { %1137 = vmatprep.mubr.bf16.mxu0 %v3066_v43  ;;  %1329 = vmatprep.mubr.bf16.mxu1 %v3068_v44  ;;  %v3148_v43 = vld [vmem:[%s3327_s9 + $0x214] ss:$12 sps:$4 sm:$0xff]  }
  0x75   : > { %v3150_v44 = vld [vmem:[%s3327_s9 + $0x2a8] ss:$12 sps:$4 sm:$0xff]  }
  0x7b   : > { %1138 = vmatmul.mubr.bf16.gmra.mrb[24].mxu0 %v3070_v45  ;;  %1330 = vmatmul.mubr.bf16.gmra.mrb[24].mxu1 %v3071_v46  ;;  %v3151_v45 = vld [vmem:[%s3327_s9 + $0x210] ss:$12 sps:$4 sm:$0xff]   ;;  %v3152_v46 = vld [vmem:[%s3327_s9 + $0x2c0] ss:$12 sps:$4 sm:$0xff]  }
  0x7c   : > { %1145 = vmatprep.mubr.bf16.mxu0 %v3072_v47  ;;  %1337 = vmatprep.mubr.bf16.mxu1 %v3074_v48  ;;  %v3153_v47 = vld [vmem:[%s3327_s9 + $0x22c] ss:$12 sps:$4 sm:$0xff]  }
  0x7d   : > { %v3155_v48 = vld [vmem:[%s3327_s9 + $0x2d8] ss:$12 sps:$4 sm:$0xff]  }
  0x83   : > { %1146 = vmatmul.mubr.bf16.gmra.mrb[28].mxu0 %v3076_v49  ;;  %1338 = vmatmul.mubr.bf16.gmra.mrb[28].mxu1 %v3077_v50  ;;  %v3156_v49 = vld [vmem:[%s3327_s9 + $0x228] ss:$12 sps:$4 sm:$0xff]   ;;  %v3157_v50 = vld [vmem:[%s3327_s9 + $0x2f0] ss:$12 sps:$4 sm:$0xff]  }
  0x84   : > { %1153 = vmatprep.mubr.bf16.mxu0 %v3078_v51  ;;  %2826 = vmatprep.mubr.msk.bf16.mxu1 %vm960_vm0, %v3080_v52 }
  0x8b   : > { %1154 = vmatmul.mubr.bf16.gmra.mrb[32].mxu0 %v3081_v53  ;;  %2827 = vmatmul.mubr.msk.bf16.vlgmr.msra.gmra.mrb[32].mxu1 %vm960_vm0, %v3082_v54 }
  0x8c   : > { %1161 = vmatprep.mubr.bf16.mxu0 %v3083_v55  ;;  %2830 = vmatprep.mubr.msk.bf16.mxu1 %vm960_vm0, %v3085_v56 }
  0x93   : > { %1162 = vmatmul.mubr.bf16.gmra.mrb[36].mxu0 %v3086_v57  ;;  %2831 = vmatmul.mubr.msk.bf16.gmra.mrb[36].mxu1 %vm960_vm0, %v3087_v58 }
  0x94   : > { %1169 = vmatprep.mubr.bf16.mxu0 %v3088_v59  ;;  %2834 = vmatprep.mubr.msk.bf16.mxu1 %vm960_vm0, %v3090_v60 }
  0x9b   : > { %1170 = vmatmul.mubr.bf16.gmra.mrb[40].mxu0 %v3091_v61  ;;  %2835 = vmatmul.mubr.msk.bf16.gmra.mrb[40].mxu1 %vm960_vm0, %v3092_v62 }
  0x9c   : > { %1177 = vmatprep.mubr.bf16.mxu0 %v3093_v63  ;;  %2838 = vmatprep.mubr.msk.bf16.mxu1 %vm960_vm0, %v3095_v0 }
  0xa3   : > { %1178 = vmatmul.mubr.bf16.gmra.mrb[44].mxu0 %v3096_v1  ;;  %2839 = vmatmul.mubr.msk.bf16.gmra.mrb[44].mxu1 %vm960_vm0, %v3097_v2 }
  0xa4   : > { %1185 = vmatprep.mubr.bf16.mxu0 %v3098_v3  ;;  %2842 = vmatprep.mubr.msk.bf16.mxu1 %vm960_vm0, %v3100_v4 }
  0xab   : > { %1186 = vmatmul.mubr.bf16.gmra.mrb[48].mxu0 %v3101_v5  ;;  %2843 = vmatmul.mubr.msk.bf16.gmra.mrb[48].mxu1 %vm960_vm0, %v3102_v6 }
  0xac   : > { %1193 = vmatprep.mubr.bf16.mxu0 %v3103_v7  ;;  %2846 = vmatprep.mubr.msk.bf16.mxu1 %vm960_vm0, %v3105_v8 }
  0xb3   : > { %1194 = vmatmul.mubr.bf16.gmra.mrb[52].mxu0 %v3106_v9  ;;  %2847 = vmatmul.mubr.msk.bf16.gmra.mrb[52].mxu1 %vm960_vm0, %v3107_v10 }
  0xb4   : > { %1201 = vmatprep.mubr.bf16.mxu0 %v3108_v11  ;;  %2850 = vmatprep.mubr.msk.bf16.mxu1 %vm960_vm0, %v3110_v12 }
  0xbb   : > { %1202 = vmatmul.mubr.bf16.gmra.mrb[56].mxu0 %v3111_v13  ;;  %2851 = vmatmul.mubr.msk.bf16.gmra.mrb[56].mxu1 %vm960_vm0, %v3112_v14 }
  0xbc   : > { %1209 = vmatprep.mubr.bf16.mxu0 %v3113_v15  ;;  %2854 = vmatprep.mubr.msk.bf16.mxu1 %vm960_vm0, %v3115_v16 }
  0xc3   : > { %1210 = vmatmul.mubr.bf16.gmra.mrb[60].mxu0 %v3116_v17  ;;  %2855 = vmatmul.mubr.msk.bf16.gmra.mrb[60].mxu1 %vm960_vm0, %v3117_v18 }
  0xc4   : > { %1217 = vmatprep.mubr.bf16.mxu0 %v3118_v19  ;;  %2858 = vmatprep.mubr.msk.bf16.mxu1 %vm960_vm0, %v3120_v20 }
  0xcb   : > { %1218 = vmatmul.mubr.bf16.gmra.mrb[64].mxu0 %v3121_v21  ;;  %2859 = vmatmul.mubr.msk.bf16.gmra.mrb[64].mxu1 %vm960_vm0, %v3122_v22 }
  0xcc   : > { %1225 = vmatprep.mubr.bf16.mxu0 %v3123_v23  ;;  %2862 = vmatprep.mubr.msk.bf16.mxu1 %vm960_vm0, %v3125_v24 }
  0xd3   : > { %1226 = vmatmul.mubr.bf16.gmra.mrb[68].mxu0 %v3126_v25  ;;  %2863 = vmatmul.mubr.msk.bf16.gmra.mrb[68].mxu1 %vm960_vm0, %v3127_v26 }
  0xd4   : > { %1233 = vmatprep.mubr.bf16.mxu0 %v3128_v27  ;;  %2866 = vmatprep.mubr.msk.bf16.mxu1 %vm960_vm0, %v3130_v28 }
  0xdb   : > { %1234 = vmatmul.mubr.bf16.gmra.mrb[72].mxu0 %v3131_v29  ;;  %2867 = vmatmul.mubr.msk.bf16.gmra.mrb[72].mxu1 %vm960_vm0, %v3132_v30 }
  0xdc   : > { %1241 = vmatprep.mubr.bf16.mxu0 %v3133_v31  ;;  %2870 = vmatprep.mubr.msk.bf16.mxu1 %vm960_vm0, %v3135_v32 }
  0xe3   : > { %1242 = vmatmul.mubr.bf16.gmra.mrb[76].mxu0 %v3136_v33  ;;  %2871 = vmatmul.mubr.msk.bf16.gmra.mrb[76].mxu1 %vm960_vm0, %v3137_v34 }
  0xe4   : > { %1249 = vmatprep.mubr.bf16.mxu0 %v3138_v35  ;;  %2874 = vmatprep.mubr.msk.bf16.mxu1 %vm960_vm0, %v3140_v36 }
  0xeb   : > { %1250 = vmatmul.mubr.bf16.gmra.mrb[80].mxu0 %v3141_v37  ;;  %2875 = vmatmul.mubr.msk.bf16.gmra.mrb[80].mxu1 %vm960_vm0, %v3142_v38 }
  0xec   : > { %1257 = vmatprep.mubr.bf16.mxu0 %v3143_v39  ;;  %2878 = vmatprep.mubr.msk.bf16.mxu1 %vm960_vm0, %v3145_v40 }
  0xf3   : > { %1258 = vmatmul.mubr.bf16.gmra.mrb[84].mxu0 %v3146_v41  ;;  %2879 = vmatmul.mubr.msk.bf16.gmra.mrb[84].mxu1 %vm960_vm0, %v3147_v42 }
  0xf4   : > { %1265 = vmatprep.mubr.bf16.mxu0 %v3148_v43  ;;  %2882 = vmatprep.mubr.msk.bf16.mxu1 %vm960_vm0, %v3150_v44 }
  0xfb   : > { %1266 = vmatmul.mubr.bf16.gmra.mrb[88].mxu0 %v3151_v45  ;;  %2883 = vmatmul.mubr.msk.bf16.gmra.mrb[88].mxu1 %vm960_vm0, %v3152_v46 }
  0xfc   : > { %1273 = vmatprep.mubr.bf16.mxu0 %v3153_v47  ;;  %2886 = vmatprep.mubr.msk.bf16.mxu1 %vm960_vm0, %v3155_v48 }
 0x103   : > { %1274 = vmatmul.mubr.bf16.gmra.mrb[92].mxu0 %v3156_v49  ;;  %2887 = vmatmul.mubr.msk.bf16.gmra.mrb[92].mxu1 %vm960_vm0, %v3157_v50 }
 0x11e   : > { %v3520_v51 = vpop.f32.mrb[0].mxu0  ;;  %v3522_v52 = vpop.f32.mrb[0].mxu1 }
 0x11f   : > { %v1093_v53 = vpop.f32.mrb[1].mxu0  ;;  %v1285_v54 = vpop.f32.mrb[1].mxu1 }
 0x120   : > { %v3524_v55 = vpop.f32.mrb[2].mxu0  ;;  %v3526_v56 = vpop.f32.mrb[2].mxu1  ;;  %v3583_v53 = vld [vmem:[%s4047_s2] ss:$0 sm:$0xff] }
 0x121   : > { %v1096_v57 = vpop.f32.mrb[3].mxu0  ;;  %v1288_v58 = vpop.f32.mrb[3].mxu1 }
 0x122   : > { %v1092_v57 = vadd.f32 %v3583_v53, %v3520_v51 }
 0x126   : > { %v1099_v59 = vpop.f32.mrb[4].mxu0  ;;  %v3528_v60 = vpop.f32.mrb[4].mxu1 }
 0x127   : > { %v1101_v61 = vpop.f32.mrb[5].mxu0  ;;  %v1293_v62 = vpop.f32.mrb[5].mxu1  ;;  %v1100_v54 = vadd.f32 %v3583_v53, %v1099_v59 }
 0x128   : > { %v1102_v63 = vpop.f32.mrb[6].mxu0  ;;  %v3530_v0 = vpop.f32.mrb[6].mxu1 }
 0x129   : > { %v1104_v1 = vpop.f32.mrb[7].mxu0  ;;  %v1296_v2 = vpop.f32.mrb[7].mxu1  ;;  %v1103_v62 = vadd.f32 %v3583_v53, %v1102_v63 }
 0x12e   : > { %v3532_v3 = vpop.f32.mrb[8].mxu0  ;;  %v3534_v4 = vpop.f32.mrb[8].mxu1 }
 0x12f   : > { %v1109_v5 = vpop.f32.mrb[9].mxu0  ;;  %v1301_v6 = vpop.f32.mrb[9].mxu1 }
 0x130   : > { %v3536_v7 = vpop.f32.mrb[10].mxu0  ;;  %v3538_v8 = vpop.f32.mrb[10].mxu1  ;;  %v1095_v6 = vadd.f32 %v3583_v53, %v3524_v55 }
 0x131   : > { %v1112_v9 = vpop.f32.mrb[11].mxu0  ;;  %v1304_v10 = vpop.f32.mrb[11].mxu1 }
 0x136   : > { %v3540_v11 = vpop.f32.mrb[12].mxu0  ;;  %v3542_v12 = vpop.f32.mrb[12].mxu1 }
 0x137   : > { %v1117_v13 = vpop.f32.mrb[13].mxu0  ;;  %v1309_v14 = vpop.f32.mrb[13].mxu1 }
 0x138   : > { %v3544_v15 = vpop.f32.mrb[14].mxu0  ;;  %v3546_v16 = vpop.f32.mrb[14].mxu1 }
 0x139   : > { %v1120_v17 = vpop.f32.mrb[15].mxu0  ;;  %v1312_v18 = vpop.f32.mrb[15].mxu1 }
 0x13e   : > { %v3548_v19 = vpop.f32.mrb[16].mxu0  ;;  %v3550_v20 = vpop.f32.mrb[16].mxu1 }
 0x13f   : > { %v1125_v21 = vpop.f32.mrb[17].mxu0  ;;  %v1317_v22 = vpop.f32.mrb[17].mxu1 }
 0x140   : > { %v3552_v23 = vpop.f32.mrb[18].mxu0  ;;  %v3554_v24 = vpop.f32.mrb[18].mxu1 }
 0x141   : > { %v1128_v25 = vpop.f32.mrb[19].mxu0  ;;  %v1320_v26 = vpop.f32.mrb[19].mxu1 }
 0x146   : > { %v3556_v27 = vpop.f32.mrb[20].mxu0  ;;  %v3558_v28 = vpop.f32.mrb[20].mxu1 }
 0x147   : > { %v1133_v29 = vpop.f32.mrb[21].mxu0  ;;  %v1325_v30 = vpop.f32.mrb[21].mxu1 }
 0x148   : > { %v3560_v31 = vpop.f32.mrb[22].mxu0  ;;  %v3562_v32 = vpop.f32.mrb[22].mxu1  ;;  %v1116_v29 = vadd.f32 %v3583_v53, %v3540_v11  ;;  %v1108_v30 = vadd.f32 %v3583_v53, %v3532_v3  ;;  %v1119_v11 = vadd.f32 %v3583_v53, %v3544_v15 }
 0x149   : > { %v1136_v33 = vpop.f32.mrb[23].mxu0  ;;  %v1328_v34 = vpop.f32.mrb[23].mxu1 }
 0x14e   : > { %v3564_v35 = vpop.f32.mrb[24].mxu0  ;;  %v3566_v36 = vpop.f32.mrb[24].mxu1 }
 0x14f   : > { %v1141_v37 = vpop.f32.mrb[25].mxu0  ;;  %v1333_v38 = vpop.f32.mrb[25].mxu1 }
 0x150   : > { %v3568_v39 = vpop.f32.mrb[26].mxu0  ;;  %v3570_v40 = vpop.f32.mrb[26].mxu1 }
 0x151   : > { %v1144_v41 = vpop.f32.mrb[27].mxu0  ;;  %v1336_v42 = vpop.f32.mrb[27].mxu1 }
 0x156   : > { %v3572_v43 = vpop.f32.mrb[28].mxu0  ;;  %v3574_v44 = vpop.f32.mrb[28].mxu1 }
 0x157   : > { %v1149_v45 = vpop.f32.mrb[29].mxu0  ;;  %v1341_v46 = vpop.f32.mrb[29].mxu1 }
 0x158   : > { %v3576_v47 = vpop.f32.mrb[30].mxu0  ;;  %v3578_v48 = vpop.f32.mrb[30].mxu1  ;;  %v1111_v45 = vadd.f32 %v3583_v53, %v3536_v7 }
 0x159   : > { %v1152_v49 = vpop.f32.mrb[31].mxu0  ;;  %v1344_v50 = vpop.f32.mrb[31].mxu1 }
 0x15e   : > { %v3589_v58 = vpop.f32.mrb[32].mxu0  ;;  %v2828_v61 = vpop.f32.mrb[32].mxu1 }
 0x15f   : > { %v1389_v1 = vadd.f32 %v2828_v61, %v1100_v54  ;;  %v1157_v2 = vpop.f32.mrb[33].mxu0  ;;  %v1380_v5 = vpop.f32.mrb[33].mxu1 }
 0x160   : > { %v1381_v9 = vadd.f32 %v1380_v5, %v1092_v57  ;;  %v3594_v10 = vpop.f32.mrb[34].mxu0  ;;  %v2829_v13 = vpop.f32.mrb[34].mxu1 }
 0x161   : > { %v1637_v59 = vmax.f32 %v1389_v1, 0.0  ;;  %v1392_v14 = vadd.f32 %v2829_v13, %v1103_v62  ;;  %v1160_v17 = vpop.f32.mrb[35].mxu0  ;;  %v1383_v51 = vpop.f32.mrb[35].mxu1  ;;  %v1124_v13 = vadd.f32 %v3583_v53, %v3548_v19 }
 0x162   : > { %v1635_v18 = vmax.f32 %v1381_v9, 0.0  ;;  %v1384_v21 = vadd.f32 %v1383_v51, %v1095_v6  ;;  %v1132_v6 = vadd.f32 %v3583_v53, %v3556_v27  ;;  %v1135_v51 = vadd.f32 %v3583_v53, %v3560_v31 }
 0x163   : > { %v2723_v22 = vpack.c.bf16 %v1637_v59, %v1637_v59  ;;  %v1638_v63 = vmax.f32 %v1392_v14, 0.0 }
 0x164   : > { %v2721_v25 = vpack.c.bf16 %v1635_v18, %v1635_v18  ;;  %v1636_v26 = vmax.f32 %v1384_v21, 0.0 }
 0x165   : > { %1958 = vst.msk [vmem:[%s3598_s12 + $0x8] sm:$0xf] %vm1955_vm1, %v2723_v22  ;;  %v2724_v55 = vpack.c.bf16 %v1638_v63, %v1638_v63  ;;  %v1127_v22 = vadd.f32 %v3583_v53, %v3552_v23 }
 0x166   : > { %1956 = vst.msk [vmem:[%s3598_s12] sm:$0xf] %vm1955_vm1, %v2721_v25  ;;  %v2722_v33 = vpack.c.bf16 %v1636_v26, %v1636_v26  ;;  %v3606_v34 = vpop.f32.mrb[36].mxu0  ;;  %v2832_v37 = vpop.f32.mrb[36].mxu1 }
 0x167   : > { %1959 = vst.msk [vmem:[%s3598_s12 + $0xc] sm:$0xf] %vm1955_vm1, %v2724_v55  ;;  %v1405_v38 = vadd.f32 %v2832_v37, %v1116_v29  ;;  %v1165_v41 = vpop.f32.mrb[37].mxu0  ;;  %v1396_v42 = vpop.f32.mrb[37].mxu1 }
 0x168   : > { %1957 = vst.msk [vmem:[%s3598_s12 + $0x4] sm:$0xf] %vm1955_vm1, %v2722_v33  ;;  %v1397_v3 = vadd.f32 %v1396_v42, %v1108_v30  ;;  %v3616_v46 = vpop.f32.mrb[38].mxu0  ;;  %v2833_v49 = vpop.f32.mrb[38].mxu1  ;;  %v1148_v41 = vadd.f32 %v3583_v53, %v3572_v43  ;;  %v1143_v43 = vadd.f32 %v3583_v53, %v3568_v39  ;;  %v1164_v39 = vadd.f32 %v3583_v53, %v3606_v34 }
 0x169   : > { %v1641_v50 = vmax.f32 %v1405_v38, 0.0  ;;  %v1408_v54 = vadd.f32 %v2833_v49, %v1119_v11  ;;  %v1168_v57 = vpop.f32.mrb[39].mxu0  ;;  %v1399_v15 = vpop.f32.mrb[39].mxu1  ;;  %v1159_v34 = vadd.f32 %v3583_v53, %v3594_v10 }
 0x16a   : > { %v1639_v61 = vmax.f32 %v1397_v3, 0.0  ;;  %v1400_v62 = vadd.f32 %v1399_v15, %v1111_v45  ;;  %v1140_v45 = vadd.f32 %v3583_v53, %v3564_v35 }
 0x16b   : > { %v2727_v1 = vpack.c.bf16 %v1641_v50, %v1641_v50  ;;  %v1642_v2 = vmax.f32 %v1408_v54, 0.0  ;;  %v1151_v54 = vadd.f32 %v3583_v53, %v3576_v47 }
 0x16c   : > { %v2725_v5 = vpack.c.bf16 %v1639_v61, %v1639_v61  ;;  %v1640_v7 = vmax.f32 %v1400_v62, 0.0 }
 0x16d   : > { %1962 = vst.msk [vmem:[%s3598_s12 + $0x18] sm:$0xf] %vm1955_vm1, %v2727_v1  ;;  %v2728_v9 = vpack.c.bf16 %v1642_v2, %v1642_v2 }
 0x16e   : > { %1960 = vst.msk [vmem:[%s3598_s12 + $0x10] sm:$0xf] %vm1955_vm1, %v2725_v5  ;;  %v2726_v59 = vpack.c.bf16 %v1640_v7, %v1640_v7  ;;  %v3626_v14 = vpop.f32.mrb[40].mxu0  ;;  %v2836_v17 = vpop.f32.mrb[40].mxu1 }
 0x16f   : > { %1963 = vst.msk [vmem:[%s3598_s12 + $0x1c] sm:$0xf] %vm1955_vm1, %v2728_v9  ;;  %v1421_v18 = vadd.f32 %v2836_v17, %v1132_v6  ;;  %v1173_v21 = vpop.f32.mrb[41].mxu0  ;;  %v1412_v27 = vpop.f32.mrb[41].mxu1 }
 0x170   : > { %1961 = vst.msk [vmem:[%s3598_s12 + $0x14] sm:$0xf] %vm1955_vm1, %v2726_v59  ;;  %v1413_v19 = vadd.f32 %v1412_v27, %v1124_v13  ;;  %v3636_v63 = vpop.f32.mrb[42].mxu0  ;;  %v2837_v25 = vpop.f32.mrb[42].mxu1  ;;  %v1156_v21 = vadd.f32 %v3583_v53, %v3589_v58 }
 0x171   : > { %v1645_v26 = vmax.f32 %v1421_v18, 0.0  ;;  %v1424_v29 = vadd.f32 %v2837_v25, %v1135_v51  ;;  %v1176_v55 = vpop.f32.mrb[43].mxu0  ;;  %v1415_v31 = vpop.f32.mrb[43].mxu1  ;;  %v1167_v25 = vadd.f32 %v3583_v53, %v3616_v46 }
 0x172   : > { %v1643_v30 = vmax.f32 %v1413_v19, 0.0  ;;  %v1416_v33 = vadd.f32 %v1415_v31, %v1127_v22 }
 0x173   : > { %v2731_v37 = vpack.c.bf16 %v1645_v26, %v1645_v26  ;;  %v1646_v11 = vmax.f32 %v1424_v29, 0.0 }
 0x174   : > { %v2729_v38 = vpack.c.bf16 %v1643_v30, %v1643_v30  ;;  %v1644_v23 = vmax.f32 %v1416_v33, 0.0 }
 0x175   : > { %1966 = vst.msk [vmem:[%s3598_s12 + $0x28] sm:$0xf] %vm1955_vm1, %v2731_v37  ;;  %v2732_v42 = vpack.c.bf16 %v1646_v11, %v1646_v11 }
 0x176   : > { %1964 = vst.msk [vmem:[%s3598_s12 + $0x20] sm:$0xf] %vm1955_vm1, %v2729_v38  ;;  %v2730_v3 = vpack.c.bf16 %v1644_v23, %v1644_v23  ;;  %v1179_v49 = vpop.f32.mrb[44].mxu0  ;;  %v2840_v50 = vpop.f32.mrb[44].mxu1 }
 0x177   : > { %1967 = vst.msk [vmem:[%s3598_s12 + $0x2c] sm:$0xf] %vm1955_vm1, %v2732_v42  ;;  %v1437_v57 = vadd.f32 %v2840_v50, %v1148_v41  ;;  %v1181_v15 = vpop.f32.mrb[45].mxu0  ;;  %v1428_v61 = vpop.f32.mrb[45].mxu1  ;;  %v1180_v10 = vadd.f32 %v3583_v53, %v1179_v49  ;;  %v1175_v49 = vadd.f32 %v3583_v53, %v3636_v63 }
 0x178   : > { %1965 = vst.msk [vmem:[%s3598_s12 + $0x24] sm:$0xf] %vm1955_vm1, %v2730_v3  ;;  %v1429_v35 = vadd.f32 %v1428_v61, %v1140_v45  ;;  %v1182_v62 = vpop.f32.mrb[46].mxu0  ;;  %v2841_v1 = vpop.f32.mrb[46].mxu1 }
 0x179   : > { %v1649_v2 = vmax.f32 %v1437_v57, 0.0  ;;  %v1440_v5 = vadd.f32 %v2841_v1, %v1151_v54  ;;  %v1184_v7 = vpop.f32.mrb[47].mxu0  ;;  %v1431_v6 = vpop.f32.mrb[47].mxu1  ;;  %v1172_v54 = vadd.f32 %v3583_v53, %v3626_v14 }
 0x17a   : > { %v1647_v47 = vmax.f32 %v1429_v35, 0.0  ;;  %v1432_v9 = vadd.f32 %v1431_v6, %v1143_v43  ;;  %v1183_v43 = vadd.f32 %v3583_v53, %v1182_v62 }
 0x17b   : > { %v2735_v13 = vpack.c.bf16 %v1649_v2, %v1649_v2  ;;  %v1650_v59 = vmax.f32 %v1440_v5, 0.0 }
 0x17c   : > { %v2733_v17 = vpack.c.bf16 %v1647_v47, %v1647_v47  ;;  %v1648_v51 = vmax.f32 %v1432_v9, 0.0 }
 0x17d   : > { %1970 = vst.msk [vmem:[%s3598_s12 + $0x38] sm:$0xf] %vm1955_vm1, %v2735_v13  ;;  %v2736_v18 = vpack.c.bf16 %v1650_v59, %v1650_v59 }
 0x17e   : > { %1968 = vst.msk [vmem:[%s3598_s12 + $0x30] sm:$0xf] %vm1955_vm1, %v2733_v17  ;;  %v2734_v27 = vpack.c.bf16 %v1648_v51, %v1648_v51  ;;  %v1187_v22 = vpop.f32.mrb[48].mxu0  ;;  %v2844_v19 = vpop.f32.mrb[48].mxu1 }
 0x17f   : > { %1971 = vst.msk [vmem:[%s3598_s12 + $0x3c] sm:$0xf] %vm1955_vm1, %v2736_v18  ;;  %v1453_v26 = vadd.f32 %v2844_v19, %v1164_v39  ;;  %v1189_v29 = vpop.f32.mrb[49].mxu0  ;;  %v1444_v55 = vpop.f32.mrb[49].mxu1 }
 0x180   : > { %1969 = vst.msk [vmem:[%s3598_s12 + $0x34] sm:$0xf] %vm1955_vm1, %v2734_v27  ;;  %v1445_v58 = vadd.f32 %v1444_v55, %v1156_v21  ;;  %v1190_v31 = vpop.f32.mrb[50].mxu0  ;;  %v2845_v30 = vpop.f32.mrb[50].mxu1  ;;  %v1188_v27 = vadd.f32 %v3583_v53, %v1187_v22 }
 0x181   : > { %v1653_v33 = vmax.f32 %v1453_v26, 0.0  ;;  %v1456_v37 = vadd.f32 %v2845_v30, %v1167_v25  ;;  %v1192_v11 = vpop.f32.mrb[51].mxu0  ;;  %v1447_v38 = vpop.f32.mrb[51].mxu1  ;;  %v1191_v30 = vadd.f32 %v3583_v53, %v1190_v31 }
 0x182   : > { %v1651_v46 = vmax.f32 %v1445_v58, 0.0  ;;  %v1448_v23 = vadd.f32 %v1447_v38, %v1159_v34 }
 0x183   : > { %v2739_v41 = vpack.c.bf16 %v1653_v33, %v1653_v33  ;;  %v1654_v42 = vmax.f32 %v1456_v37, 0.0 }
 0x184   : > { %v2737_v45 = vpack.c.bf16 %v1651_v46, %v1651_v46  ;;  %v1652_v3 = vmax.f32 %v1448_v23, 0.0 }
 0x185   : > { %1974 = vst.msk [vmem:[%s3598_s12 + $0x48] sm:$0xf] %vm1955_vm1, %v2739_v41  ;;  %v2740_v50 = vpack.c.bf16 %v1654_v42, %v1654_v42 }
 0x186   : > { %1972 = vst.msk [vmem:[%s3598_s12 + $0x40] sm:$0xf] %vm1955_vm1, %v2737_v45  ;;  %v2738_v57 = vpack.c.bf16 %v1652_v3, %v1652_v3  ;;  %v1195_v15 = vpop.f32.mrb[52].mxu0  ;;  %v2848_v61 = vpop.f32.mrb[52].mxu1 }
 0x187   : > { %1975 = vst.msk [vmem:[%s3598_s12 + $0x4c] sm:$0xf] %vm1955_vm1, %v2740_v50  ;;  %v1469_v35 = vadd.f32 %v2848_v61, %v1180_v10  ;;  %v1197_v1 = vpop.f32.mrb[53].mxu0  ;;  %v1460_v2 = vpop.f32.mrb[53].mxu1  ;;  %v1196_v63 = vadd.f32 %v3583_v53, %v1195_v15 }
 0x188   : > { %1973 = vst.msk [vmem:[%s3598_s12 + $0x44] sm:$0xf] %vm1955_vm1, %v2738_v57  ;;  %v1461_v5 = vadd.f32 %v1460_v2, %v1172_v54  ;;  %v1198_v14 = vpop.f32.mrb[54].mxu0  ;;  %v2849_v7 = vpop.f32.mrb[54].mxu1 }
 0x189   : > { %v1657_v6 = vmax.f32 %v1469_v35, 0.0  ;;  %v1472_v47 = vadd.f32 %v2849_v7, %v1183_v43  ;;  %v1200_v9 = vpop.f32.mrb[55].mxu0  ;;  %v1463_v13 = vpop.f32.mrb[55].mxu1  ;;  %v1199_v29 = vadd.f32 %v3583_v53, %v1198_v14 }
 0x18a   : > { %v1655_v62 = vmax.f32 %v1461_v5, 0.0  ;;  %v1464_v59 = vadd.f32 %v1463_v13, %v1175_v49 }
 0x18b   : > { %v2743_v17 = vpack.c.bf16 %v1657_v6, %v1657_v6  ;;  %v1658_v51 = vmax.f32 %v1472_v47, 0.0 }
 0x18c   : > { %v2741_v39 = vpack.c.bf16 %v1655_v62, %v1655_v62  ;;  %v1656_v18 = vmax.f32 %v1464_v59, 0.0 }
 0x18d   : > { %1978 = vst.msk [vmem:[%s3598_s12 + $0x58] sm:$0xf] %vm1955_vm1, %v2743_v17  ;;  %v2744_v21 = vpack.c.bf16 %v1658_v51, %v1658_v51 }
 0x18e   : > { %1976 = vst.msk [vmem:[%s3598_s12 + $0x50] sm:$0xf] %vm1955_vm1, %v2741_v39  ;;  %v2742_v19 = vpack.c.bf16 %v1656_v18, %v1656_v18  ;;  %v1203_v25 = vpop.f32.mrb[56].mxu0  ;;  %v2852_v26 = vpop.f32.mrb[56].mxu1 }
 0x18f   : > { %1979 = vst.msk [vmem:[%s3598_s12 + $0x5c] sm:$0xf] %vm1955_vm1, %v2744_v21  ;;  %v1485_v55 = vadd.f32 %v2852_v26, %v1196_v63  ;;  %v1205_v34 = vpop.f32.mrb[57].mxu0  ;;  %v1476_v58 = vpop.f32.mrb[57].mxu1  ;;  %v1204_v54 = vadd.f32 %v3583_v53, %v1203_v25 }
 0x190   : > { %1977 = vst.msk [vmem:[%s3598_s12 + $0x54] sm:$0xf] %vm1955_vm1, %v2742_v19  ;;  %v1477_v33 = vadd.f32 %v1476_v58, %v1188_v27  ;;  %v1206_v22 = vpop.f32.mrb[58].mxu0  ;;  %v2853_v37 = vpop.f32.mrb[58].mxu1 }
 0x191   : > { %v1661_v11 = vmax.f32 %v1485_v55, 0.0  ;;  %v1488_v38 = vadd.f32 %v2853_v37, %v1199_v29  ;;  %v1208_v46 = vpop.f32.mrb[59].mxu0  ;;  %v1479_v23 = vpop.f32.mrb[59].mxu1  ;;  %v1207_v2 = vadd.f32 %v3583_v53, %v1206_v22 }
 0x192   : > { %v1659_v41 = vmax.f32 %v1477_v33, 0.0  ;;  %v1480_v42 = vadd.f32 %v1479_v23, %v1191_v30 }
 0x193   : > { %v2747_v45 = vpack.c.bf16 %v1661_v11, %v1661_v11  ;;  %v1662_v3 = vmax.f32 %v1488_v38, 0.0 }
 0x194   : > { %v2745_v10 = vpack.c.bf16 %v1659_v41, %v1659_v41  ;;  %v1660_v50 = vmax.f32 %v1480_v42, 0.0 }
 0x195   : > { %1982 = vst.msk [vmem:[%s3598_s12 + $0x68] sm:$0xf] %vm1955_vm1, %v2747_v45  ;;  %v2748_v31 = vpack.c.bf16 %v1662_v3, %v1662_v3 }
 0x196   : > { %1980 = vst.msk [vmem:[%s3598_s12 + $0x60] sm:$0xf] %vm1955_vm1, %v2745_v10  ;;  %v2746_v57 = vpack.c.bf16 %v1660_v50, %v1660_v50  ;;  %v1211_v15 = vpop.f32.mrb[60].mxu0  ;;  %v2856_v61 = vpop.f32.mrb[60].mxu1 }
 0x197   : > { %1983 = vst.msk [vmem:[%s3598_s12 + $0x6c] sm:$0xf] %vm1955_vm1, %v2748_v31  ;;  %v1212_v43 = vadd.f32 %v3583_v53, %v1211_v15  ;;  %v1213_v35 = vpop.f32.mrb[61].mxu0  ;;  %v1492_v1 = vpop.f32.mrb[61].mxu1 }
 0x198   : > { %1981 = vst.msk [vmem:[%s3598_s12 + $0x64] sm:$0xf] %vm1955_vm1, %v2746_v57  ;;  %v1493_v49 = vadd.f32 %v1492_v1, %v1204_v54  ;;  %v1214_v5 = vpop.f32.mrb[62].mxu0  ;;  %v2857_v14 = vpop.f32.mrb[62].mxu1 }
 0x199   : > { %v1501_v7 = vadd.f32 %v2856_v61, %v1212_v43  ;;  %v1215_v6 = vadd.f32 %v3583_v53, %v1214_v5  ;;  %v1216_v47 = vpop.f32.mrb[63].mxu0  ;;  %v1495_v9 = vpop.f32.mrb[63].mxu1 }
 0x19a   : > { %v1663_v13 = vmax.f32 %v1493_v49, 0.0  ;;  %v1496_v62 = vadd.f32 %v1495_v9, %v1207_v2 }
 0x19b   : > { %v1665_v59 = vmax.f32 %v1501_v7, 0.0  ;;  %v1504_v17 = vadd.f32 %v2857_v14, %v1215_v6 }
 0x19c   : > { %v2749_v51 = vpack.c.bf16 %v1663_v13, %v1663_v13  ;;  %v1664_v39 = vmax.f32 %v1496_v62, 0.0 }
 0x19d   : > { %v2751_v18 = vpack.c.bf16 %v1665_v59, %v1665_v59  ;;  %v1666_v63 = vmax.f32 %v1504_v17, 0.0 }
 0x19e   : > { %1984 = vst.msk [vmem:[%s3598_s12 + $0x70] sm:$0xf] %vm1955_vm1, %v2749_v51  ;;  %v2750_v21 = vpack.c.bf16 %v1664_v39, %v1664_v39  ;;  %v1219_v27 = vpop.f32.mrb[64].mxu0  ;;  %v2860_v19 = vpop.f32.mrb[64].mxu1 }
 0x19f   : > { %1986 = vst.msk [vmem:[%s3598_s12 + $0x78] sm:$0xf] %vm1955_vm1, %v2751_v18  ;;  %v2752_v25 = vpack.c.bf16 %v1666_v63, %v1666_v63  ;;  %v1220_v26 = vadd.f32 %v3583_v53, %v1219_v27  ;;  %v1221_v29 = vpop.f32.mrb[65].mxu0  ;;  %v1508_v55 = vpop.f32.mrb[65].mxu1 }
 0x1a0   : > { %1985 = vst.msk [vmem:[%s3598_s12 + $0x74] sm:$0xf] %vm1955_vm1, %v2750_v21  ;;  %v1222_v34 = vpop.f32.mrb[66].mxu0  ;;  %v2861_v58 = vpop.f32.mrb[66].mxu1 }
 0x1a1   : > { %1987 = vst.msk [vmem:[%s3598_s12 + $0x7c] sm:$0xf] %vm1955_vm1, %v2752_v25  ;;  %v1509_v30 = vadd.f32 %v1508_v55, %v1220_v26  ;;  %v1223_v33 = vadd.f32 %v3583_v53, %v1222_v34  ;;  %v1224_v22 = vpop.f32.mrb[67].mxu0  ;;  %v1511_v37 = vpop.f32.mrb[67].mxu1 }
 0x1a3   : > { %v1667_v11 = vmax.f32 %v1509_v30, 0.0  ;;  %v1512_v38 = vadd.f32 %v1511_v37, %v1223_v33 }
 0x1a5   : > { %v2753_v46 = vpack.c.bf16 %v1667_v11, %v1667_v11  ;;  %v1668_v23 = vmax.f32 %v1512_v38, 0.0 }
 0x1a6   : > { %v1227_v41 = vpop.f32.mrb[68].mxu0  ;;  %v2864_v42 = vpop.f32.mrb[68].mxu1 }
 0x1a7   : > { %1988 = vst.msk [vmem:[%s3598_s12 + $0x80] sm:$0xf] %vm1955_vm1, %v2753_v46  ;;  %v2754_v45 = vpack.c.bf16 %v1668_v23, %v1668_v23  ;;  %v1228_v3 = vadd.f32 %v3583_v53, %v1227_v41  ;;  %v1229_v10 = vpop.f32.mrb[69].mxu0  ;;  %v1524_v50 = vpop.f32.mrb[69].mxu1  ;;  %v1292_v23 = vadd.f32 %v3583_v53, %v3528_v60  ;;  %v1287_v60 = vadd.f32 %v3583_v53, %v3526_v56 }
 0x1a8   : > { %v1230_v31 = vpop.f32.mrb[70].mxu0  ;;  %v2865_v54 = vpop.f32.mrb[70].mxu1 }
 0x1a9   : > { %1989 = vst.msk [vmem:[%s3598_s12 + $0x84] sm:$0xf] %vm1955_vm1, %v2754_v45  ;;  %v1517_v57 = vadd.f32 %v2860_v19, %v1228_v3  ;;  %v1231_v15 = vadd.f32 %v3583_v53, %v1230_v31  ;;  %v1232_v61 = vpop.f32.mrb[71].mxu0  ;;  %v1527_v43 = vpop.f32.mrb[71].mxu1  ;;  %v1284_v3 = vadd.f32 %v3583_v53, %v3522_v52 }
 0x1ab   : > { %v1669_v35 = vmax.f32 %v1517_v57, 0.0  ;;  %v1520_v1 = vadd.f32 %v2861_v58, %v1231_v15 }
 0x1ad   : > { %v2755_v2 = vpack.c.bf16 %v1669_v35, %v1669_v35  ;;  %v1670_v49 = vmax.f32 %v1520_v1, 0.0 }
 0x1ae   : > { %v1235_v5 = vpop.f32.mrb[72].mxu0  ;;  %v3724_v14 = vpop.f32.mrb[72].mxu1 }
 0x1af   : > { %1990 = vst.msk [vmem:[%s3598_s12 + $0x88] sm:$0xf] %vm1955_vm1, %v2755_v2  ;;  %v2756_v7 = vpack.c.bf16 %v1670_v49, %v1670_v49  ;;  %v1236_v6 = vadd.f32 %v3583_v53, %v1235_v5  ;;  %v1237_v47 = vpop.f32.mrb[73].mxu0  ;;  %v1540_v9 = vpop.f32.mrb[73].mxu1 }
 0x1b0   : > { %v1238_v13 = vpop.f32.mrb[74].mxu0  ;;  %v3729_v62 = vpop.f32.mrb[74].mxu1 }
 0x1b1   : > { %1991 = vst.msk [vmem:[%s3598_s12 + $0x8c] sm:$0xf] %vm1955_vm1, %v2756_v7  ;;  %v1525_v59 = vadd.f32 %v1524_v50, %v1236_v6  ;;  %v1239_v17 = vadd.f32 %v3583_v53, %v1238_v13  ;;  %v1240_v51 = vpop.f32.mrb[75].mxu0  ;;  %v1543_v39 = vpop.f32.mrb[75].mxu1 }
 0x1b3   : > { %v1671_v18 = vmax.f32 %v1525_v59, 0.0  ;;  %v1528_v63 = vadd.f32 %v1527_v43, %v1239_v17 }
 0x1b5   : > { %v2757_v21 = vpack.c.bf16 %v1671_v18, %v1671_v18  ;;  %v1672_v27 = vmax.f32 %v1528_v63, 0.0 }
 0x1b6   : > { %v1243_v19 = vpop.f32.mrb[76].mxu0  ;;  %v3734_v25 = vpop.f32.mrb[76].mxu1 }
 0x1b7   : > { %1992 = vst.msk [vmem:[%s3598_s12 + $0x90] sm:$0xf] %vm1955_vm1, %v2757_v21  ;;  %v2758_v26 = vpack.c.bf16 %v1672_v27, %v1672_v27  ;;  %v1244_v29 = vadd.f32 %v3583_v53, %v1243_v19  ;;  %v1245_v55 = vpop.f32.mrb[77].mxu0  ;;  %v3739_v34 = vpop.f32.mrb[77].mxu1  ;;  %v1300_v19 = vadd.f32 %v3583_v53, %v3534_v4  ;;  %v1303_v4 = vadd.f32 %v3583_v53, %v3538_v8 }
 0x1b8   : > { %v1246_v58 = vpop.f32.mrb[78].mxu0  ;;  %v3741_v30 = vpop.f32.mrb[78].mxu1  ;;  %v1311_v55 = vadd.f32 %v3583_v53, %v3546_v16 }
 0x1b9   : > { %1993 = vst.msk [vmem:[%s3598_s12 + $0x94] sm:$0xf] %vm1955_vm1, %v2758_v26  ;;  %v1533_v33 = vadd.f32 %v2864_v42, %v1244_v29  ;;  %v1247_v22 = vadd.f32 %v3583_v53, %v1246_v58  ;;  %v1248_v37 = vpop.f32.mrb[79].mxu0  ;;  %v3746_v11 = vpop.f32.mrb[79].mxu1  ;;  %v1295_v42 = vadd.f32 %v3583_v53, %v3530_v0 }
 0x1bb   : > { %v1673_v38 = vmax.f32 %v1533_v33, 0.0  ;;  %v1536_v46 = vadd.f32 %v2865_v54, %v1247_v22 }
 0x1bd   : > { %v2759_v41 = vpack.c.bf16 %v1673_v38, %v1673_v38  ;;  %v1674_v45 = vmax.f32 %v1536_v46, 0.0 }
 0x1be   : > { %v1251_v10 = vpop.f32.mrb[80].mxu0  ;;  %v2876_v50 = vpop.f32.mrb[80].mxu1 }
 0x1bf   : > { %1994 = vst.msk [vmem:[%s3598_s12 + $0x98] sm:$0xf] %vm1955_vm1, %v2759_v41  ;;  %v2760_v31 = vpack.c.bf16 %v1674_v45, %v1674_v45  ;;  %v1252_v57 = vadd.f32 %v3583_v53, %v1251_v10  ;;  %v1581_v54 = vadd.f32 %v2876_v50, %v1292_v23  ;;  %v1253_v15 = vpop.f32.mrb[81].mxu0  ;;  %v1572_v61 = vpop.f32.mrb[81].mxu1 }
 0x1c0   : > { %v1573_v43 = vadd.f32 %v1572_v61, %v1284_v3  ;;  %v1254_v35 = vpop.f32.mrb[82].mxu0  ;;  %v2877_v1 = vpop.f32.mrb[82].mxu1 }
 0x1c1   : > { %1995 = vst.msk [vmem:[%s3598_s12 + $0x9c] sm:$0xf] %vm1955_vm1, %v2760_v31  ;;  %v1541_v52 = vadd.f32 %v1540_v9, %v1252_v57  ;;  %v1685_v2 = vmax.f32 %v1581_v54, 0.0  ;;  %v1255_v0 = vadd.f32 %v3583_v53, %v1254_v35  ;;  %v1584_v49 = vadd.f32 %v2877_v1, %v1295_v42  ;;  %v1256_v5 = vpop.f32.mrb[83].mxu0  ;;  %v1575_v7 = vpop.f32.mrb[83].mxu1 }
 0x1c2   : > { %v1683_v6 = vmax.f32 %v1573_v43, 0.0  ;;  %v1576_v47 = vadd.f32 %v1575_v7, %v1287_v60  ;;  %v1308_v9 = vadd.f32 %v3583_v53, %v3542_v12 }
 0x1c3   : > { %v1675_v13 = vmax.f32 %v1541_v52, 0.0  ;;  %v2771_v59 = vpack.c.bf16 %v1685_v2, %v1685_v2  ;;  %v1544_v56 = vadd.f32 %v1543_v39, %v1255_v0  ;;  %v1686_v17 = vmax.f32 %v1584_v49, 0.0 }
 0x1c4   : > { %v2769_v51 = vpack.c.bf16 %v1683_v6, %v1683_v6  ;;  %v1684_v18 = vmax.f32 %v1576_v47, 0.0  ;;  %v1316_v52 = vadd.f32 %v3583_v53, %v3550_v20  ;;  %v1327_v49 = vadd.f32 %v3583_v53, %v3562_v32 }
 0x1c5   : > { %v2761_v63 = vpack.c.bf16 %v1675_v13, %v1675_v13  ;;  %2006 = vst.msk [vmem:[%s3598_s12 + $0xc8] sm:$0xf] %vm1955_vm1, %v2771_v59  ;;  %v1676_v21 = vmax.f32 %v1544_v56, 0.0  ;;  %v2772_v27 = vpack.c.bf16 %v1686_v17, %v1686_v17  ;;  %v1319_v20 = vadd.f32 %v3583_v53, %v3554_v24 }
 0x1c6   : > { %2004 = vst.msk [vmem:[%s3598_s12 + $0xc0] sm:$0xf] %vm1955_vm1, %v2769_v51  ;;  %v2770_v26 = vpack.c.bf16 %v1684_v18, %v1684_v18  ;;  %v1259_v39 = vpop.f32.mrb[84].mxu0  ;;  %v2880_v29 = vpop.f32.mrb[84].mxu1 }
 0x1c7   : > { %1996 = vst.msk [vmem:[%s3598_s12 + $0xa0] sm:$0xf] %vm1955_vm1, %v2761_v63  ;;  %v2762_v12 = vpack.c.bf16 %v1676_v21, %v1676_v21  ;;  %2007 = vst.msk [vmem:[%s3598_s12 + $0xcc] sm:$0xf] %vm1955_vm1, %v2772_v27  ;;  %v1260_v58 = vadd.f32 %v3583_v53, %v1259_v39  ;;  %v1597_v33 = vadd.f32 %v2880_v29, %v1308_v9  ;;  %v1261_v22 = vpop.f32.mrb[85].mxu0  ;;  %v1588_v37 = vpop.f32.mrb[85].mxu1 }
 0x1c8   : > { %2005 = vst.msk [vmem:[%s3598_s12 + $0xc4] sm:$0xf] %vm1955_vm1, %v2770_v26  ;;  %v1589_v38 = vadd.f32 %v1588_v37, %v1300_v19  ;;  %v1262_v46 = vpop.f32.mrb[86].mxu0  ;;  %v2881_v23 = vpop.f32.mrb[86].mxu1  ;;  %v1332_v22 = vadd.f32 %v3583_v53, %v3566_v36  ;;  %v1335_v36 = vadd.f32 %v3583_v53, %v3570_v40 }
 0x1c9   : > { %1997 = vst.msk [vmem:[%s3598_s12 + $0xa4] sm:$0xf] %vm1955_vm1, %v2762_v12  ;;  %v1549_v16 = vadd.f32 %v3724_v14, %v1260_v58  ;;  %v1689_v41 = vmax.f32 %v1597_v33, 0.0  ;;  %v1263_v45 = vadd.f32 %v3583_v53, %v1262_v46  ;;  %v1600_v3 = vadd.f32 %v2881_v23, %v1311_v55  ;;  %v1264_v10 = vpop.f32.mrb[87].mxu0  ;;  %v1591_v50 = vpop.f32.mrb[87].mxu1 }
 0x1ca   : > { %v1687_v42 = vmax.f32 %v1589_v38, 0.0  ;;  %v1592_v31 = vadd.f32 %v1591_v50, %v1303_v4  ;;  %v1324_v14 = vadd.f32 %v3583_v53, %v3558_v28  ;;  %v1343_v38 = vadd.f32 %v3583_v53, %v3578_v48 }
 0x1cb   : > { %v1677_v8 = vmax.f32 %v1549_v16, 0.0  ;;  %v2775_v57 = vpack.c.bf16 %v1689_v41, %v1689_v41  ;;  %v1552_v54 = vadd.f32 %v3729_v62, %v1263_v45  ;;  %v1690_v15 = vmax.f32 %v1600_v3, 0.0 }
 0x1cc   : > { %v2773_v61 = vpack.c.bf16 %v1687_v42, %v1687_v42  ;;  %v1688_v60 = vmax.f32 %v1592_v31, 0.0 }
 0x1cd   : > { %v2763_v43 = vpack.c.bf16 %v1677_v8, %v1677_v8  ;;  %2010 = vst.msk [vmem:[%s3598_s12 + $0xd8] sm:$0xf] %vm1955_vm1, %v2775_v57  ;;  %v1678_v35 = vmax.f32 %v1552_v54, 0.0  ;;  %v2776_v1 = vpack.c.bf16 %v1690_v15, %v1690_v15 }
 0x1ce   : > { %2008 = vst.msk [vmem:[%s3598_s12 + $0xd0] sm:$0xf] %vm1955_vm1, %v2773_v61  ;;  %v2774_v2 = vpack.c.bf16 %v1688_v60, %v1688_v60  ;;  %v1267_v62 = vpop.f32.mrb[88].mxu0  ;;  %v2884_v0 = vpop.f32.mrb[88].mxu1 }
 0x1cf   : > { %1998 = vst.msk [vmem:[%s3598_s12 + $0xa8] sm:$0xf] %vm1955_vm1, %v2763_v43  ;;  %v2764_v28 = vpack.c.bf16 %v1678_v35, %v1678_v35  ;;  %2011 = vst.msk [vmem:[%s3598_s12 + $0xdc] sm:$0xf] %vm1955_vm1, %v2776_v1  ;;  %v1268_v5 = vadd.f32 %v3583_v53, %v1267_v62  ;;  %v1613_v7 = vadd.f32 %v2884_v0, %v1324_v14  ;;  %v1269_v6 = vpop.f32.mrb[89].mxu0  ;;  %v1604_v47 = vpop.f32.mrb[89].mxu1 }
 0x1d0   : > { %2009 = vst.msk [vmem:[%s3598_s12 + $0xd4] sm:$0xf] %vm1955_vm1, %v2774_v2  ;;  %v1605_v13 = vadd.f32 %v1604_v47, %v1316_v52  ;;  %v1270_v59 = vpop.f32.mrb[90].mxu0  ;;  %v2885_v56 = vpop.f32.mrb[90].mxu1 }
 0x1d1   : > { %1999 = vst.msk [vmem:[%s3598_s12 + $0xac] sm:$0xf] %vm1955_vm1, %v2764_v28  ;;  %v1557_v32 = vadd.f32 %v3739_v34, %v1268_v5  ;;  %v1693_v17 = vmax.f32 %v1613_v7, 0.0  ;;  %v1271_v51 = vadd.f32 %v3583_v53, %v1270_v59  ;;  %v1616_v18 = vadd.f32 %v2885_v56, %v1327_v49  ;;  %v1272_v9 = vpop.f32.mrb[91].mxu0  ;;  %v1607_v63 = vpop.f32.mrb[91].mxu1 }
 0x1d2   : > { %v1691_v21 = vmax.f32 %v1605_v13, 0.0  ;;  %v1608_v27 = vadd.f32 %v1607_v63, %v1319_v20  ;;  %v1340_v34 = vadd.f32 %v3583_v53, %v3574_v44 }
 0x1d3   : > { %v1679_v24 = vmax.f32 %v1557_v32, 0.0  ;;  %v2779_v19 = vpack.c.bf16 %v1693_v17, %v1693_v17  ;;  %v1560_v26 = vadd.f32 %v3746_v11, %v1271_v51  ;;  %v1694_v39 = vmax.f32 %v1616_v18, 0.0 }
 0x1d4   : > { %v2777_v29 = vpack.c.bf16 %v1691_v21, %v1691_v21  ;;  %v1692_v55 = vmax.f32 %v1608_v27, 0.0 }
 0x1d5   : > { %v2765_v12 = vpack.c.bf16 %v1679_v24, %v1679_v24  ;;  %2014 = vst.msk [vmem:[%s3598_s12 + $0xe8] sm:$0xf] %vm1955_vm1, %v2779_v19  ;;  %v1680_v58 = vmax.f32 %v1560_v26, 0.0  ;;  %v2780_v33 = vpack.c.bf16 %v1694_v39, %v1694_v39 }
 0x1d6   : > { %2012 = vst.msk [vmem:[%s3598_s12 + $0xe0] sm:$0xf] %vm1955_vm1, %v2777_v29  ;;  %v2778_v37 = vpack.c.bf16 %v1692_v55, %v1692_v55  ;;  %v1275_v11 = vpop.f32.mrb[92].mxu0  ;;  %v2888_v4 = vpop.f32.mrb[92].mxu1 }
 0x1d7   : > { %2000 = vst.msk [vmem:[%s3598_s12 + $0xb0] sm:$0xf] %vm1955_vm1, %v2765_v12  ;;  %v2766_v44 = vpack.c.bf16 %v1680_v58, %v1680_v58  ;;  %2015 = vst.msk [vmem:[%s3598_s12 + $0xec] sm:$0xf] %vm1955_vm1, %v2780_v33  ;;  %v1276_v46 = vadd.f32 %v3583_v53, %v1275_v11  ;;  %v1629_v23 = vadd.f32 %v2888_v4, %v1340_v34  ;;  %v1277_v16 = vpop.f32.mrb[93].mxu0  ;;  %v1620_v41 = vpop.f32.mrb[93].mxu1 }
 0x1d8   : > { %2013 = vst.msk [vmem:[%s3598_s12 + $0xe4] sm:$0xf] %vm1955_vm1, %v2778_v37  ;;  %v1621_v45 = vadd.f32 %v1620_v41, %v1332_v22  ;;  %v1278_v3 = vpop.f32.mrb[94].mxu0  ;;  %v2889_v10 = vpop.f32.mrb[94].mxu1 }
 0x1d9   : > { %2001 = vst.msk [vmem:[%s3598_s12 + $0xb4] sm:$0xf] %vm1955_vm1, %v2766_v44  ;;  %v1565_v48 = vadd.f32 %v3734_v25, %v1276_v46  ;;  %v1697_v50 = vmax.f32 %v1629_v23, 0.0  ;;  %v1279_v42 = vadd.f32 %v3583_v53, %v1278_v3  ;;  %v1632_v31 = vadd.f32 %v2889_v10, %v1343_v38  ;;  %v1280_v8 = vpop.f32.mrb[95].mxu0  ;;  %v1623_v57 = vpop.f32.mrb[95].mxu1 }
 0x1da   : > { %v1695_v54 = vmax.f32 %v1621_v45, 0.0  ;;  %v1624_v40 = vadd.f32 %v1623_v57, %v1335_v36 }
 0x1db   : > { %v1681_v15 = vmax.f32 %v1565_v48, 0.0  ;;  %v2783_v61 = vpack.c.bf16 %v1697_v50, %v1697_v50  ;;  %v1568_v60 = vadd.f32 %v3741_v30, %v1279_v42  ;;  %v1698_v14 = vmax.f32 %v1632_v31, 0.0  ;;  %2026 = sbr.rel (!%p3292_p4) target bundleno = 573 (0x23d), region = 36 }
 0x1dc   : > { %v2781_v43 = vpack.c.bf16 %v1695_v54, %v1695_v54  ;;  %v1696_v25 = vmax.f32 %v1624_v40, 0.0 }
 0x1dd   : > { %v2767_v35 = vpack.c.bf16 %v1681_v15, %v1681_v15  ;;  %2018 = vst.msk [vmem:[%s3598_s12 + $0xf8] sm:$0xf] %vm1955_vm1, %v2783_v61  ;;  %v1682_v53 = vmax.f32 %v1568_v60, 0.0  ;;  %v2784_v1 = vpack.c.bf16 %v1698_v14, %v1698_v14 }
 0x1de   : > { %2016 = vst.msk [vmem:[%s3598_s12 + $0xf0] sm:$0xf] %vm1955_vm1, %v2781_v43  ;;  %v2782_v52 = vpack.c.bf16 %v1696_v25, %v1696_v25 }
 0x1df   : > { %2002 = vst.msk [vmem:[%s3598_s12 + $0xb8] sm:$0xf] %vm1955_vm1, %v2767_v35  ;;  %v2768_v2 = vpack.c.bf16 %v1682_v53, %v1682_v53  ;;  %2019 = vst.msk [vmem:[%s3598_s12 + $0xfc] sm:$0xf] %vm1955_vm1, %v2784_v1 }
 0x1e0   : > { %2017 = vst.msk [vmem:[%s3598_s12 + $0xf4] sm:$0xf] %vm1955_vm1, %v2782_v52 }
 0x1e1   : > { %2003 = vst.msk [vmem:[%s3598_s12 + $0xbc] sm:$0xf] %vm1955_vm1, %v2768_v2 }
 0x1e2   : > { %s4057_s27 = smov (!%p2029_p8, %s2028_s27), 64 }
 0x1e3   : > { %s2706_s5 = sshll.u32 %s4057_s27, 6 }
 0x1e4   : > { %p2709_p9 = scmp.eq.s32.totalorder %s2706_s5, 0 }
 0x1e5   : > { %s3859_s6 = sshrl.u32 (!%p2709_p9), %s4057_s27, 6 }
 0x1e6   : > { %2037 = sbr.rel (%p2709_p9) target bundleno = 573 (0x23d), region = 40  ;;  %p2710_p10 = scmp.le.s32.totalorder (!%p2709_p9), %s3859_s6, 0 }
 0x1ed   : > { %2442 = sbr.rel (%p2710_p10) target bundleno = 552 (0x228), region = 112  ;;  %s4050_s15 = smov (!%p2710_p10), %s3853_s4 }
 0x1ee   : > { %s4051_s20 = smov (!%p2710_p10), %s3598_s12  ;;  %s3868_s23 = smov (!%p2710_p10), 0  }
 0x1ef   : > { %s3870_s7 = smov (!%p2710_p10), 0  }
 0x1f4 LB: >> { %v2053_v30 = vld [vmem:[%s3220_s20] sm:$0xf]  ;;  %v2055_v62 = vld [vmem:[%s3220_s20 + $0x4] sm:$0xf]  ;;  %v2057_v0 = vld [vmem:[%s3220_s20 + $0x8] sm:$0xf]  ;;  %s3228_s7 = sphi %s3870_s7, %s2047_s7   ;;  %s3224_s23 = sphi %s3868_s23, %s4052_s23   ;;  %s3220_s20 = sphi %s4051_s20, %s2186_s20   ;;  %s3216_s15 = sphi %s4050_s15, %s2187_s15  }
 0x1f5   : >> { %2054 = vst [vmem:[%s3216_s15] sm:$0xf] %v2053_v30  ;;  %2056 = vst [vmem:[%s3216_s15 + $0x4] sm:$0xf] %v2055_v62  ;;  %v2059_v49 = vld [vmem:[%s3220_s20 + $0xc] sm:$0xf]  ;;  %s2181_s8 = sadd.s32 1, %s3224_s23 }
 0x1f6   : >> { %2058 = vst [vmem:[%s3216_s15 + $0x8] sm:$0xf] %v2057_v0  ;;  %v2061_v28 = vld [vmem:[%s3220_s20 + $0x10] sm:$0xf]  ;;  %v2063_v5 = vld [vmem:[%s3220_s20 + $0x14] sm:$0xf]  ;;  %p2182_p11 = scmp.ge.s32.totalorder %s2181_s8, %s3859_s6 }
 0x1f7   : >> { %2060 = vst [vmem:[%s3216_s15 + $0xc] sm:$0xf] %v2059_v49  ;;  %2062 = vst [vmem:[%s3216_s15 + $0x10] sm:$0xf] %v2061_v28  ;;  %v2065_v7 = vld [vmem:[%s3220_s20 + $0x18] sm:$0xf] }
 0x1f8   : >> { %2064 = vst [vmem:[%s3216_s15 + $0x14] sm:$0xf] %v2063_v5  ;;  %v2067_v6 = vld [vmem:[%s3220_s20 + $0x1c] sm:$0xf]  ;;  %v2069_v47 = vld [vmem:[%s3220_s20 + $0x20] sm:$0xf] }
 0x1f9   : >> { %2066 = vst [vmem:[%s3216_s15 + $0x18] sm:$0xf] %v2065_v7  ;;  %2068 = vst [vmem:[%s3216_s15 + $0x1c] sm:$0xf] %v2067_v6  ;;  %v2071_v20 = vld [vmem:[%s3220_s20 + $0x24] sm:$0xf] }
 0x1fa   : >> { %2070 = vst [vmem:[%s3216_s15 + $0x20] sm:$0xf] %v2069_v47  ;;  %v2073_v13 = vld [vmem:[%s3220_s20 + $0x28] sm:$0xf]  ;;  %v2075_v59 = vld [vmem:[%s3220_s20 + $0x2c] sm:$0xf] }
 0x1fb   : >> { %2072 = vst [vmem:[%s3216_s15 + $0x24] sm:$0xf] %v2071_v20  ;;  %2074 = vst [vmem:[%s3216_s15 + $0x28] sm:$0xf] %v2073_v13  ;;  %v2077_v56 = vld [vmem:[%s3220_s20 + $0x30] sm:$0xf] }
 0x1fc   : >> { %2076 = vst [vmem:[%s3216_s15 + $0x2c] sm:$0xf] %v2075_v59  ;;  %v2079_v32 = vld [vmem:[%s3220_s20 + $0x34] sm:$0xf]  ;;  %v2081_v17 = vld [vmem:[%s3220_s20 + $0x38] sm:$0xf] }
 0x1fd   : >> { %2078 = vst [vmem:[%s3216_s15 + $0x30] sm:$0xf] %v2077_v56  ;;  %2080 = vst [vmem:[%s3216_s15 + $0x34] sm:$0xf] %v2079_v32  ;;  %v2083_v51 = vld [vmem:[%s3220_s20 + $0x3c] sm:$0xf] }
 0x1fe   : >> { %2082 = vst [vmem:[%s3216_s15 + $0x38] sm:$0xf] %v2081_v17  ;;  %v2085_v18 = vld [vmem:[%s3220_s20 + $0x40] sm:$0xf]  ;;  %v2087_v9 = vld [vmem:[%s3220_s20 + $0x44] sm:$0xf] }
 0x1ff   : >> { %2084 = vst [vmem:[%s3216_s15 + $0x3c] sm:$0xf] %v2083_v51  ;;  %2086 = vst [vmem:[%s3216_s15 + $0x40] sm:$0xf] %v2085_v18  ;;  %v2089_v63 = vld [vmem:[%s3220_s20 + $0x48] sm:$0xf] }
 0x200   : >> { %2088 = vst [vmem:[%s3216_s15 + $0x44] sm:$0xf] %v2087_v9  ;;  %v2091_v21 = vld [vmem:[%s3220_s20 + $0x4c] sm:$0xf]  ;;  %v2093_v27 = vld [vmem:[%s3220_s20 + $0x50] sm:$0xf] }
 0x201   : >> { %2090 = vst [vmem:[%s3216_s15 + $0x48] sm:$0xf] %v2089_v63  ;;  %2092 = vst [vmem:[%s3216_s15 + $0x4c] sm:$0xf] %v2091_v21  ;;  %v2095_v24 = vld [vmem:[%s3220_s20 + $0x54] sm:$0xf] }
 0x202   : >> { %2094 = vst [vmem:[%s3216_s15 + $0x50] sm:$0xf] %v2093_v27  ;;  %v2097_v19 = vld [vmem:[%s3220_s20 + $0x58] sm:$0xf]  ;;  %v2099_v26 = vld [vmem:[%s3220_s20 + $0x5c] sm:$0xf] }
 0x203   : >> { %2096 = vst [vmem:[%s3216_s15 + $0x54] sm:$0xf] %v2095_v24  ;;  %2098 = vst [vmem:[%s3216_s15 + $0x58] sm:$0xf] %v2097_v19  ;;  %v2101_v39 = vld [vmem:[%s3220_s20 + $0x60] sm:$0xf] }
 0x204   : >> { %2100 = vst [vmem:[%s3216_s15 + $0x5c] sm:$0xf] %v2099_v26  ;;  %v2103_v29 = vld [vmem:[%s3220_s20 + $0x64] sm:$0xf]  ;;  %v2105_v55 = vld [vmem:[%s3220_s20 + $0x68] sm:$0xf] }
 0x205   : >> { %2102 = vst [vmem:[%s3216_s15 + $0x60] sm:$0xf] %v2101_v39  ;;  %2104 = vst [vmem:[%s3216_s15 + $0x64] sm:$0xf] %v2103_v29  ;;  %v2107_v34 = vld [vmem:[%s3220_s20 + $0x6c] sm:$0xf] }
 0x206   : >> { %2106 = vst [vmem:[%s3216_s15 + $0x68] sm:$0xf] %v2105_v55  ;;  %v2109_v12 = vld [vmem:[%s3220_s20 + $0x70] sm:$0xf]  ;;  %v2111_v58 = vld [vmem:[%s3220_s20 + $0x74] sm:$0xf] }
 0x207   : >> { %2108 = vst [vmem:[%s3216_s15 + $0x6c] sm:$0xf] %v2107_v34  ;;  %2110 = vst [vmem:[%s3216_s15 + $0x70] sm:$0xf] %v2109_v12  ;;  %v2113_v33 = vld [vmem:[%s3220_s20 + $0x78] sm:$0xf] }
 0x208   : >> { %2112 = vst [vmem:[%s3216_s15 + $0x74] sm:$0xf] %v2111_v58  ;;  %v2115_v22 = vld [vmem:[%s3220_s20 + $0x7c] sm:$0xf]  ;;  %v2117_v37 = vld [vmem:[%s3220_s20 + $0x80] sm:$0xf] }
 0x209   : >> { %2114 = vst [vmem:[%s3216_s15 + $0x78] sm:$0xf] %v2113_v33  ;;  %2116 = vst [vmem:[%s3216_s15 + $0x7c] sm:$0xf] %v2115_v22  ;;  %v2119_v11 = vld [vmem:[%s3220_s20 + $0x84] sm:$0xf] }
 0x20a   : >> { %2118 = vst [vmem:[%s3216_s15 + $0x80] sm:$0xf] %v2117_v37  ;;  %v2121_v4 = vld [vmem:[%s3220_s20 + $0x88] sm:$0xf]  ;;  %v2123_v38 = vld [vmem:[%s3220_s20 + $0x8c] sm:$0xf] }
 0x20b   : >> { %2120 = vst [vmem:[%s3216_s15 + $0x84] sm:$0xf] %v2119_v11  ;;  %2122 = vst [vmem:[%s3216_s15 + $0x88] sm:$0xf] %v2121_v4  ;;  %v2125_v44 = vld [vmem:[%s3220_s20 + $0x90] sm:$0xf] }
 0x20c   : >> { %2124 = vst [vmem:[%s3216_s15 + $0x8c] sm:$0xf] %v2123_v38  ;;  %v2127_v46 = vld [vmem:[%s3220_s20 + $0x94] sm:$0xf]  ;;  %v2129_v23 = vld [vmem:[%s3220_s20 + $0x98] sm:$0xf] }
 0x20d   : >> { %2126 = vst [vmem:[%s3216_s15 + $0x90] sm:$0xf] %v2125_v44  ;;  %2128 = vst [vmem:[%s3216_s15 + $0x94] sm:$0xf] %v2127_v46  ;;  %v2131_v16 = vld [vmem:[%s3220_s20 + $0x9c] sm:$0xf] }
 0x20e   : >> { %2130 = vst [vmem:[%s3216_s15 + $0x98] sm:$0xf] %v2129_v23  ;;  %v2133_v41 = vld [vmem:[%s3220_s20 + $0xa0] sm:$0xf]  ;;  %v2135_v36 = vld [vmem:[%s3220_s20 + $0xa4] sm:$0xf] }
 0x20f   : >> { %2132 = vst [vmem:[%s3216_s15 + $0x9c] sm:$0xf] %v2131_v16  ;;  %2134 = vst [vmem:[%s3216_s15 + $0xa0] sm:$0xf] %v2133_v41  ;;  %v2137_v45 = vld [vmem:[%s3220_s20 + $0xa8] sm:$0xf] }
 0x210   : >> { %2136 = vst [vmem:[%s3216_s15 + $0xa4] sm:$0xf] %v2135_v36  ;;  %v2139_v3 = vld [vmem:[%s3220_s20 + $0xac] sm:$0xf]  ;;  %v2141_v10 = vld [vmem:[%s3220_s20 + $0xb0] sm:$0xf] }
 0x211   : >> { %2138 = vst [vmem:[%s3216_s15 + $0xa8] sm:$0xf] %v2137_v45  ;;  %2140 = vst [vmem:[%s3216_s15 + $0xac] sm:$0xf] %v2139_v3  ;;  %v2143_v48 = vld [vmem:[%s3220_s20 + $0xb4] sm:$0xf] }
 0x212   : >> { %2142 = vst [vmem:[%s3216_s15 + $0xb0] sm:$0xf] %v2141_v10  ;;  %v2145_v50 = vld [vmem:[%s3220_s20 + $0xb8] sm:$0xf]  ;;  %v2147_v42 = vld [vmem:[%s3220_s20 + $0xbc] sm:$0xf] }
 0x213   : >> { %2144 = vst [vmem:[%s3216_s15 + $0xb4] sm:$0xf] %v2143_v48  ;;  %2146 = vst [vmem:[%s3216_s15 + $0xb8] sm:$0xf] %v2145_v50  ;;  %v2149_v31 = vld [vmem:[%s3220_s20 + $0xc0] sm:$0xf] }
 0x214   : >> { %2148 = vst [vmem:[%s3216_s15 + $0xbc] sm:$0xf] %v2147_v42  ;;  %v2151_v8 = vld [vmem:[%s3220_s20 + $0xc4] sm:$0xf]  ;;  %v2153_v57 = vld [vmem:[%s3220_s20 + $0xc8] sm:$0xf] }
 0x215   : >> { %2150 = vst [vmem:[%s3216_s15 + $0xc0] sm:$0xf] %v2149_v31  ;;  %2152 = vst [vmem:[%s3216_s15 + $0xc4] sm:$0xf] %v2151_v8  ;;  %v2155_v54 = vld [vmem:[%s3220_s20 + $0xcc] sm:$0xf] }
 0x216   : >> { %2154 = vst [vmem:[%s3216_s15 + $0xc8] sm:$0xf] %v2153_v57  ;;  %v2157_v40 = vld [vmem:[%s3220_s20 + $0xd0] sm:$0xf]  ;;  %v2159_v15 = vld [vmem:[%s3220_s20 + $0xd4] sm:$0xf] }
 0x217   : >> { %2156 = vst [vmem:[%s3216_s15 + $0xcc] sm:$0xf] %v2155_v54  ;;  %2158 = vst [vmem:[%s3216_s15 + $0xd0] sm:$0xf] %v2157_v40  ;;  %v2161_v61 = vld [vmem:[%s3220_s20 + $0xd8] sm:$0xf] }
 0x218   : >> { %2160 = vst [vmem:[%s3216_s15 + $0xd4] sm:$0xf] %v2159_v15  ;;  %v2163_v60 = vld [vmem:[%s3220_s20 + $0xdc] sm:$0xf]  ;;  %v2165_v14 = vld [vmem:[%s3220_s20 + $0xe0] sm:$0xf] }
 0x219   : >> { %2162 = vst [vmem:[%s3216_s15 + $0xd8] sm:$0xf] %v2161_v61  ;;  %2164 = vst [vmem:[%s3216_s15 + $0xdc] sm:$0xf] %v2163_v60  ;;  %v2167_v43 = vld [vmem:[%s3220_s20 + $0xe4] sm:$0xf] }
 0x21a   : >> { %2166 = vst [vmem:[%s3216_s15 + $0xe0] sm:$0xf] %v2165_v14  ;;  %v2169_v25 = vld [vmem:[%s3220_s20 + $0xe8] sm:$0xf]  ;;  %v2171_v35 = vld [vmem:[%s3220_s20 + $0xec] sm:$0xf] }
 0x21b   : >> { %2168 = vst [vmem:[%s3216_s15 + $0xe4] sm:$0xf] %v2167_v43  ;;  %2170 = vst [vmem:[%s3216_s15 + $0xe8] sm:$0xf] %v2169_v25  ;;  %v2173_v53 = vld [vmem:[%s3220_s20 + $0xf0] sm:$0xf] }
 0x21c   : >> { %2172 = vst [vmem:[%s3216_s15 + $0xec] sm:$0xf] %v2171_v35  ;;  %v2175_v1 = vld [vmem:[%s3220_s20 + $0xf4] sm:$0xf]  ;;  %v2177_v52 = vld [vmem:[%s3220_s20 + $0xf8] sm:$0xf] }
 0x21d   : >> { %2174 = vst [vmem:[%s3216_s15 + $0xf0] sm:$0xf] %v2173_v53  ;;  %2176 = vst [vmem:[%s3216_s15 + $0xf4] sm:$0xf] %v2175_v1  ;;  %v2179_v2 = vld [vmem:[%s3220_s20 + $0xfc] sm:$0xf] }
 0x21e   : >> { %2178 = vst [vmem:[%s3216_s15 + $0xf8] sm:$0xf] %v2177_v52  ;;  %2180 = vst [vmem:[%s3216_s15 + $0xfc] sm:$0xf] %v2179_v2  ;;  %s4059_s8 = smov (%p2182_p11, %s2181_s8), 0  ;;  %s2047_s7 = sadd.s32 1, %s3228_s7  }
 0x21f   : >> { %s2711_s10 = sshll.u32 %s4059_s8, 8  ;;  %p2046_p12 = scmp.ge.s32.totalorder %s2047_s7, %s3859_s6 }
 0x220   : >> { %s2186_s20 = scalar_lea.vmem %s3598_s12, %s2711_s10 [#allocation2]   ;;  %s2187_s15 = scalar_lea.vmem %s3853_s4, %s2711_s10  }
 0x221   : >> { %s4052_s23 = smov %s4059_s8  ;;  %2049 = sbr.rel (!%p2046_p12) target bundleno = 500 (0x1f4), region = 118 }
 0x228 PF: > { %s4027_s11 = sand.u32 63, %s4057_s27   ;;  %s2786_s14 = sshll.u32 %s3859_s6, 8 }
 0x229   : > { %s2192_s17 = scalar_lea.vmem %s3598_s12, %s2786_s14 [#allocation2]   ;;  %s2194_s18 = scalar_lea.vmem %s3853_s4, %s2786_s14  }
 0x22a   : > { %p2716_p13 = scmp.le.s32.totalorder %s4027_s11, 0 }
 0x22b   : > { %s3230_s21 = smov (!%p2716_p13), %s2194_s18   ;;  %s3234_s22 = smov (!%p2716_p13), %s2192_s17  }
 0x22c   : > { %2456 = sbr.rel (%p2716_p13) target bundleno = 573 (0x23d), region = 123  ;;  %s3238_s9 = smov (!%p2716_p13), 0  }
 0x22d   : > { %s3242_s24 = smov (!%p2716_p13), 0  }
 0x233 LB: >> { %v2204_v30 = vld [vmem:[%s3236_s22] sm:$0xf]  ;;  %s2206_s25 = sadd.s32 1, %s3240_s9  ;;  %s2198_s24 = sadd.s32 1, %s3244_s24   ;;  %s3244_s24 = sphi %s3242_s24, %s2198_s24   ;;  %s3240_s9 = sphi %s3238_s9, %s3239_s9   ;;  %s3236_s22 = sphi %s3234_s22, %s2211_s22   ;;  %s3232_s21 = sphi %s3230_s21, %s2212_s21  }
 0x234   : >> { %2205 = vst [vmem:[%s3232_s21] sm:$0xf] %v2204_v30  ;;  %p2207_p0 = scmp.ge.s32.totalorder %s2206_s25, %s4027_s11  ;;  %p2197_p1 = scmp.ge.s32.totalorder %s2198_s24, %s4027_s11 }
 0x236   : >> { %s4061_s25 = smov (%p2207_p0, %s2206_s25), 0  ;;  %2200 = sbr.rel (!%p2197_p1) target bundleno = 563 (0x233), region = 129 }
 0x237   : >> { %s2717_s26 = sshll.u32 %s4061_s25, 2  ;;  %s3239_s9 = smov %s4061_s25  }
 0x238   : >> { %s2211_s22 = scalar_lea.vmem %s2192_s17, %s2717_s26 [#allocation2]   ;;  %s2212_s21 = scalar_lea.vmem %s2194_s18, %s2717_s26  }
 0x23d PF: > { %p10_p2 = scmp.ge.s32.totalorder %s3282_s16, 5   ;;  %s4053_s12 = smov %s3208_s13 }
 0x23e   : > { %s4054_s13 = smov %s3290_s19  ;;  %s4055_s14 = smov %s3282_s16 }
 0x23f   :  { %12 = sbr.rel (!%p10_p2) target bundleno = 2 (0x2), region = 140 }

// kernel: net_forward.7
= control target key start
LH: loop header
LB: loop body
LE: loop exit
PB: predicated region body
PF: predicated region fallthrough
CT: control target
= control target key end

     0   :  { %10 = vsyncpa [#allocation5], 0  ;;  %s2079_s18 = smov 0   ;;  %s2081_s19 = smov 0   ;;  %s2299_s0 = inlined_call_operand.vmem [shape: bf16[2,9216], index: 0, kind: input, shape index: {}]   ;;  %s2300_s1 = inlined_call_operand.vmem [shape: bf16[9216,128], index: 1, kind: input, shape index: {}]   ;;  %s2301_s2 = inlined_call_operand.vmem [shape: f32[1,128], index: 2, kind: input, shape index: {}]   ;;  %s2302_s3 = inlined_call_operand.vmem [shape: bf16[128,10], index: 3, kind: input, shape index: {}]   ;;  %s2303_s4 = inlined_call_operand.vmem [shape: f32[1,10], index: 4, kind: input, shape index: {}]   ;;  %s2304_s5 = inlined_call_operand.hbm [shape: f32[2,10], index: 5, kind: output, shape index: {}]  }
   0x1   :  { %s2083_s20 = smov 0   ;;  %s2085_s21 = smov 0  }
   0x2   :  { %s2087_s22 = smov 0  }
   0x3 LB: > { %s1477_s23 = sadd.s32 4294967295, %s2022_s22   ;;  %s25_s24 = sadd.s32 1, %s2018_s21  ;;  %s2022_s22 = sphi %s2087_s22, %s16_s22   ;;  %s2018_s21 = sphi %s2085_s21, %s2308_s21   ;;  %s2014_s20 = sphi %s2083_s20, %s2307_s20   ;;  %s2010_s19 = sphi %s2081_s19, %s2306_s19   ;;  %s2006_s18 = sphi %s2079_s18, %s2305_s18  }
   0x4   : > { %p26_p0 = scmp.ge.s32.totalorder %s25_s24, 8  ;;  %p44_p1 = scmp.ne.s32.totalorder %s2010_s19, %s2006_s18 }
   0x5   : > { %p45_p2 = scmp.eq.s32.totalorder %s2022_s22, 0  ;;  %s37_s26 = sadd.s32 1, %s2010_s19 }
   0x6   : > { %s2310_s24 = smov (%p26_p0, %s25_s24), 0  ;;  %p1479_p5 = scmp.ge.s32.totalorder %s2022_s22, 8 }
   0x7   : > { %p46_p3 = por %p45_p2, %p44_p1  ;;  %s33_s25 = ssub.s32 %s2018_s21, %s2310_s24 }
   0x8   : > { %p35_p4 = scmp.eq.s32.totalorder %s33_s25, 0  ;;  %194 = sbr.rel (%p1479_p5) target bundleno = 42 (0x2a), region = 28 }
   0xa   : > { %s2115_s27 = scalar_select %p35_p4, %s2010_s19, %s37_s26  }
   0xf   : > { %197 = sbr.rel (!%p46_p3) target bundleno = 42 (0x2a), region = 32  ;;  %s199_s28 = sand.u32 (%p46_p3), 1, %s2010_s19  }
  0x10   : > { %s203_s29 = smul.u32 (%p46_p3), 9, %s2018_s21  ;;  %s2024_s12 = smov (%p46_p3), 0  }
  0x11   : > { %s1716_s30 = smul.u32 (%p46_p3), 36, %s199_s28 }
  0x12   : > { %s210_s8 = scalar_lea.vmem (%p46_p3), %s2299_s0, %s203_s29  }
  0x13   : > { %s216_s9 = scalar_lea.vmem (%p46_p3), %s210_s8, 8   ;;  %s201_s10 = scalar_lea.vmem (%p46_p3), [#allocation3], %s1716_s30  }
  0x14   : > { %s217_s11 = scalar_lea.vmem (%p46_p3), %s201_s10, 8 [#allocation3]  }
  0x16 LB: >> { %v227_v0 = vld [vmem:[%s210_s8] sm:$0xff]  ;;  %s221_s12 = sadd.s32 1, %s2026_s12   ;;  %s2026_s12 = sphi %s2024_s12, %s221_s12  }
  0x17   : >> { %228 = vst [vmem:[%s201_s10] sm:$0xff] %v227_v0  ;;  %p220_p6 = scmp.ge.s32.totalorder %s221_s12, 1 }
  0x18   : > { %s2028_s13 = smov (%p220_p6), %s217_s11   ;;  %s2032_s14 = smov (%p220_p6), %s216_s9  }
  0x19   : > { %223 = sbr.rel (!%p220_p6) target bundleno = 22 (0x16), region = 112  ;;  %s2036_s15 = smov (%p220_p6), 0  }
  0x20 LB: >> { %v246_v1 = vld [vmem:[%s2034_s14] sm:$0x1]  ;;  %s240_s15 = sadd.s32 1, %s2038_s15   ;;  %s2033_s14 = smov %s216_s9   ;;  %s2038_s15 = sphi %s2036_s15, %s240_s15   ;;  %s2034_s14 = sphi %s2032_s14, %s2033_s14   ;;  %s2030_s13 = sphi %s2028_s13, %s2029_s13  }
  0x21   : >> { %247 = vst [vmem:[%s2030_s13] sm:$0x1] %v246_v1  ;;  %p239_p7 = scmp.ge.s32.totalorder %s240_s15, 1  ;;  %s2029_s13 = smov %s217_s11  }
  0x23   : > { %242 = sbr.rel (!%p239_p7) target bundleno = 32 (0x20), region = 123 }
  0x2a PF: > { %p1480_p8 = scmp.ge.s32.totalorder %s2022_s22, 1  ;;  %p266_p9 = scmp.lt.s32.totalorder %s2022_s22, 9 }
  0x2c   : > { %p267_p10 = pnand %p1480_p8, %p266_p9 }
  0x2d   : > { %s273_s16 = sand.u32 (!%p267_p10), 1, %s2006_s18   ;;  %s305_s17 = smul.u32 (!%p267_p10), 144, %s2014_s20 }
  0x2e   : > { %270 = sbr.rel (%p267_p10) target bundleno = 953 (0x3b9), region = 62  ;;  %p1482_p12 = scmp.ne.s32.totalorder (!%p267_p10), %s2014_s20, 0 }
  0x2f   : > { %s1717_s25 = smul.u32 (!%p267_p10), 36, %s273_s16  ;;  %p306_p11 = scmp.lt.s32.totalorder (!%p267_p10), %s305_s17, 1151 }
  0x31   : > { %s2132_s6 = scalar_lea.vmem (!%p267_p10), [#allocation3], %s1717_s25 }
  0x35   : > { %s2312_s17 = smov (!%p306_p11, %s305_s17), 1151  ;;  %318 = sbr.rel (%p1482_p12) target bundleno = 60 (0x3c), region = 70 }
  0x36   : > { %s1481_s26 = sshll.u32 %s2312_s17, 2  ;;  %v2040_v2 = vmov (!%p1482_p12), 0.0  }
  0x37   : > { %s2130_s30 = scalar_lea.vmem %s2300_s1, %s1481_s26  ;;  %319 = vst [vmem:[#allocation2] sm:$0xff] (!%p1482_p12), %v2040_v2 }
  0x3c PF: > { %v1834_v3 = vld [vmem:[%s2130_s30 + $0x40] sm:$0xff]   ;;  %v1838_v7 = vld [vmem:[%s2130_s30 + $0x48] sm:$0xff]   ;;  %v1842_v11 = vld [vmem:[%s2130_s30 + $0x50] sm:$0xff]   ;;  %v488_v33 = vlaneseq  ;;  %v2041_v38 = vmov 1966171168   ;;  %vm2043_vm0 = vmmov 0  }
  0x3d   : > { %v1835_v4 = vld [vmem:[%s2130_s30 + $0xc0] sm:$0xff]   ;;  %1570 = vmatprep.subr.bf16.mxu0 %v1834_v3  ;;  %v1839_v8 = vld [vmem:[%s2130_s30 + $0xc8] sm:$0xff]   ;;  %v1843_v12 = vld [vmem:[%s2130_s30 + $0xd0] sm:$0xff]   ;;  %v486_v39 = vunpack.c.l.s4 %v2041_v38  ;;  %p1555_p13 = scmp.ne.s32.totalorder %s2014_s20, 7 }
  0x3e   : > { %v1836_v5 = vld [vmem:[%s2130_s30] sm:$0xff]   ;;  %1592 = vmatprep.subr.bf16.mxu1 %v1835_v4  ;;  %v1840_v9 = vld [vmem:[%s2130_s30 + $0x8] sm:$0xff]   ;;  %v1844_v13 = vld [vmem:[%s2130_s30 + $0x10] sm:$0xff]   ;;  %v489_v40 = vshrl.u32 %v488_v33, 7  ;;  %vm2045_vm1 = vmmov (!%p1555_p13), 0   ;;  %vm1342_vm2 = vcmask (!%p1555_p13), 80896  }
  0x3f   : > { %v1837_v6 = vld [vmem:[%s2130_s30 + $0x80] sm:$0xff]   ;;  %1571 = vmatpush3.bf16.msra.mxu0 %v1836_v5  ;;  %v1841_v10 = vld [vmem:[%s2130_s30 + $0x88] sm:$0xff]   ;;  %v1845_v14 = vld [vmem:[%s2130_s30 + $0x90] sm:$0xff]   ;;  %v487_v43 = vunpack.c.0.s8 %v486_v39 }
  0x40   : > { %1593 = vmatpush3.bf16.msra.mxu1 %v1837_v6  ;;  %1572 = vmatprep.subr.bf16.mxu0 %v1838_v7  ;;  %v1846_v15 = vld [vmem:[%s2130_s30 + $0x58] sm:$0xff]   ;;  %v1850_v19 = vld [vmem:[%s2130_s30 + $0x60] sm:$0xff]   ;;  %v1854_v23 = vld [vmem:[%s2130_s30 + $0x68] sm:$0xff]  }
  0x41   : > { %1594 = vmatprep.subr.bf16.mxu1 %v1839_v8  ;;  %v1847_v16 = vld [vmem:[%s2130_s30 + $0xd8] sm:$0xff]   ;;  %v1851_v20 = vld [vmem:[%s2130_s30 + $0xe0] sm:$0xff]   ;;  %v1855_v24 = vld [vmem:[%s2130_s30 + $0xe8] sm:$0xff]   ;;  %v2172_v45 = vsub.s32 %v487_v43, %v489_v40 }
  0x42   : > { %v1848_v17 = vld [vmem:[%s2130_s30 + $0x18] sm:$0xff]   ;;  %v1852_v21 = vld [vmem:[%s2130_s30 + $0x20] sm:$0xff]   ;;  %v1856_v25 = vld [vmem:[%s2130_s30 + $0x28] sm:$0xff]  }
  0x43   : > { %1573 = vmatpush3.bf16.msra.mxu0 %v1840_v9  ;;  %v1849_v18 = vld [vmem:[%s2130_s30 + $0x98] sm:$0xff]   ;;  %v1853_v22 = vld [vmem:[%s2130_s30 + $0xa0] sm:$0xff]   ;;  %v1857_v26 = vld [vmem:[%s2130_s30 + $0xa8] sm:$0xff]  }
  0x44   : > { %1595 = vmatpush3.bf16.msra.mxu1 %v1841_v10  ;;  %1574 = vmatprep.subr.bf16.mxu0 %v1842_v11  ;;  %v1858_v27 = vld [vmem:[%s2130_s30 + $0x70] sm:$0xff]   ;;  %v1862_v31 = vld [vmem:[%s2130_s30 + $0x78] sm:$0xff]   ;;  %v1872_v44 = vld [vmem:[%s2130_s30 + $0x140] sm:$0xff]  }
  0x45   : > { %1596 = vmatprep.subr.bf16.mxu1 %v1843_v12  ;;  %v1859_v28 = vld [vmem:[%s2130_s30 + $0xf0] sm:$0xff]   ;;  %v1863_v32 = vld [vmem:[%s2130_s30 + $0xf8] sm:$0xff]   ;;  %v1874_v46 = vld [vmem:[%s2130_s30 + $0x1c0] sm:$0xff]  }
  0x46   : > { %v1860_v29 = vld [vmem:[%s2130_s30 + $0x30] sm:$0xff]   ;;  %v1864_v34 = vld [vmem:[%s2130_s30 + $0x38] sm:$0xff]   ;;  %v1873_v56 = vld [vmem:[%s2130_s30 + $0x100] sm:$0xff]  }
  0x47   : > { %1575 = vmatpush3.bf16.msra.mxu0 %v1844_v13  ;;  %v1861_v30 = vld [vmem:[%s2130_s30 + $0xb0] sm:$0xff]   ;;  %v1865_v35 = vld [vmem:[%s2130_s30 + $0xb8] sm:$0xff]   ;;  %v1876_v58 = vld [vmem:[%s2130_s30 + $0x148] sm:$0xff]  }
  0x48   : > { %1597 = vmatpush3.bf16.msra.mxu1 %v1845_v14  ;;  %1576 = vmatprep.subr.bf16.mxu0 %v1846_v15  ;;  %v1866_v36 = vld [vmem:[%s2132_s6] ss:$9 sps:$4 sm:$0xff]   ;;  %v1868_v37 = vld [vmem:[%s2132_s6 + $0x4] ss:$9 sps:$4 sm:$0xff]   ;;  %v1869_v41 = vld [vmem:[%s2132_s6 + $0x12] ss:$9 sps:$4 sm:$0xff]  }
  0x49   : > { %1598 = vmatprep.subr.bf16.mxu1 %v1847_v16  ;;  %v1871_v42 = vld [vmem:[%s2132_s6 + $0x16] ss:$9 sps:$4 sm:$0xff]   ;;  %v491_v47 = vrot.slane %v1866_v36, %v2172_v45  ;;  %v505_v48 = vrot.slane %v1869_v41, %v2172_v45  ;;  %v2178_v49 = vrot.slane %v1868_v37, %v2172_v45  ;;  %v1880_v1 = vld [vmem:[%s2130_s30 + $0x150] sm:$0xff]   ;;  %v1913_v36 = vld [vmem:[%s2132_s6 + $0x1a] ss:$9 sps:$4 sm:$0x11]  }
  0x4a   : > { %v2181_v50 = vrot.slane %v1871_v42, %v2172_v45  ;;  %v1875_v61 = vld [vmem:[%s2130_s30 + $0x180] sm:$0xff]   ;;  %v1878_v62 = vld [vmem:[%s2130_s30 + $0x1c8] sm:$0xff]   ;;  %v1882_v3 = vld [vmem:[%s2130_s30 + $0x1d0] sm:$0xff]   ;;  %v564_v39 = vrot.slane %v1913_v36, %v2172_v45 }
  0x4b   : > { %1577 = vmatpush3.bf16.msra.mxu0 %v1848_v17  ;;  %v514_v51 = vcombine.high %v491_v47, %v505_v48  ;;  %v513_v52 = vcombine.low %v491_v47, %v505_v48  ;;  %v1877_v0 = vld [vmem:[%s2130_s30 + $0x108] sm:$0xff]   ;;  %v1881_v4 = vld [vmem:[%s2130_s30 + $0x110] sm:$0xff]   ;;  %v1884_v5 = vld [vmem:[%s2130_s30 + $0x158] sm:$0xff]  }
  0x4c   : > { %1599 = vmatpush3.bf16.msra.mxu1 %v1849_v18  ;;  %1578 = vmatprep.subr.bf16.mxu0 %v1850_v19  ;;  %v516_v53 = vcombine.high %v2178_v49, %v2181_v50  ;;  %v1879_v2 = vld [vmem:[%s2130_s30 + $0x188] sm:$0xff]   ;;  %v1883_v6 = vld [vmem:[%s2130_s30 + $0x190] sm:$0xff]   ;;  %v1886_v7 = vld [vmem:[%s2130_s30 + $0x1d8] sm:$0xff]  }
  0x4d   : > { %1600 = vmatprep.subr.bf16.mxu1 %v1851_v20  ;;  %v537_v54 = vrot.slane %v514_v51, %v2172_v45  ;;  %v523_v55 = vrot.slane %v513_v52, %v2172_v45  ;;  %v1885_v8 = vld [vmem:[%s2130_s30 + $0x118] sm:$0xff]   ;;  %v1888_v9 = vld [vmem:[%s2130_s30 + $0x160] sm:$0xff]   ;;  %v1892_v13 = vld [vmem:[%s2130_s30 + $0x168] sm:$0xff]  }
  0x4e   : > { %v544_v57 = vrot.slane %v516_v53, %v2172_v45  ;;  %v1887_v10 = vld [vmem:[%s2130_s30 + $0x198] sm:$0xff]   ;;  %v1890_v11 = vld [vmem:[%s2130_s30 + $0x1e0] sm:$0xff]   ;;  %v1894_v15 = vld [vmem:[%s2130_s30 + $0x1e8] sm:$0xff]  }
  0x4f   : > { %1579 = vmatpush3.bf16.msra.mxu0 %v1852_v21  ;;  %1046 = vmatprep.mubr.bf16.mxu0 %v537_v54  ;;  %v547_v59 = vcombine.high %v537_v54, %v537_v54  ;;  %v545_v60 = vcombine.high %v523_v55, %v523_v55  ;;  %v1889_v12 = vld [vmem:[%s2130_s30 + $0x120] sm:$0xff]   ;;  %v1893_v16 = vld [vmem:[%s2130_s30 + $0x128] sm:$0xff]   ;;  %v1896_v17 = vld [vmem:[%s2130_s30 + $0x170] sm:$0xff]  }
  0x50   : > { %1601 = vmatpush3.bf16.msra.mxu1 %v1853_v22  ;;  %1580 = vmatprep.subr.bf16.mxu0 %v1854_v23  ;;  %v548_v63 = vcombine.high %v544_v57, %v544_v57  ;;  %v1891_v14 = vld [vmem:[%s2130_s30 + $0x1a0] sm:$0xff]   ;;  %v1895_v18 = vld [vmem:[%s2130_s30 + $0x1a8] sm:$0xff]   ;;  %v1898_v19 = vld [vmem:[%s2130_s30 + $0x1f0] sm:$0xff]   ;;  %v515_v22 = vcombine.low %v2178_v49, %v2181_v50 }
  0x51   : > { %1602 = vmatprep.subr.bf16.mxu1 %v1855_v24  ;;  %1086 = vmatprep.mubr.bf16.mxu1 %v547_v59  ;;  %v1897_v20 = vld [vmem:[%s2130_s30 + $0x130] sm:$0xff]   ;;  %v1900_v21 = vld [vmem:[%s2130_s30 + $0x178] sm:$0xff]   ;;  %v1909_v37 = vld [vmem:[%s2130_s30 + $0x228] sm:$0xff]  }
  0x52   : > { %v1899_v23 = vld [vmem:[%s2130_s30 + $0x1b0] sm:$0xff]   ;;  %v1902_v24 = vld [vmem:[%s2130_s30 + $0x1f8] sm:$0xff]  }
  0x53   : > { %1581 = vmatpush3.bf16.msra.mxu0 %v1856_v25  ;;  %v1901_v25 = vld [vmem:[%s2130_s30 + $0x138] sm:$0xff]   ;;  %v1910_v40 = vld [vmem:[%s2130_s30 + $0x230] sm:$0xff]  }
  0x54   : > { %1603 = vmatpush3.bf16.msra.mxu1 %v1857_v26  ;;  %1582 = vmatprep.subr.bf16.mxu0 %v1858_v27  ;;  %v530_v26 = vrot.slane %v515_v22, %v2172_v45  ;;  %v1903_v27 = vld [vmem:[%s2130_s30 + $0x1b8] sm:$0xff]  }
  0x55   : > { %1604 = vmatprep.subr.bf16.mxu1 %v1859_v28  ;;  %v1904_v28 = vld [vmem:[%s2130_s30 + $0x200] sm:$0xff]   ;;  %v1907_v33 = vld [vmem:[%s2130_s30 + $0x218] sm:$0xff]  }
  0x56   : > { %v1911_v42 = vld [vmem:[%s2130_s30 + $0x238] sm:$0xff]  }
  0x57   : > { %1583 = vmatpush3.bf16.msra.mxu0 %v1860_v29  ;;  %v2042_v29 = vmov 0.0   ;;  %v1921_v22 = vld [vmem:[%s2302_s3 + $0x38] sm:$0xff] (!%p1555_p13)  }
  0x58   : > { %1605 = vmatpush3.bf16.msra.mxu1 %v1861_v30  ;;  %1584 = vmatprep.subr.bf16.mxu0 %v1862_v31  ;;  %v546_v30 = vcombine.high %v530_v26, %v530_v26  ;;  %v1905_v31 = vld [vmem:[%s2130_s30 + $0x208] sm:$0xff]  }
  0x59   : > { %1606 = vmatprep.subr.bf16.mxu1 %v1863_v32  ;;  %v1906_v32 = vld [vmem:[%s2130_s30 + $0x210] sm:$0xff]  }
  0x5b   : > { %1585 = vmatpush3.bf16.msra.mxu0 %v1864_v34  ;;  %v1908_v34 = vld [vmem:[%s2130_s30 + $0x220] sm:$0xff]  }
  0x5c   : > { %1607 = vmatpush3.bf16.msra.mxu1 %v1865_v35  ;;  %1614 = vmatprep.subr.bf16.mxu0 %v1872_v44  ;;  %v1912_v35 = vld [vmem:[%s2132_s6 + $0x8] ss:$9 sps:$4 sm:$0x11]  }
  0x5d   : > { %1636 = vmatprep.subr.bf16.mxu1 %v1874_v46  ;;  %v557_v38 = vrot.slane %v1912_v35, %v2172_v45 }
  0x5e   : > { %1047 = vmatmul.mubr.bf16.vlgmr.msra.gmra.mrb[0].mxu0 %v523_v55 }
  0x5f   : > { %1615 = vmatpush3.bf16.msra.mxu0 %v1873_v56  ;;  %1087 = vmatmul.mubr.bf16.vlgmr.msra.gmra.mrb[0].mxu1 %v545_v60  ;;  %v565_v41 = vcombine.low %v557_v38, %v564_v39 }
  0x60   : > { %1616 = vmatprep.subr.bf16.mxu0 %v1876_v58  ;;  %1637 = vmatpush3.bf16.msra.mxu1 %v1875_v61 }
  0x61   : > { %1126 = vmatprep.mubr.bf16.mxu0 %v544_v57  ;;  %1638 = vmatprep.subr.bf16.mxu1 %v1878_v62  ;;  %v572_v43 = vrot.slane %v565_v41, %v2172_v45 }
  0x62   : > { %1166 = vmatprep.mubr.bf16.mxu1 %v548_v63 }
  0x63   : > { %1617 = vmatpush3.bf16.msra.mxu0 %v1877_v0 }
  0x64   : > { %1618 = vmatprep.subr.bf16.mxu0 %v1880_v1  ;;  %1639 = vmatpush3.bf16.msra.mxu1 %v1879_v2 }
  0x65   : > { %1640 = vmatprep.subr.bf16.mxu1 %v1882_v3  ;;  %v320_v3 = vld [vmem:[#allocation2] sm:$0xff] }
  0x67   : > { %1619 = vmatpush3.bf16.msra.mxu0 %v1881_v4 }
  0x68   : > { %1620 = vmatprep.subr.bf16.mxu0 %v1884_v5  ;;  %1641 = vmatpush3.bf16.msra.mxu1 %v1883_v6 }
  0x69   : > { %1642 = vmatprep.subr.bf16.mxu1 %v1886_v7 }
  0x6b   : > { %1621 = vmatpush3.bf16.msra.mxu0 %v1885_v8 }
  0x6c   : > { %1622 = vmatprep.subr.bf16.mxu0 %v1888_v9  ;;  %1643 = vmatpush3.bf16.msra.mxu1 %v1887_v10  ;;  %v1914_v10 = vld [vmem:[%s2302_s3] sm:$0xff] (!%p1555_p13)  }
  0x6d   : > { %1644 = vmatprep.subr.bf16.mxu1 %v1890_v11  ;;  %v2044_v11 = vmov (!%p1555_p13), 0.0  }
  0x6f   : > { %1623 = vmatpush3.bf16.msra.mxu0 %v1889_v12  ;;  %v1915_v12 = vld [vmem:[%s2302_s3 + $0x8] sm:$0xff] (!%p1555_p13)  }
  0x70   : > { %1624 = vmatprep.subr.bf16.mxu0 %v1892_v13  ;;  %1645 = vmatpush3.bf16.msra.mxu1 %v1891_v14  ;;  %v1916_v13 = vld [vmem:[%s2302_s3 + $0x10] sm:$0xff] (!%p1555_p13)   ;;  %v1917_v14 = vld [vmem:[%s2302_s3 + $0x18] sm:$0xff] (!%p1555_p13)  }
  0x71   : > { %1646 = vmatprep.subr.bf16.mxu1 %v1894_v15  ;;  %v1918_v15 = vld [vmem:[%s2302_s3 + $0x20] sm:$0xff] (!%p1555_p13)  }
  0x73   : > { %1625 = vmatpush3.bf16.msra.mxu0 %v1893_v16  ;;  %v1919_v16 = vld [vmem:[%s2302_s3 + $0x28] sm:$0xff] (!%p1555_p13)  }
  0x74   : > { %1626 = vmatprep.subr.bf16.mxu0 %v1896_v17  ;;  %1647 = vmatpush3.bf16.msra.mxu1 %v1895_v18  ;;  %v1556_v18 = vld [vmem:[%s2301_s2] ss:$0 sm:$0xff] (!%p1555_p13) }
  0x75   : > { %1648 = vmatprep.subr.bf16.mxu1 %v1898_v19 }
  0x77   : > { %1627 = vmatpush3.bf16.msra.mxu0 %v1897_v20  ;;  %v1920_v20 = vld [vmem:[%s2302_s3 + $0x30] sm:$0xff] (!%p1555_p13)  }
  0x78   : > { %1628 = vmatprep.subr.bf16.mxu0 %v1900_v21  ;;  %1649 = vmatpush3.bf16.msra.mxu1 %v1899_v23 }
  0x79   : > { %1650 = vmatprep.subr.bf16.mxu1 %v1902_v24  ;;  %v1557_v24 = vld [vmem:[%s2303_s4] ss:$0 sm:$0xff] (!%p1555_p13) }
  0x7b   : > { %1629 = vmatpush3.bf16.msra.mxu0 %v1901_v25 }
  0x7c   : > { %1676 = vmatprep.subr.bf16.mxu0 %v2042_v29  ;;  %1651 = vmatpush3.bf16.msra.mxu1 %v1903_v27 }
  0x7e   : > { %1127 = vmatmul.mubr.bf16.vlgmr.msra.gmra.mrb[4].mxu0 %v530_v26 }
  0x7f   : > { %1677 = vmatpush3.bf16.msra.mxu0 %v1904_v28  ;;  %1692 = vmatprep.mubr.msk.bf16.mxu0 %vm2043_vm0, %v2042_v29 }
  0x80   : > { %1167 = vmatmul.mubr.bf16.vlgmr.msra.gmra.mrb[4].mxu1 %v546_v30  ;;  %1678 = vmatprep.subr.bf16.mxu0 %v2042_v29 }
  0x83   : > { %1679 = vmatpush3.bf16.msra.mxu0 %v1905_v31 }
  0x84   : > { %1680 = vmatprep.subr.bf16.mxu0 %v2042_v29 }
  0x87   : > { %1681 = vmatpush3.bf16.msra.mxu0 %v1906_v32 }
  0x88   : > { %1682 = vmatprep.subr.bf16.mxu0 %v2042_v29 }
  0x8b   : > { %1683 = vmatpush3.bf16.msra.mxu0 %v1907_v33 }
  0x8c   : > { %1684 = vmatprep.subr.bf16.mxu0 %v2042_v29 }
  0x8f   : > { %1685 = vmatpush3.bf16.msra.mxu0 %v1908_v34 }
  0x90   : > { %1686 = vmatprep.subr.bf16.mxu0 %v2042_v29 }
  0x93   : > { %1687 = vmatpush3.bf16.msra.mxu0 %v1909_v37 }
  0x94   : > { %1688 = vmatprep.subr.bf16.mxu0 %v2042_v29 }
  0x97   : > { %1689 = vmatpush3.bf16.msra.mxu0 %v1910_v40 }
  0x98   : > { %1690 = vmatprep.subr.bf16.mxu0 %v2042_v29 }
  0x9b   : > { %1691 = vmatpush3.bf16.msra.mxu0 %v1911_v42 }
  0x9c   : > { %1696 = vmatprep.subr.bf16.mxu0 (!%p1555_p13), %v2044_v11 }
  0x9e   : > { %1693 = vmatmul.mubr.bf16.vlgmr.msra.gmra.mrb[8].mxu0 %v572_v43 }
  0x9f   : > { %1697 = vmatpush3.bf16.msra.mxu0 (!%p1555_p13), %v1914_v10  ;;  %1712 = vmatprep.mubr.msk.bf16.mxu0 (!%p1555_p13), %vm2045_vm1, %v2044_v11 }
  0xa0   : > { %1698 = vmatprep.subr.bf16.mxu0 (!%p1555_p13), %v2044_v11 }
  0xa3   : > { %1699 = vmatpush3.bf16.msra.mxu0 (!%p1555_p13), %v1915_v12 }
  0xa4   : > { %1700 = vmatprep.subr.bf16.mxu0 (!%p1555_p13), %v2044_v11 }
  0xa7   : > { %1701 = vmatpush3.bf16.msra.mxu0 (!%p1555_p13), %v1916_v13 }
  0xa8   : > { %1702 = vmatprep.subr.bf16.mxu0 (!%p1555_p13), %v2044_v11 }
  0xab   : > { %1703 = vmatpush3.bf16.msra.mxu0 (!%p1555_p13), %v1917_v14 }
  0xac   : > { %1704 = vmatprep.subr.bf16.mxu0 (!%p1555_p13), %v2044_v11 }
  0xaf   : > { %1705 = vmatpush3.bf16.msra.mxu0 (!%p1555_p13), %v1918_v15 }
  0xb0   : > { %1706 = vmatprep.subr.bf16.mxu0 (!%p1555_p13), %v2044_v11 }
  0xb3   : > { %1707 = vmatpush3.bf16.msra.mxu0 (!%p1555_p13), %v1919_v16 }
  0xb4   : > { %1708 = vmatprep.subr.bf16.mxu0 (!%p1555_p13), %v2044_v11 }
  0xb7   : > { %1709 = vmatpush3.bf16.msra.mxu0 (!%p1555_p13), %v1920_v20 }
  0xb8   : > { %1710 = vmatprep.subr.bf16.mxu0 (!%p1555_p13), %v2044_v11 }
  0xbb   : > { %1711 = vmatpush3.bf16.msra.mxu0 (!%p1555_p13), %v1921_v22 }
 0x131   : > { %v1586_v44 = vpop.f32.mrb[0].mxu0 }
 0x132   : > { %v1587_v46 = vpop.f32.mrb[1].mxu0  ;;  %v1608_v47 = vpop.f32.mrb[0].mxu1 }
 0x133   : > { %v1588_v48 = vadd.f32 %v1587_v46, %v1586_v44  ;;  %v1589_v49 = vpop.f32.mrb[2].mxu0  ;;  %v1609_v50 = vpop.f32.mrb[1].mxu1 }
 0x134   : > { %v1590_v51 = vpop.f32.mrb[3].mxu0  ;;  %v1610_v52 = vadd.f32 %v1609_v50, %v1608_v47  ;;  %v1611_v53 = vpop.f32.mrb[2].mxu1 }
 0x135   : > { %v1612_v54 = vpop.f32.mrb[3].mxu1 }
 0x136   : > { %v1089_v55 = vadd.f32 %v1610_v52, %v1588_v48 }
 0x151   : > { %v1630_v56 = vpop.f32.mrb[4].mxu0 }
 0x152   : > { %v1631_v57 = vpop.f32.mrb[5].mxu0 }
 0x153   : > { %v1632_v58 = vadd.f32 %v1631_v57, %v1630_v56  ;;  %v1633_v59 = vpop.f32.mrb[6].mxu0  ;;  %v1652_v60 = vpop.f32.mrb[4].mxu1 }
 0x154   : > { %v1634_v61 = vpop.f32.mrb[7].mxu0  ;;  %v1653_v45 = vpop.f32.mrb[5].mxu1 }
 0x155   : > { %v1129_v62 = vadd.f32 %v1632_v58, %v1089_v55  ;;  %v1654_v63 = vadd.f32 %v1653_v45, %v1652_v60  ;;  %v1655_v0 = vpop.f32.mrb[6].mxu1 }
 0x156   : > { %v1656_v1 = vpop.f32.mrb[7].mxu1 }
 0x157   : > { %v1169_v2 = vadd.f32 %v1654_v63, %v1129_v62 }
 0x170   : > { %1219 = sbr.rel (%p1555_p13) target bundleno = 921 (0x399), region = 74 }
 0x171   : > { %v1208_v4 = vpop.f32.mrb[8].mxu0 }
 0x172   : > { %v1209_v5 = vadd.f32 %v1208_v4, %v1169_v2  ;;  %v1694_v6 = vpop.f32.mrb[9].mxu0 }
 0x173   : > { %v1211_v7 = vpop.f32.mrb[10].mxu0 }
 0x174   : > { %v1214_v8 = vadd.f32 %v1209_v5, %v320_v3  ;;  %v1695_v9 = vpop.f32.mrb[11].mxu0 }
 0x176   : > { %1215 = vst [vmem:[#allocation2] sm:$0xff] %v1214_v8 }
 0x17d   : > { %v1220_v17 = vld [vmem:[#allocation2] sm:$0xff] }
 0x17e   : > { %v1228_v19 = vadd.f32 %v1556_v18, %v1220_v17 }
 0x180   : > { %v1229_v21 = vmax.f32 %v1228_v19, 0.0 }
 0x182   : > { %v1230_v23 = vpack.c.bf16 %v1229_v21, %v1229_v21 }
 0x184   : > { %1713 = vmatmul.mubr.bf16.vlgmr.msra.gmra.mrb[0].mxu0 %v1230_v23 }
 0x257   : > { %v1336_v25 = vpop.f32.mrb[0].mxu0 }
 0x258   : > { %v1337_v26 = vadd.f32 %v1557_v24, %v1336_v25  ;;  %v1714_v27 = vpop.f32.mrb[1].mxu0 }
 0x259   : > { %v1339_v28 = vpop.f32.mrb[2].mxu0 }
 0x25a   : > { %v1715_v29 = vpop.f32.mrb[3].mxu0  ;;  %v1343_v30 = vsel %vm1342_vm2, %v1337_v26, -inf }
 0x25b   : > { %1344 = vmax.xlane.f32.xlu0 %v1343_v30 }
 0x2e8   : > { %v1345_v31 = vpop.xlane.xlu0 %1344 }
 0x2e9   : > { %v1346_v32 = vsub.f32 %v1337_v26, %v1345_v31 }
 0x2eb   : > { %v1347_v33 = vmul.f32 1.442695, %v1346_v32 }
 0x2ed   : > { %1922 = vpow2.f32 %v1347_v33 }
 0x2f7   : > { %v1923_v34 = vpop.eup %1922 }
 0x2f8   : > { %v1349_v35 = vsel %vm1342_vm2, %v1923_v34, 0.0 }
 0x2f9   : > { %1350 = vadd.xlane.f32.xlu0 %v1349_v35 }
 0x386   : > { %v1351_v36 = vpop.xlane.xlu0 %1350 }
 0x387   : > { %1924 = vlog2.f32 %v1351_v36 }
 0x391   : > { %v1925_v37 = vpop.eup %1924 }
 0x392   : > { %v1353_v38 = vmul.f32 0.6931472, %v1925_v37 }
 0x394   : > { %v1354_v39 = vadd.f32 %v1353_v38, %v1345_v31 }
 0x396   : > { %v1355_v40 = vsub.f32 %v1337_v26, %v1354_v39 }
 0x398   : > { %1356 = vst.msk [vmem:[#allocation4] sm:$0xff] %vm1342_vm2, %v1355_v40 }
 0x399 PF: > { %p1566_p0 = scmp.ne.s32.totalorder %s1477_s23, 7 }
 0x39b   : > { %1359 = sbr.rel (%p1566_p0) target bundleno = 949 (0x3b5), region = 78 }
 0x3a2   : > { %1365 = vsyncadd [#allocation5], 96  ;;  %s2046_s7 = smov [#allocation4]  }
 0x3a3   : > { %s1370_s8 = sshll.u32 %s2046_s7, 4  ;;  %s1371_s8 = int_to_ptr.vmem [resolvable:$true] %s1370_s8 }
 0x3a4   : > { %s1926_s9 = scalar_lea.vmem %s1371_s8, 32  ;;  %s1930_s10 = scalar_lea.vmem %s1371_s8, 128 }
 0x3a5   : > { %p1927_p1 = scmp.ne.s32.totalorder %s1371_s8, %s1926_s9  ;;  %p1931_p2 = scmp.lt.s32.totalorder %s1371_s8, %s1371_s8 }
 0x3a6   : > { %p1932_p3 = scmp.lt.s32.totalorder %s1930_s10, %s1926_s9 }
 0x3a8   : > { %p1933_p4 = por %p1932_p3, %p1931_p2 }
 0x3aa   : > { %p1934_p5 = pnand %p1933_p4, %p1927_p1 }
 0x3ac   : > { %1937 = shalt.err (!%p1934_p5)
}
 0x3ad   : > { %s1938_s12 = scalar_lea.hbm %s2304_s5, 32 }
 0x3ae   : > { %p1939_p6 = scmp.ne.s32.totalorder %s2304_s5, %s1938_s12  ;;  %p1942_p7 = scmp.lt.u32.totalorder %s1938_s12, %s2304_s5 }
 0x3b0   : > { %p1944_p8 = pnand %p1942_p7, %p1939_p6 }
 0x3b2   : > { %1947 = shalt.err (!%p1944_p8)
}
 0x3b3   : > { %s2047_s17 = smov 32   ;;  %s2048_s25 = smov 2  }
 0x3b4   : > { %1376 = dma.vmem_to_hbm [thread:$0]  %s1371_s8, 32, %s2304_s5, [#allocation5], %s2047_s17, %s2047_s17, %s2048_s25  }
 0x3b5 PF: > { %p1720_p9 = scmp.eq.s32.totalorder %s1477_s23, 7 }
 0x3b7   : > { %2001 = dma.done.wait (%p1720_p9), [#allocation5], 128  }
 0x3b8   : > { %2003 = vsyncadd (%p1720_p9), [#allocation5], 4294967168 }
 0x3b9 PF: > { %s16_s22 = sadd.s32 1, %s2022_s22   ;;  %s2305_s18 = smov %s2010_s19 }
 0x3ba   : > { %p13_p10 = scmp.ge.s32.totalorder %s16_s22, 10   ;;  %s2306_s19 = smov %s2115_s27 }
 0x3bb   : > { %s2307_s20 = smov %s2018_s21  ;;  %s2308_s21 = smov %s2310_s24 }
 0x3bc   :  { %15 = sbr.rel (!%p13_p10) target bundleno = 3 (0x3), region = 134 }
 0x3c3   :  { %1386 = vsyncpa [#allocation5], 1 }
 0x3c4   :  { %1388 = vsyncpa [#allocation5 + $0x1], 1 }

</bundles_post_ra>
